<compile_context>
chip_gen: v5e
topology: v5e:2x2
jax: 0.10.0
libtpu: 0.0.40
codegen_flags: <defaults>
</compile_context>

<pallas_src>
import numpy as np

import jax
import jax.numpy as jnp
from jax.experimental import pallas as pl
from jax.experimental.pallas import tpu as pltpu

# ---------------------------------------------------------------------------
# Model configuration (small, deterministic)
# ---------------------------------------------------------------------------
FIELD_DIMS = (10, 20, 30, 15, 25, 12, 8, 40)   # 8 fields
NUM_FIELDS = len(FIELD_DIMS)                   # F = 8
EMBED_DIM = 16                                 # output_dim (D)
FC_DIMS = (64, 32)                             # fc_dims
FLAT_DIM = NUM_FIELDS * EMBED_DIM              # F*D = 128
AUG_DIM = EMBED_DIM + FC_DIMS[0]               # 16 + 64 = 80 (fused K | W1)
BN_EPS = 1e-5

TILE_B = 256                                   # batch rows per grid step (fills 256-wide MXU)
BATCH = 512                                    # total batch (multiple of TILE_B)
GRID_B = BATCH // TILE_B


# ---------------------------------------------------------------------------
# Pallas kernel
# ---------------------------------------------------------------------------
def deepfm_kernel(vflat_ref, ylin_ref, w1aug_ref, b1_ref,
                  w2_ref, b2_ref, w3_ref, bias_ref, out_ref):
    v = vflat_ref[...]                                            # (TB, F*D) bf16
    v_f32 = v.astype(jnp.float32)

    # --- Fused FM field-sum + MLP layer 1: one bf16 MXU push ----------------
    # w1aug = [K_bf16 | W1_bf16]  (F*D, D + H1); f32 accumulation.
    h0 = jnp.dot(v, w1aug_ref[...], preferred_element_type=jnp.float32)  # (TB, D+H1)
    sum_v = h0[:, :EMBED_DIM]                                     # (TB, D)  field sum
    h = h0[:, EMBED_DIM:] + b1_ref[...]                           # (TB, H1) pre-ReLU

    # --- FM second-order interaction (keepdims columns, f32) ----------------
    sum_sq = jnp.sum(v_f32 * v_f32, axis=1, keepdims=True)        # (TB, 1)
    inter = 0.5 * (jnp.sum(sum_v * sum_v, axis=1, keepdims=True) - sum_sq)

    # --- MLP: ReLU -> Linear(H1, H2) -> ReLU -> Linear(H2, 1) ---------------
    h = jnp.maximum(h, 0.0)
    h = jnp.dot(h.astype(jnp.bfloat16), w2_ref[...],
                preferred_element_type=jnp.float32) + b2_ref[...]
    h = jnp.maximum(h, 0.0)
    y_mlp = jnp.sum(h * w3_ref[...], axis=1, keepdims=True)       # (TB, 1)

    # Combine column terms once, single column->row relayout, lane-dense store.
    col = inter + y_mlp + bias_ref[0, 0]                          # (TB, 1)
    out_ref[0, :] = jax.nn.sigmoid(col[:, 0] + ylin_ref[0, :])    # (TB,) lane-dense


@jax.jit
def deepfm_forward_pallas(vflat_bf16, ylin_row, w1aug_bf16, b1, w2_bf16, b2,
                          w3row, bias):
    out = pl.pallas_call(
        deepfm_kernel,
        out_shape=jax.ShapeDtypeStruct((1, BATCH), jnp.float32),
        grid=(GRID_B,),
        in_specs=[
            pl.BlockSpec((TILE_B, FLAT_DIM), lambda i: (i, 0)),          # vflat (bf16)
            pl.BlockSpec((1, TILE_B), lambda i: (0, i)),                 # y_lin row
            pl.BlockSpec((FLAT_DIM, AUG_DIM), lambda i: (0, 0)),         # [K|W1] bf16
            pl.BlockSpec((1, FC_DIMS[0]), lambda i: (0, 0)),             # b1
            pl.BlockSpec((FC_DIMS[0], FC_DIMS[1]), lambda i: (0, 0)),    # W2 (bf16)
            pl.BlockSpec((1, FC_DIMS[1]), lambda i: (0, 0)),             # b2
            pl.BlockSpec((1, FC_DIMS[1]), lambda i: (0, 0)),             # W_out row
            pl.BlockSpec(memory_space=pltpu.MemorySpace.SMEM),           # scalar bias
        ],
        out_specs=pl.BlockSpec((1, TILE_B), lambda i: (0, i)),           # lane-dense out
        compiler_params=pltpu.CompilerParams(
            dimension_semantics=("parallel",)),
    )(vflat_bf16, ylin_row, w1aug_bf16, b1, w2_bf16, b2, w3row, bias)
    return out[0]                                                        # (BATCH,)


# ---------------------------------------------------------------------------
# Deterministic parameter construction + pure-JAX reference
# ---------------------------------------------------------------------------
def make_params(key):
    keys = jax.random.split(key, 16)
    total = sum(FIELD_DIMS)
    p = {}
    p["emb"] = jax.random.normal(keys[0], (total, EMBED_DIM), jnp.float32) * 0.1
    p["lin_w"] = jax.random.normal(keys[1], (total, 1), jnp.float32) * 0.1
    p["lin_b"] = jnp.zeros((1,), jnp.float32)
    dims = (FLAT_DIM,) + FC_DIMS
    for i, (din, dout) in enumerate(zip(dims[:-1], dims[1:])):
        p[f"W{i}"] = jax.random.normal(keys[2 + 3 * i], (din, dout), jnp.float32) * 0.05
        p[f"b{i}"] = jax.random.normal(keys[3 + 3 * i], (dout,), jnp.float32) * 0.05
        p[f"bn{i}_gamma"] = 1.0 + 0.1 * jax.random.normal(keys[4 + 3 * i], (dout,), jnp.float32)
        p[f"bn{i}_beta"] = 0.05 * jax.random.normal(keys[10 + i], (dout,), jnp.float32)
        p[f"bn{i}_mean"] = 0.05 * jax.random.normal(keys[12 + i], (dout,), jnp.float32)
        p[f"bn{i}_var"] = 0.5 + jnp.abs(jax.random.normal(keys[14 + i], (dout,), jnp.float32))
    p["W_out"] = jax.random.normal(keys[8], (FC_DIMS[-1], 1), jnp.float32) * 0.05
    p["b_out"] = jax.random.normal(keys[9], (1,), jnp.float32) * 0.05
    return p


def fold_bn(W, b, gamma, beta, mean, var):
    scale = gamma / jnp.sqrt(var + BN_EPS)
    return W * scale[None, :], (b - mean) * scale + beta


def reference_forward(x, p, offsets):
    """Pure-JAX f32 reference mirroring the PyTorch forward (eval mode)."""
    idx = x + offsets[None, :]                                # (B, F)
    v = p["emb"][idx]                                         # (B, F, D)
    part1 = jnp.sum(v, axis=1) ** 2
    part2 = jnp.sum(v ** 2, axis=1)
    inter = 0.5 * jnp.sum(part1 - part2, axis=1)
    y_fm = (jnp.sum(p["lin_w"][idx][..., 0], axis=1) + p["lin_b"][0]) + inter
    h = v.reshape(v.shape[0], -1)
    for i in range(len(FC_DIMS)):
        h = h @ p[f"W{i}"] + p[f"b{i}"]
        h = (h - p[f"bn{i}_mean"]) / jnp.sqrt(p[f"bn{i}_var"] + BN_EPS) \
            * p[f"bn{i}_gamma"] + p[f"bn{i}_beta"]
        h = jnp.maximum(h, 0.0)
        # dropout: identity in eval mode
    y_mlp = (h @ p["W_out"] + p["b_out"])[:, 0]
    return jax.nn.sigmoid(y_fm + y_mlp)


if __name__ == "__main__":
    key = jax.random.PRNGKey(0)
    kp, kx = jax.random.split(key)
    params = make_params(kp)

    # Categorical input indices x: (B, F) int32, within each field's cardinality.
    maxvals = jnp.asarray(FIELD_DIMS, jnp.int32)
    u = jax.random.uniform(kx, (BATCH, NUM_FIELDS))
    x = (u * maxvals[None, :].astype(jnp.float32)).astype(jnp.int32)

    # ---- Glue in plain JAX: embedding gathers + BN folding -----------------
    offsets = jnp.asarray(
        np.concatenate([[0], np.cumsum(np.asarray(FIELD_DIMS[:-1]))]), jnp.int32)
    idx = x + offsets[None, :]                                # (B, F)
    v = params["emb"][idx]                                    # (B, F, D) f32
    # Stream v in bf16 (halves the per-step DMA); upcast inside the kernel
    # only where f32 is needed (sum-of-squares).
    vflat_bf16 = v.reshape(BATCH, FLAT_DIM).astype(jnp.bfloat16)   # (B, 128)
    # First-order linear term reduced in the wrapper -> lane-dense (1, B) row.
    ylin_row = jnp.sum(params["lin_w"][idx][..., 0], axis=1
                       ).reshape(1, BATCH).astype(jnp.float32)

    W1, b1 = fold_bn(params["W0"], params["b0"], params["bn0_gamma"],
                     params["bn0_beta"], params["bn0_mean"], params["bn0_var"])
    W2, b2 = fold_bn(params["W1"], params["b1"], params["bn1_gamma"],
                     params["bn1_beta"], params["bn1_mean"], params["bn1_var"])

    # Tiled-identity K (exact in bf16) fused with W1 into one MXU operand.
    K_bf16 = jnp.tile(jnp.eye(EMBED_DIM, dtype=jnp.bfloat16),
                      (NUM_FIELDS, 1))                        # (F*D, D)
    W1_aug = jnp.concatenate([K_bf16, W1.astype(jnp.bfloat16)], axis=1)  # (128, 80)

    W2_bf16 = W2.astype(jnp.bfloat16)
    b1 = b1.reshape(1, -1).astype(jnp.float32)
    b2 = b2.reshape(1, -1).astype(jnp.float32)
    W3row = params["W_out"].T.astype(jnp.float32)             # (1, H2)
    # scalar bias (linear bias + final-layer bias) -> SMEM
    bias = (params["lin_b"][0] + params["b_out"][0]).reshape(1, 1).astype(jnp.float32)

    # ---- Run kernel ---------------------------------------------------------
    out = deepfm_forward_pallas(vflat_bf16, ylin_row, W1_aug, b1,
                                W2_bf16, b2, W3row, bias)
    out = jax.block_until_ready(out)

    # ---- Check against pure-JAX f32 reference -------------------------------
    ref = reference_forward(x, params, offsets)
    assert out.shape == (BATCH,)
    # bf16 embeddings / MXU operands (f32 accumulation) -> loose-but-meaningful
    # tolerance on the sigmoid output.
    assert jnp.allclose(out, ref, atol=1e-2, rtol=0.0), (
        float(jnp.max(jnp.abs(out - ref))))

    print("KERNEL_OK")
</pallas_src>

<mosaic_0001>
module attributes {stable_mosaic.version = 11 : i64} {
  func.func @deepfm_kernel(%arg0: i32, %arg1: memref<256x128xbf16, #tpu.memory_space<vmem>>, %arg2: memref<1x256xf32, #tpu.memory_space<vmem>>, %arg3: memref<128x80xbf16, #tpu.memory_space<vmem>>, %arg4: memref<1x64xf32, #tpu.memory_space<vmem>>, %arg5: memref<64x32xbf16, #tpu.memory_space<vmem>>, %arg6: memref<1x32xf32, #tpu.memory_space<vmem>>, %arg7: memref<1x32xf32, #tpu.memory_space<vmem>>, %arg8: memref<1x1xf32, #tpu.memory_space<smem>>, %arg9: memref<1x256xf32, #tpu.memory_space<vmem>>) attributes {dimension_semantics = [#tpu.dimension_semantics<parallel>], iteration_bounds = array<i64: 2>, scalar_prefetch = 0 : i64, scratch_operands = 0 : i64, tpu.core_type = #tpu.core_type<tc>, window_params = [{transform_indices = @transform_0, window_bounds = array<i64: 256, 128>}, {transform_indices = @transform_1, window_bounds = array<i64: 1, 256>}, {pipeline_mode = #tpu.pipeline_mode<synchronous>, transform_indices = @transform_2, window_bounds = array<i64: 128, 80>}, {pipeline_mode = #tpu.pipeline_mode<synchronous>, transform_indices = @transform_3, window_bounds = array<i64: 1, 64>}, {pipeline_mode = #tpu.pipeline_mode<synchronous>, transform_indices = @transform_4, window_bounds = array<i64: 64, 32>}, {pipeline_mode = #tpu.pipeline_mode<synchronous>, transform_indices = @transform_5, window_bounds = array<i64: 1, 32>}, {pipeline_mode = #tpu.pipeline_mode<synchronous>, transform_indices = @transform_6, window_bounds = array<i64: 1, 32>}, {transform_indices = @transform_7, window_bounds = array<i64: 1, 1>}, {transform_indices = @transform_8, window_bounds = array<i64: 1, 256>}]} {
    %c0 = arith.constant 0 : index
    %c0_0 = arith.constant 0 : index
    %0 = vector.load %arg1[%c0, %c0_0] : memref<256x128xbf16, #tpu.memory_space<vmem>>, vector<256x128xbf16>
    %1 = arith.extf %0 : vector<256x128xbf16> to vector<256x128xf32>
    %c0_1 = arith.constant 0 : index
    %c0_2 = arith.constant 0 : index
    %2 = vector.load %arg3[%c0_1, %c0_2] : memref<128x80xbf16, #tpu.memory_space<vmem>>, vector<128x80xbf16>
    %cst = arith.constant dense<0.000000e+00> : vector<256x80xf32>
    %3 = tpu.matmul %0, %2, %cst {dimension_numbers = #tpu.dot_dimension_numbers<[1], [0], [0], [1], [0, 0, 1, 1], [], []>} : vector<256x128xbf16>, vector<128x80xbf16>, vector<256x80xf32> -> vector<256x80xf32>
    %4 = vector.extract_strided_slice %3 {offsets = [0, 0], sizes = [256, 16], strides = [1, 1]} : vector<256x80xf32> to vector<256x16xf32>
    %5 = vector.extract_strided_slice %3 {offsets = [0, 16], sizes = [256, 64], strides = [1, 1]} : vector<256x80xf32> to vector<256x64xf32>
    %c0_3 = arith.constant 0 : index
    %c0_4 = arith.constant 0 : index
    %6 = vector.load %arg4[%c0_3, %c0_4] : memref<1x64xf32, #tpu.memory_space<vmem>>, vector<1x64xf32>
    %7 = vector.broadcast %6 : vector<1x64xf32> to vector<256x64xf32>
    %8 = arith.addf %5, %7 : vector<256x64xf32>
    %9 = arith.mulf %1, %1 : vector<256x128xf32>
    %cst_5 = arith.constant dense<0.000000e+00> : vector<256xf32>
    %10 = vector.multi_reduction <add>, %9, %cst_5 [1] : vector<256x128xf32> to vector<256xf32>
    %11 = vector.shape_cast %10 : vector<256xf32> to vector<256x1xf32>
    %12 = arith.mulf %4, %4 : vector<256x16xf32>
    %cst_6 = arith.constant dense<0.000000e+00> : vector<256xf32>
    %13 = vector.multi_reduction <add>, %12, %cst_6 [1] : vector<256x16xf32> to vector<256xf32>
    %14 = vector.shape_cast %13 : vector<256xf32> to vector<256x1xf32>
    %15 = arith.subf %14, %11 : vector<256x1xf32>
    %cst_7 = arith.constant 5.000000e-01 : f32
    %16 = vector.broadcast %cst_7 : f32 to vector<256x1xf32>
    %17 = arith.mulf %16, %15 : vector<256x1xf32>
    %cst_8 = arith.constant 0.000000e+00 : f32
    %18 = vector.broadcast %cst_8 : f32 to vector<256x64xf32>
    %19 = arith.maximumf %8, %18 : vector<256x64xf32>
    %20 = arith.truncf %19 : vector<256x64xf32> to vector<256x64xbf16>
    %c0_9 = arith.constant 0 : index
    %c0_10 = arith.constant 0 : index
    %21 = vector.load %arg5[%c0_9, %c0_10] : memref<64x32xbf16, #tpu.memory_space<vmem>>, vector<64x32xbf16>
    %cst_11 = arith.constant dense<0.000000e+00> : vector<256x32xf32>
    %22 = tpu.matmul %20, %21, %cst_11 {dimension_numbers = #tpu.dot_dimension_numbers<[1], [0], [0], [1], [0, 0, 1, 1], [], []>} : vector<256x64xbf16>, vector<64x32xbf16>, vector<256x32xf32> -> vector<256x32xf32>
    %c0_12 = arith.constant 0 : index
    %c0_13 = arith.constant 0 : index
    %23 = vector.load %arg6[%c0_12, %c0_13] : memref<1x32xf32, #tpu.memory_space<vmem>>, vector<1x32xf32>
    %24 = vector.broadcast %23 : vector<1x32xf32> to vector<256x32xf32>
    %25 = arith.addf %22, %24 : vector<256x32xf32>
    %cst_14 = arith.constant 0.000000e+00 : f32
    %26 = vector.broadcast %cst_14 : f32 to vector<256x32xf32>
    %27 = arith.maximumf %25, %26 : vector<256x32xf32>
    %c0_15 = arith.constant 0 : index
    %c0_16 = arith.constant 0 : index
    %28 = vector.load %arg7[%c0_15, %c0_16] : memref<1x32xf32, #tpu.memory_space<vmem>>, vector<1x32xf32>
    %29 = vector.broadcast %28 : vector<1x32xf32> to vector<256x32xf32>
    %30 = arith.mulf %27, %29 : vector<256x32xf32>
    %cst_17 = arith.constant dense<0.000000e+00> : vector<256xf32>
    %31 = vector.multi_reduction <add>, %30, %cst_17 [1] : vector<256x32xf32> to vector<256xf32>
    %32 = vector.shape_cast %31 : vector<256xf32> to vector<256x1xf32>
    %33 = arith.addf %17, %32 : vector<256x1xf32>
    %c0_18 = arith.constant 0 : index
    %c0_19 = arith.constant 0 : index
    %34 = memref.load %arg8[%c0_18, %c0_19] : memref<1x1xf32, #tpu.memory_space<smem>>
    %35 = vector.broadcast %34 : f32 to vector<256x1xf32>
    %36 = arith.addf %33, %35 : vector<256x1xf32>
    %37 = vector.shape_cast %36 : vector<256x1xf32> to vector<256xf32>
    %c0_20 = arith.constant 0 : index
    %c0_21 = arith.constant 0 : index
    %38 = vector.load %arg2[%c0_20, %c0_21] : memref<1x256xf32, #tpu.memory_space<vmem>>, vector<1x256xf32>
    %39 = vector.shape_cast %38 : vector<1x256xf32> to vector<256xf32>
    %40 = arith.addf %37, %39 : vector<256xf32>
    %41 = arith.negf %40 : vector<256xf32>
    %42 = math.exp %41 : vector<256xf32>
    %cst_22 = arith.constant 1.000000e+00 : f32
    %43 = vector.broadcast %cst_22 : f32 to vector<256xf32>
    %44 = arith.addf %43, %42 : vector<256xf32>
    %45 = arith.divf %43, %44 : vector<256xf32>
    %c0_23 = arith.constant 0 : index
    %c0_24 = arith.constant 0 : index
    %46 = vector.load %arg9[%c0_23, %c0_24] : memref<1x256xf32, #tpu.memory_space<vmem>>, vector<1x256xf32>
    %47 = vector.shape_cast %46 : vector<1x256xf32> to vector<256xf32>
    %48 = vector.shape_cast %45 : vector<256xf32> to vector<1x256xf32>
    tpu.vector_store %arg9[%c0_23, %c0_24], %48 {strides = array<i32>} : memref<1x256xf32, #tpu.memory_space<vmem>>, vector<1x256xf32>,
    return
  }
  func.func @transform_0(%arg0: i32) -> (i32, i32) {
    %c0_i32 = arith.constant 0 : i32
    %c0_i32_0 = arith.constant 0 : i32
    return %arg0, %c0_i32 : i32, i32
  }
  func.func @transform_1(%arg0: i32) -> (i32, i32) {
    %c0_i32 = arith.constant 0 : i32
    %c0_i32_0 = arith.constant 0 : i32
    return %c0_i32, %arg0 : i32, i32
  }
  func.func @transform_2(%arg0: i32) -> (i32, i32) {
    %c0_i32 = arith.constant 0 : i32
    %c0_i32_0 = arith.constant 0 : i32
    %c0_i32_1 = arith.constant 0 : i32
    return %c0_i32, %c0_i32_0 : i32, i32
  }
  func.func @transform_3(%arg0: i32) -> (i32, i32) {
    %c0_i32 = arith.constant 0 : i32
    %c0_i32_0 = arith.constant 0 : i32
    %c0_i32_1 = arith.constant 0 : i32
    return %c0_i32, %c0_i32_0 : i32, i32
  }
  func.func @transform_4(%arg0: i32) -> (i32, i32) {
    %c0_i32 = arith.constant 0 : i32
    %c0_i32_0 = arith.constant 0 : i32
    %c0_i32_1 = arith.constant 0 : i32
    return %c0_i32, %c0_i32_0 : i32, i32
  }
  func.func @transform_5(%arg0: i32) -> (i32, i32) {
    %c0_i32 = arith.constant 0 : i32
    %c0_i32_0 = arith.constant 0 : i32
    %c0_i32_1 = arith.constant 0 : i32
    return %c0_i32, %c0_i32_0 : i32, i32
  }
  func.func @transform_6(%arg0: i32) -> (i32, i32) {
    %c0_i32 = arith.constant 0 : i32
    %c0_i32_0 = arith.constant 0 : i32
    %c0_i32_1 = arith.constant 0 : i32
    return %c0_i32, %c0_i32_0 : i32, i32
  }
  func.func @transform_7(%arg0: i32) -> (i32, i32) {
    %c0_i32 = arith.constant 0 : i32
    %c0_i32_0 = arith.constant 0 : i32
    %c0_i32_1 = arith.constant 0 : i32
    return %c0_i32, %c0_i32_0 : i32, i32
  }
  func.func @transform_8(%arg0: i32) -> (i32, i32) {
    %c0_i32 = arith.constant 0 : i32
    %c0_i32_0 = arith.constant 0 : i32
    return %c0_i32, %arg0 : i32, i32
  }
}

</mosaic_0001>

<bundles_post_ra>
// kernel: deepfm_forward_pallas.1
= control target key start
LH: loop header
LB: loop body
LE: loop exit
PB: predicated region body
PF: predicated region fallthrough
CT: control target
= control target key end

     0   :  { %s5182_s0 = inlined_call_operand.hbm [shape: bf16[512,128], index: 0, kind: input, shape index: {}]   ;;  %s5183_s1 = inlined_call_operand.vmem [shape: f32[1,512], index: 1, kind: input, shape index: {}]   ;;  %s5184_s2 = inlined_call_operand.vmem [shape: bf16[128,80], index: 2, kind: input, shape index: {}]   ;;  %s5185_s3 = inlined_call_operand.vmem [shape: f32[1,64], index: 3, kind: input, shape index: {}]   ;;  %s5186_s4 = inlined_call_operand.vmem [shape: bf16[64,32], index: 4, kind: input, shape index: {}]   ;;  %s5187_s5 = inlined_call_operand.vmem [shape: f32[1,32], index: 5, kind: input, shape index: {}]   ;;  %s5188_s6 = inlined_call_operand.vmem [shape: f32[1,32], index: 6, kind: input, shape index: {}]   ;;  %s5189_s7 = inlined_call_operand.<no memory space> [shape: f32[1,1], index: 7, kind: input, shape index: {}]   ;;  %s5190_s8 = inlined_call_operand.hbm [shape: f32[1,512], index: 8, kind: output, shape index: {}]  }
   0x1   :  { %13 = sst [smem:[#allocation2]] %s5189_s7 }
   0x2   :  { %14 = vsyncpa [#allocation4], 0 }
   0x3   :  { %16 = vsyncpa [#allocation4 + $0x1], 0 }
   0x4   :  { %17 = vsyncpa [#allocation5], 0 }
   0x5   :  { %19 = vsyncpa [#allocation5 + $0x1], 0  ;;  %s3786_s29 = smov 0   ;;  %s3788_s30 = smov 0  }
   0x6   :  { %s3790_s9 = smov 0   ;;  %s3792_s10 = smov 0  }
   0x7 LB: > { %s3807_s7 = sadd.s32 4294967295, %s3731_s10   ;;  %s3203_s11 = sadd.s32 4294967294, %s3731_s10   ;;  %s3731_s10 = sphi %s3792_s10, %s5312_s10   ;;  %s3727_s9 = sphi %s3790_s9, %s5311_s9   ;;  %s3723_s30 = sphi %s3788_s30, %s5310_s30   ;;  %s3719_s29 = sphi %s3786_s29, %s5309_s29  }
   0x8   : > { %s3811_s12 = sadd.s32 1, %s3731_s10   ;;  %s32_s13 = sadd.s32 1, %s3727_s9 }
   0x9   : > { %s29_s14 = ssub.s32 %s3731_s10, %s3811_s12  ;;  %p39_p0 = scmp.ne.s32.totalorder %s3727_s9, %s3723_s30 }
   0xa   : > { %p30_p1 = scmp.eq.s32.totalorder %s29_s14, 0  ;;  %p40_p2 = scmp.eq.s32.totalorder %s3731_s10, 0 }
   0xb   : > { %p45_p3 = scmp.ne.s32.totalorder %s3723_s30, %s3719_s29  ;;  %p46_p4 = scmp.eq.s32.totalorder %s3807_s7, 0 }
   0xc   : > { %s3823_s15 = scalar_select %p30_p1, %s3727_s9, %s32_s13  }
   0xd   : > { %p3825_p5 = por %p40_p2, %p39_p0  ;;  %p3829_p6 = por %p46_p4, %p45_p3 }
   0xe   : > { %5204 = sst [smem:[#allocation9_spill]] %s3823_s15  ;;  %p221_p7 = scmp.eq.s32.totalorder %s3807_s7, 1 }
   0xf   : > { %p227_p8 = scmp.eq.s32.totalorder %s3203_s11, 1  ;;  %p3430_p10 = scmp.lt.s32.totalorder %s3731_s10, 2 }
  0x10   : > { %p3836_p11 = por %p221_p7, %p39_p0  ;;  %s265_s20 = sand.u32 1, %s3727_s9  }
  0x11   : > { %p3840_p12 = por %p227_p8, %p45_p3  ;;  %s3377_s21 = sshll.u32 %s3731_s10, 7 }
  0x12   : > { %s3206_s22 = sshll.u32 %s265_s20, 7  ;;  %s274_s25 = scalar_lea.hbm %s5182_s0, %s3377_s21 }
  0x13   : > { %s275_s26 = sshll.u32 %s274_s25, 4  ;;  %s269_s27 = scalar_lea.vmem [#allocation3], %s3206_s22  ;;  %s276_s26 = int_to_ptr.hbm [resolvable:$true] %s275_s26 }
  0x14   : > { %s277_s28 = sshll.u32 %s269_s27, 4  ;;  %p3851_p13 = pnand %p3430_p10, %p3825_p5  ;;  %s278_s28 = int_to_ptr.vmem [resolvable:$true] %s277_s28 }
  0x15   : > { %p3209_p0 = scmp.ge.s32.totalorder %s3731_s10, 1  ;;  %p293_p1 = scmp.lt.s32.totalorder %s3731_s10, 3 }
  0x16   : > { %s266_s13 = scalar_lea.sflag [#allocation4], %s265_s20  ;;  %s3635_s14 = sshra.s32 %s276_s26, 4  ;;  %s3636_s14 = int_to_ptr.hbm [resolvable:$true] %s3635_s14 }
  0x17   : > { %s3637_s15 = scalar_lea.hbm %s3636_s14, 128  ;;  %p3639_p3 = pneg %p3851_p13 }
  0x18   : > { %p3638_p2 = scmp.ne.s32.totalorder %s3636_s14, %s3637_s15  ;;  %s3642_s16 = scalar_lea.hbm %s5182_s0, 256 }
  0x19   : > { %p3643_p5 = scmp.lt.s32.totalorder %s3636_s14, %s5182_s0  ;;  %p3644_p8 = scmp.lt.s32.totalorder %s3642_s16, %s3637_s15 }
  0x1a   : > { %p3640_p4 = pnand %p3639_p3, %p3638_p2 }
  0x1b   : > { %p3645_p10 = por %p3644_p8, %p3643_p5 }
  0x1c   : > { %p3641_p7 = pneg %p3640_p4 }
  0x1e   : > { %p3646_p9 = pnand %p3645_p10, %p3641_p7 }
  0x20   : > { %3649 = shalt.err (!%p3646_p9)
}
  0x21   : > { %s3733_s20 = smov 64   ;;  %s3734_s25 = smov 4  }
  0x22   : > { %3425 = dma.hbm_to_vmem [thread:$0]  (!%p3851_p13), %s276_s26, 2048, %s278_s28, %s266_s13, %s3733_s20, %s3733_s20, %s3734_s25  }
  0x23   : > { %p294_p2 = pnand %p3209_p0, %p293_p1 }
  0x25   : > { %297 = sbr.rel (%p294_p2) target bundleno = 1409 (0x581), region = 52 }
  0x2a   : > { %s3872_s27 = sand.u32 1, %s3723_s30  }
  0x2b   : > { %s3210_s15 = sshll.u32 %s3872_s27, 7  ;;  %s300_s14 = scalar_lea.sflag [#allocation4], %s3872_s27 }
  0x2c   : > { %s3876_s21 = scalar_lea.vmem [#allocation3], %s3210_s15 }
  0x2d   : > { %3710 = dma.done.wait (%p3829_p6), %s300_s14, 2048  }
  0x2e   : > { %3712 = vsyncadd (%p3829_p6), %s300_s14, 4294965248  ;;  %v3401_v0 = vld [vmem:[%s5184_s2 + $0x38] sm:$0xff]  ;;  %v350_v3 = vld [vmem:[%s3876_s21 + $0x4] sm:$0xff]   ;;  %s3735_s17 = smov 16   ;;  %vm828_vm0 = vcmask 130048   ;;  %vm1121_vm1 = vcmask 523264  }
  0x2f   : > { %v352_v1 = vld [vmem:[%s3876_s21 + $0xc] sm:$0xff]   ;;  %573 = vmatpush.bf16.msra.mxu0 %v3401_v0  ;;  %3406 = vmatpush.bf16.msra.mxu2 %v3401_v0  ;;  %v382_v5 = vunpack.c.l.bf16 %v350_v3  ;;  %v3504_v6 = vld [vmem:[%s5185_s3] ss:$0 sm:$0xff]  ;;  %v3399_v10 = vld [vmem:[%s5184_s2 + $0x28] sm:$0xff]  ;;  %v383_v11 = vunpack.c.h.bf16 %v350_v3  ;;  %vm1327_vm2 = vcmask 261120   ;;  %s3685_s24 = scalar_lea.hbm %s5190_s8, 4 }
  0x30   : > { %v384_v2 = vunpack.c.l.bf16 %v352_v1  ;;  %v3400_v4 = vld [vmem:[%s5184_s2 + $0x30] sm:$0xff]  ;;  %665 = vrot.lane.b32.xlu0 %v3504_v6, %s3735_s17  ;;  %v385_v9 = vunpack.c.h.bf16 %v352_v1  ;;  %v3398_v13 = vld [vmem:[%s5184_s2 + $0x20] sm:$0xff]  ;;  %v354_v16 = vld [vmem:[%s3876_s21 + $0x14] sm:$0xf]  ;;  %v5191_v6 = vlaneseq  ;;  %s3952_s17 = sshll.u32 %s3807_s7, 1  ;;  %s3736_s7 = smov 112  }
  0x31   : > { %v701_v8 = vmul.f32 %v382_v5, %v382_v5  ;;  %v355_v14 = vld [vmem:[%s3876_s21 + $0x18] sm:$0xff]   ;;  %v702_v15 = vmul.f32 %v383_v11, %v383_v11  ;;  %v3397_v18 = vld [vmem:[%s5184_s2 + $0x18] sm:$0xff]  ;;  %v386_v19 = vunpack.c.l.bf16 %v354_v16  ;;  %v3396_v21 = vld [vmem:[%s5184_s2 + $0x10] sm:$0xff]  ;;  %p343_p6 = scmp.lt.s32.totalorder %s3952_s17, 3  ;;  %s3119_s14 = scalar_lea.hbm %s5190_s8, %s3952_s17 }
  0x32   : > { %v703_v7 = vmul.f32 %v384_v2, %v384_v2  ;;  %v704_v12 = vmul.f32 %v385_v9, %v385_v9  ;;  %v387_v17 = vunpack.c.l.bf16 %v355_v14  ;;  %v357_v22 = vld [vmem:[%s3876_s21 + $0x20] sm:$0xff]   ;;  %v388_v26 = vunpack.c.h.bf16 %v355_v14  ;;  %v3394_v28 = vld [vmem:[%s5184_s2] sm:$0xff]  ;;  %v359_v29 = vld [vmem:[%s3876_s21 + $0x28] sm:$0xff]   ;;  %s3123_s11 = sshll.u32 %s3119_s14, 4  ;;  %s3124_s11 = int_to_ptr.hbm [resolvable:$true] %s3123_s11 }
  0x33   : > { %574 = vmatpush.bf16.msra.mxu0 %v3400_v4  ;;  %3407 = vmatpush.bf16.msra.mxu2 %v3400_v4  ;;  %v705_v23 = vmul.f32 %v386_v19, %v386_v19  ;;  %v389_v24 = vunpack.c.l.bf16 %v357_v22  ;;  %v3395_v25 = vld [vmem:[%s5184_s2 + $0x8] sm:$0xff]  ;;  %v391_v33 = vunpack.c.l.bf16 %v359_v29  ;;  %v390_v34 = vunpack.c.h.bf16 %v357_v22  ;;  %v361_v36 = vld [vmem:[%s3876_s21 + $0x30] sm:$0xff]   ;;  %v363_v43 = vld [vmem:[%s3876_s21 + $0x38] sm:$0xff]   ;;  %s344_s23 = scalar_select %p343_p6, %s3952_s17, 3 }
  0x34   : > { %738 = vadd.xlane.f32.xlu2 %v703_v7  ;;  %734 = vadd.xlane.f32.xlu1 %v701_v8  ;;  %v706_v20 = vmul.f32 %v387_v17, %v387_v17  ;;  %v707_v30 = vmul.f32 %v388_v26, %v388_v26  ;;  %v3378_v31 = vld [vmem:[%s3876_s21] sm:$0xff]  ;;  %v393_v39 = vunpack.c.l.bf16 %v361_v36  ;;  %v392_v41 = vunpack.c.h.bf16 %v359_v29  ;;  %v3379_v46 = vld [vmem:[%s3876_s21 + $0x8] sm:$0xff]  ;;  %v369_v60 = vld [vmem:[%s3876_s21 + $0x50] sm:$0xff]   ;;  %s3109_s17 = scalar_lea.sflag [#allocation5], %s3872_s27  ;;  %s3679_s13 = sshra.s32 %s3124_s11, 4  ;;  %s3680_s13 = int_to_ptr.hbm [resolvable:$true] %s3679_s13 }
  0x35   : > { %v708_v27 = vmul.f32 %v389_v24, %v389_v24  ;;  %v3386_v32 = vld [vmem:[%s3876_s21 + $0x40] sm:$0xff]  ;;  %v710_v35 = vmul.f32 %v391_v33, %v391_v33  ;;  %v709_v37 = vmul.f32 %v390_v34, %v390_v34  ;;  %v3387_v47 = vld [vmem:[%s3876_s21 + $0x48] sm:$0xff]  ;;  %v395_v48 = vunpack.c.l.bf16 %v363_v43  ;;  %v3380_v0 = vld [vmem:[%s3876_s21 + $0x10] sm:$0xff]  ;;  %s345_s25 = scalar_lea.vmem %s5183_s1, %s344_s23  ;;  %s3681_s22 = scalar_lea.hbm %s3680_s13, 2 }
  0x36   : > { %v349_v38 = vld [vmem:[%s3876_s21] sm:$0xf]  ;;  %v712_v42 = vmul.f32 %v393_v39, %v393_v39  ;;  %v711_v45 = vmul.f32 %v392_v41, %v392_v41  ;;  %v396_v49 = vunpack.c.h.bf16 %v363_v43  ;;  %v394_v50 = vunpack.c.h.bf16 %v361_v36  ;;  %v366_v52 = vld [vmem:[%s3876_s21 + $0x44] sm:$0xff]   ;;  %v368_v63 = vld [vmem:[%s3876_s21 + $0x4c] sm:$0xf]  ;;  %p3682_p9 = scmp.ne.s32.totalorder %s3680_s13, %s3681_s22  ;;  %p3686_p1 = scmp.lt.s32.totalorder %s3680_s13, %s5190_s8 }
  0x37   : > { %575 = vmatpush.bf16.msra.mxu0 %v3399_v10  ;;  %3408 = vmatpush.bf16.msra.mxu2 %v3399_v10  ;;  %v381_v40 = vunpack.c.l.bf16 %v349_v38  ;;  %v714_v51 = vmul.f32 %v395_v48, %v395_v48  ;;  %v365_v55 = vld [vmem:[%s3876_s21 + $0x40] sm:$0xf]  ;;  %v398_v56 = vunpack.c.l.bf16 %v366_v52  ;;  %v399_v57 = vunpack.c.h.bf16 %v366_v52  ;;  %v3388_v1 = vld [vmem:[%s3876_s21 + $0x50] sm:$0xff]  ;;  %v371_v11 = vld [vmem:[%s3876_s21 + $0x58] sm:$0xf]  ;;  %p3687_p3 = scmp.lt.s32.totalorder %s3685_s24, %s3681_s22 }
  0x38   : > { %v715_v53 = vmul.f32 %v396_v49, %v396_v49  ;;  %v713_v54 = vmul.f32 %v394_v50, %v394_v50  ;;  %v397_v58 = vunpack.c.l.bf16 %v365_v55  ;;  %v401_v2 = vunpack.c.l.bf16 %v369_v60  ;;  %v372_v7 = vld [vmem:[%s3876_s21 + $0x5c] sm:$0xff]   ;;  %v375_v17 = vld [vmem:[%s3876_s21 + $0x68] sm:$0xff]   ;;  %v3384_v48 = vld [vmem:[%s3876_s21 + $0x30] sm:$0xff]  ;;  %p3683_p13 = pnand %p3682_p9, %p3836_p11 }
  0x39   : > { %v700_v44 = vmul.f32 %v381_v40, %v381_v40  ;;  %v717_v59 = vmul.f32 %v398_v56, %v398_v56  ;;  %v718_v61 = vmul.f32 %v399_v57, %v399_v57  ;;  %v402_v3 = vunpack.c.h.bf16 %v369_v60  ;;  %v3389_v22 = vld [vmem:[%s3876_s21 + $0x58] sm:$0xff]  ;;  %v3382_v39 = vld [vmem:[%s3876_s21 + $0x20] sm:$0xff]  ;;  %v3383_v43 = vld [vmem:[%s3876_s21 + $0x28] sm:$0xff]  ;;  %p3688_p4 = por %p3687_p3, %p3686_p1 }
  0x3a   : > { %v716_v62 = vmul.f32 %v397_v58, %v397_v58  ;;  %v400_v4 = vunpack.c.l.bf16 %v368_v63  ;;  %v720_v5 = vmul.f32 %v401_v2, %v401_v2  ;;  %v3930_v10 = vshrl.u32 %v5191_v6, 7  ;;  %v380_v38 = vld [vmem:[%s3876_s21 + $0x7c] sm:$0xf]  ;;  %v3390_v40 = vld [vmem:[%s3876_s21 + $0x60] sm:$0xff]  ;;  %v3392_v49 = vld [vmem:[%s3876_s21 + $0x70] sm:$0xff]  ;;  %p3684_p0 = pneg %p3683_p13 }
  0x3b   : > { %576 = vmatpush.bf16.msra.mxu0 %v3398_v13  ;;  %3409 = vmatpush.bf16.msra.mxu2 %v3398_v13  ;;  %v721_v8 = vmul.f32 %v402_v3, %v402_v3  ;;  %v405_v14 = vunpack.c.h.bf16 %v372_v7  ;;  %v408_v24 = vunpack.c.h.bf16 %v375_v17  ;;  %v412_v41 = vunpack.c.l.bf16 %v380_v38  ;;  %v3393_v55 = vld [vmem:[%s3876_s21 + $0x78] sm:$0xff] }
  0x3c   : > { %740 = vadd.xlane.f32.xlu2 %v704_v12  ;;  %736 = vadd.xlane.f32.xlu1 %v702_v15  ;;  %v719_v9 = vmul.f32 %v400_v4, %v400_v4  ;;  %v404_v12 = vunpack.c.l.bf16 %v372_v7  ;;  %v3934_v13 = vadd.s32 8, %v3930_v10  ;;  %v403_v15 = vunpack.c.l.bf16 %v371_v11  ;;  %p3689_p7 = pnand %p3688_p4, %p3684_p0 }
  0x3d   : > { %3469 = vset.pattern.permute.xlu0 %v3930_v10  ;;  %v3983_v52 = vadd.s32 40, %v3930_v10  ;;  %v3994_v57 = vadd.s32 48, %v3930_v10 }
  0x3e   : > { %3470 = vset.pattern.permute.xlu2 %v3934_v13  ;;  %v723_v16 = vmul.f32 %v404_v12, %v404_v12  ;;  %v722_v19 = vmul.f32 %v403_v15, %v403_v15 }
  0x3f   : > { %577 = vmatpush.bf16.msra.mxu0 %v3397_v18  ;;  %3410 = vmatpush.bf16.msra.mxu2 %v3397_v18  ;;  %v724_v18 = vmul.f32 %v405_v14, %v405_v14  ;;  %5211 = vst [vmem:[#allocation11_spill] sm:$0xff] %v3983_v52 }
  0x40   : > { %5212 = vst [vmem:[#allocation12_spill] sm:$0xff] %v3994_v57 }
  0x43   : > { %578 = vmatpush.bf16.msra.mxu0 %v3396_v21  ;;  %3411 = vmatpush.bf16.msra.mxu2 %v3396_v21  ;;  %v3381_v21 = vld [vmem:[%s3876_s21 + $0x18] sm:$0xff] }
  0x44   : > { %744 = vadd.xlane.f32.xlu2 %v706_v20  ;;  %742 = vadd.xlane.f32.xlu1 %v705_v23  ;;  %v374_v20 = vld [vmem:[%s3876_s21 + $0x64] sm:$0xf]  ;;  %v407_v23 = vunpack.c.l.bf16 %v375_v17 }
  0x46   : > { %v726_v26 = vmul.f32 %v407_v23, %v407_v23 }
  0x47   : > { %579 = vmatpush.bf16.msra.mxu0 %v3395_v25  ;;  %3412 = vmatpush.bf16.msra.mxu2 %v3395_v25  ;;  %v406_v25 = vunpack.c.l.bf16 %v374_v20 }
  0x49   : > { %v725_v29 = vmul.f32 %v406_v25, %v406_v25 }
  0x4b   : > { %580 = vmatpush.bf16.msra.mxu0 %v3394_v28  ;;  %3413 = vmatpush.bf16.msra.mxu2 %v3394_v28  ;;  %v727_v28 = vmul.f32 %v408_v24, %v408_v24 }
  0x4c   : > { %748 = vadd.xlane.f32.xlu2 %v708_v27  ;;  %746 = vadd.xlane.f32.xlu1 %v707_v30  ;;  %v378_v27 = vld [vmem:[%s3876_s21 + $0x74] sm:$0xff]   ;;  %v377_v30 = vld [vmem:[%s3876_s21 + $0x70] sm:$0xf] }
  0x4d   : > { %v409_v33 = vunpack.c.l.bf16 %v377_v30 }
  0x4e   : > { %581 = vmatmul.bf16.vlgmr.msra.gmra.mxu0 %v3378_v31  ;;  %621 = vmatmul.bf16.vlgmr.msra.gmra.mxu2 %v3386_v32  ;;  %v410_v31 = vunpack.c.l.bf16 %v378_v27  ;;  %v411_v32 = vunpack.c.h.bf16 %v378_v27 }
  0x4f   : > { %v728_v36 = vmul.f32 %v409_v33, %v409_v33 }
  0x50   : > { %v729_v34 = vmul.f32 %v410_v31, %v410_v31 }
  0x54   : > { %752 = vadd.xlane.f32.xlu2 %v710_v35  ;;  %750 = vadd.xlane.f32.xlu1 %v709_v37  ;;  %v730_v35 = vmul.f32 %v411_v32, %v411_v32  ;;  %v3945_v37 = vadd.s32 16, %v3930_v10 }
  0x56   : > { %3471 = vset.pattern.permute.xlu1 %v3945_v37 }
  0x5a   : > { %732 = vadd.xlane.f32.xlu0 %v700_v44  ;;  %v3391_v44 = vld [vmem:[%s3876_s21 + $0x68] sm:$0xff] }
  0x5c   : > { %756 = vadd.xlane.f32.xlu2 %v712_v42  ;;  %754 = vadd.xlane.f32.xlu1 %v711_v45  ;;  %v731_v42 = vmul.f32 %v412_v41, %v412_v41  ;;  %v3961_v45 = vld [vmem:[%s345_s25] sm:$0x3]  ;;  %s1456_s25 = sld [smem:[#allocation2]] }
  0x5e   : > { %586 = vmatmul.bf16.gmra.mxu0 %v3379_v46  ;;  %626 = vmatmul.bf16.gmra.mxu2 %v3387_v47  ;;  %v3964_v46 = vperm.slane %v3961_v45, 0  ;;  %v3969_v47 = vadd.s32 24, %v3930_v10 }
  0x62   : > { %762 = vadd.xlane.f32.xlu0 %v715_v53 }
  0x64   : > { %760 = vadd.xlane.f32.xlu2 %v714_v51  ;;  %758 = vadd.xlane.f32.xlu1 %v713_v54  ;;  %v3978_v51 = vadd.s32 32, %v3930_v10  ;;  %v3385_v54 = vld [vmem:[%s3876_s21 + $0x38] sm:$0xff] }
  0x66   : > { %5210 = vst [vmem:[#allocation10_spill] sm:$0xff] %v3978_v51 }
  0x6a   : > { %768 = vadd.xlane.f32.xlu0 %v718_v61 }
  0x6c   : > { %766 = vadd.xlane.f32.xlu2 %v717_v59  ;;  %764 = vadd.xlane.f32.xlu1 %v716_v62 }
  0x6e   : > { %591 = vmatmul.bf16.gmra.mxu0 %v3380_v0  ;;  %631 = vmatmul.bf16.gmra.mxu2 %v3388_v1 }
  0x72   : > { %774 = vadd.xlane.f32.xlu0 %v721_v8 }
  0x74   : > { %772 = vadd.xlane.f32.xlu2 %v720_v5  ;;  %770 = vadd.xlane.f32.xlu1 %v719_v9 }
  0x7a   : > { %780 = vadd.xlane.f32.xlu0 %v724_v18 }
  0x7c   : > { %778 = vadd.xlane.f32.xlu2 %v723_v16  ;;  %776 = vadd.xlane.f32.xlu1 %v722_v19 }
  0x7e   : > { %596 = vmatmul.bf16.gmra.mxu0 %v3381_v21  ;;  %636 = vmatmul.bf16.gmra.mxu2 %v3389_v22 }
  0x82   : > { %786 = vadd.xlane.f32.xlu0 %v727_v28 }
  0x84   : > { %784 = vadd.xlane.f32.xlu2 %v726_v26  ;;  %782 = vadd.xlane.f32.xlu1 %v725_v29 }
  0x8a   : > { %792 = vadd.xlane.f32.xlu0 %v730_v35 }
  0x8c   : > { %790 = vadd.xlane.f32.xlu2 %v729_v34  ;;  %788 = vadd.xlane.f32.xlu1 %v728_v36 }
  0x8e   : > { %601 = vmatmul.bf16.gmra.mxu0 %v3382_v39  ;;  %641 = vmatmul.bf16.gmra.mxu2 %v3390_v40 }
  0x94   : > { %794 = vadd.xlane.f32.xlu1 %v731_v42 }
  0x9e   : > { %606 = vmatmul.bf16.gmra.mxu0 %v3383_v43  ;;  %646 = vmatmul.bf16.gmra.mxu2 %v3391_v44 }
  0x9f   : > { %1498 = vperm.xlu0 %3469, %v3964_v46  }
  0xa2   : > { %v4003_v61 = vpop.permute.xlu0 %665 }
  0xa4   : > { %1504 = vperm.xlu2 %3470, %v3964_v46  }
  0xa7   : > { %v3975_v50 = vpop.xlane.xlu1 %734  ;;  %v4000_v60 = vpop.xlane.xlu2 %738 }
  0xac   : > { %3472 = vset.pattern.permute.xlu2 %v3969_v47 }
  0xad   : > { %1510 = vperm.xlu1 %3471, %v3964_v46  }
  0xae   : > { %611 = vmatmul.bf16.gmra.mxu0 %v3384_v48  ;;  %651 = vmatmul.bf16.gmra.mxu2 %v3392_v49 }
  0xaf   : > { %v3985_v53 = vpop.xlane.xlu1 %736  ;;  %v4010_v7 = vpop.xlane.xlu2 %740 }
  0xb4   : > { %1516 = vperm.xlu2 %3472, %v3964_v46  }
  0xb5   : > { %3473 = vset.pattern.permute.xlu1 %v3978_v51 }
  0xb7   : > { %v3991_v56 = vpop.xlane.xlu1 %742  ;;  %v4020_v22 = vpop.xlane.xlu2 %744 }
  0xbc   : > { %3474 = vset.pattern.permute.xlu2 %v3983_v52 }
  0xbd   : > { %1522 = vperm.xlu1 %3473, %v3964_v46  }
  0xbe   : > { %616 = vmatmul.bf16.gmra.mxu0 %v3385_v54  ;;  %656 = vmatmul.bf16.gmra.mxu2 %v3393_v55 }
  0xbf   : > { %v3998_v58 = vpop.xlane.xlu1 %746  ;;  %v4024_v28 = vpop.xlane.xlu2 %748 }
  0xc4   : > { %1528 = vperm.xlu2 %3474, %v3964_v46  }
  0xc5   : > { %3475 = vset.pattern.permute.xlu1 %v3994_v57 }
  0xc7   : > { %v4008_v5 = vpop.xlane.xlu1 %750  ;;  %v4032_v39 = vpop.xlane.xlu2 %752 }
  0xc8   : > { %5213 = vst [vmem:[#allocation13_spill] sm:$0xff] %v4008_v5 }
  0xc9   : > { %5217 = vst [vmem:[#allocation17_spill] sm:$0xff] %v4032_v39 }
  0xcb   : > { %v582_v59 = vpop.f32.mrf.mxu0 }
  0xcc   : > { %v668_v62 = vadd.f32 %v4003_v61, %v582_v59  ;;  %v796_v25 = vmul.f32 %v582_v59, %v582_v59 }
  0xcd   : > { %1534 = vperm.xlu1 %3475, %v3964_v46  }
  0xce   : > { %v989_v4 = vmax.f32 %v668_v62, 0.0  ;;  %v829_v30 = vsel %vm828_vm0, %v796_v25, 0.0 }
  0xcf   : > { %v4016_v20 = vpop.xlane.xlu1 %754  ;;  %v4037_v43 = vpop.xlane.xlu2 %756 }
  0xd0   : > { %5214 = vst [vmem:[#allocation14_spill] sm:$0xff] %v4016_v20 }
  0xd1   : > { %v622_v63 = vpop.f32.mrf.mxu2  ;;  %5218 = vst [vmem:[#allocation18_spill] sm:$0xff] %v4037_v43 }
  0xd2   : > { %v812_v0 = vmul.f32 %v622_v63, %v622_v63  ;;  %v684_v11 = vadd.f32 %v4003_v61, %v622_v63 }
  0xd3   : > { %v584_v1 = vpop.f32.mrf.mxu0 }
  0xd4   : > { %v669_v2 = vadd.f32 %v4003_v61, %v584_v1  ;;  %v877_v3 = vsel %vm828_vm0, %v812_v0, 0.0  ;;  %v797_v8 = vmul.f32 %v584_v1, %v584_v1  ;;  %v1005_v17 = vmax.f32 %v684_v11, 0.0 }
  0xd5   : > { %878 = vadd.xlane.f32.xlu0 %v877_v3 }
  0xd6   : > { %v990_v9 = vmax.f32 %v669_v2, 0.0  ;;  %v832_v16 = vsel %vm828_vm0, %v797_v8, 0.0  ;;  %v4048_v2 = vpop.xlane.xlu0 %732 }
  0xd7   : > { %v4022_v26 = vpop.xlane.xlu1 %758 }
  0xd8   : > { %v1021_v12 = vpack.c.bf16 %v990_v9, %v989_v4  ;;  %5215 = vst [vmem:[#allocation15_spill] sm:$0xff] %v4022_v26  ;;  %v4050_v4 = vpop.xlane.xlu2 %760 }
  0xd9   : > { %v624_v14 = vpop.f32.mrf.mxu2  ;;  %5219 = vst [vmem:[#allocation19_spill] sm:$0xff] %v4050_v4 }
  0xda   : > { %v685_v15 = vadd.f32 %v4003_v61, %v624_v14  ;;  %1065 = vrot.lane.b32.xlu1 %v1021_v12, %s3736_s7  ;;  %v813_v44 = vmul.f32 %v624_v14, %v624_v14 }
  0xdb   : > { %v587_v18 = vpop.f32.mrf.mxu0 }
  0xdc   : > { %v1006_v19 = vmax.f32 %v685_v15, 0.0  ;;  %v880_v55 = vsel %vm828_vm0, %v813_v44, 0.0  ;;  %v798_v0 = vmul.f32 %v587_v18, %v587_v18  ;;  %v670_v8 = vadd.f32 %v4003_v61, %v587_v18  ;;  %v3402_v44 = vld [vmem:[%s5186_s4] sm:$0xff] }
  0xdd   : > { %833 = vadd.xlane.f32.xlu0 %v832_v16 }
  0xde   : > { %v4018_v21 = vpack.c.bf16 %v1006_v19, %v1005_v17  ;;  %v835_v14 = vsel %vm828_vm0, %v798_v0, 0.0  ;;  %v991_v15 = vmax.f32 %v670_v8, 0.0  ;;  %v4059_v25 = vpop.xlane.xlu0 %762 }
  0xdf   : > { %v4030_v38 = vpop.xlane.xlu1 %764  ;;  %5221 = vst [vmem:[#allocation21_spill] sm:$0xff] %v4059_v25 }
  0xe0   : > { %5216 = vst [vmem:[#allocation16_spill] sm:$0xff] %v4030_v38 }
  0xe1   : > { %v627_v23 = vpop.f32.mrf.mxu2 }
  0xe2   : > { %v814_v31 = vmul.f32 %v627_v23, %v627_v23  ;;  %v686_v49 = vadd.f32 %v4003_v61, %v627_v23 }
  0xe3   : > { %v589_v24 = vpop.f32.mrf.mxu0 }
  0xe4   : > { %v883_v35 = vsel %vm828_vm0, %v814_v31, 0.0  ;;  %v799_v40 = vmul.f32 %v589_v24, %v589_v24  ;;  %v1007_v62 = vmax.f32 %v686_v49, 0.0  ;;  %v671_v9 = vadd.f32 %v4003_v61, %v589_v24  ;;  %v4062_v24 = vpop.xlane.xlu2 %766 }
  0xe5   : > { %5222 = vst [vmem:[#allocation22_spill] sm:$0xff] %v4062_v24 }
  0xe6   : > { %v838_v41 = vsel %vm828_vm0, %v799_v40, 0.0  ;;  %v992_v16 = vmax.f32 %v671_v9, 0.0  ;;  %v3403_v40 = vld [vmem:[%s5186_s4 + $0x8] sm:$0xff] }
  0xe7   : > { %v4035_v42 = vpop.xlane.xlu1 %770 }
  0xe8   : > { %v1022_v18 = vpack.c.bf16 %v992_v16, %v991_v15 }
  0xe9   : > { %v629_v27 = vpop.f32.mrf.mxu2 }
  0xea   : > { %v815_v29 = vmul.f32 %v629_v27, %v629_v27  ;;  %v687_v48 = vadd.f32 %v4003_v61, %v629_v27 }
  0xeb   : > { %v592_v33 = vpop.f32.mrf.mxu0 }
  0xec   : > { %v886_v32 = vsel %vm828_vm0, %v815_v29, 0.0  ;;  %v800_v34 = vmul.f32 %v592_v33, %v592_v33  ;;  %v1008_v54 = vmax.f32 %v687_v48, 0.0  ;;  %v672_v11 = vadd.f32 %v4003_v61, %v592_v33  ;;  %v4067_v29 = vpop.xlane.xlu0 %768 }
  0xed   : > { %830 = vadd.xlane.f32.xlu2 %v829_v30  ;;  %887 = vadd.xlane.f32.xlu0 %v886_v32  ;;  %v4069_v30 = vpop.xlane.xlu2 %772  ;;  %v3405_v32 = vld [vmem:[%s5186_s4 + $0x18] sm:$0xff] }
  0xee   : > { %v841_v36 = vsel %vm828_vm0, %v800_v34, 0.0  ;;  %v1030_v3 = vpack.c.bf16 %v1008_v54, %v1007_v62  ;;  %v993_v17 = vmax.f32 %v672_v11, 0.0  ;;  %1174 = vmatpush.bf16.msra.mxu1 %v3405_v32  ;;  %3414 = vmatpush.bf16.msra.mxu3 %v3405_v32  ;;  %v3404_v34 = vld [vmem:[%s5186_s4 + $0x10] sm:$0xff] }
  0xef   : > { %v4044_v63 = vpop.xlane.xlu1 %776 }
  0xf1   : > { %v632_v31 = vpop.f32.mrf.mxu2 }
  0xf2   : > { %1175 = vmatpush.bf16.msra.mxu1 %v3404_v34  ;;  %3415 = vmatpush.bf16.msra.mxu3 %v3404_v34  ;;  %v816_v34 = vmul.f32 %v632_v31, %v632_v31 }
  0xf3   : > { %v4042_v59 = vpop.f32.mrf.mxu0 }
  0xf4   : > { %v673_v1 = vadd.f32 %v4003_v61, %v4042_v59 }
  0xf5   : > { %884 = vadd.xlane.f32.xlu2 %v883_v35  ;;  %842 = vadd.xlane.f32.xlu0 %v841_v36  ;;  %v4079_v35 = vpop.xlane.xlu0 %774  ;;  %v4083_v36 = vpop.xlane.xlu2 %778 }
  0xf6   : > { %v994_v12 = vmax.f32 %v673_v1, 0.0  ;;  %5225 = vst [vmem:[#allocation25_spill] sm:$0xff] %v4079_v35  ;;  %1176 = vmatpush.bf16.msra.mxu1 %v3403_v40  ;;  %3416 = vmatpush.bf16.msra.mxu3 %v3403_v40 }
  0xf7   : > { %v4057_v23 = vpop.xlane.xlu1 %782 }
  0xf8   : > { %v1023_v19 = vpack.c.bf16 %v994_v12, %v993_v17  ;;  %5220 = vst [vmem:[#allocation20_spill] sm:$0xff] %v4057_v23 }
  0xfa   : > { %1177 = vmatpush.bf16.msra.mxu1 %v3402_v44  ;;  %3417 = vmatpush.bf16.msra.mxu3 %v3402_v44 }
  0xfb   : > { %v597_v54 = vpop.f32.mrf.mxu0 }
  0xfc   : > { %v802_v15 = vmul.f32 %v597_v54, %v597_v54 }
  0xfd   : > { %839 = vadd.xlane.f32.xlu2 %v838_v41  ;;  %v634_v41 = vpop.f32.mrf.mxu2  ;;  %v4095_v49 = vpop.xlane.xlu2 %784 }
  0xfe   : > { %5227 = vst [vmem:[#allocation27_spill] sm:$0xff] %v4095_v49  ;;  %v817_v0 = vmul.f32 %v634_v41, %v634_v41  ;;  %v847_v17 = vsel %vm828_vm0, %v802_v15, 0.0  ;;  %v801_v15 = vmul.f32 %v4042_v59, %v4042_v59 }
  0xff   : > { %v4065_v27 = vpop.xlane.xlu1 %788 }
 0x100   : > { %5223 = vst [vmem:[#allocation23_spill] sm:$0xff] %v4065_v27  ;;  %v892_v12 = vsel %vm828_vm0, %v817_v0, 0.0 }
 0x103   : > { %v599_v11 = vpop.f32.mrf.mxu0 }
 0x104   : > { %881 = vadd.xlane.f32.xlu1 %v880_v55  ;;  %v675_v44 = vadd.f32 %v4003_v61, %v599_v11 }
 0x105   : > { %v4097_v55 = vpop.f32.mrf.mxu2  ;;  %v4106_v9 = vpop.xlane.xlu2 %790 }
 0x106   : > { %v818_v62 = vmul.f32 %v4097_v55, %v4097_v55  ;;  %5229 = vst [vmem:[#allocation29_spill] sm:$0xff] %v4106_v9 }
 0x107   : > { %v4074_v33 = vpop.xlane.xlu1 %794 }
 0x108   : > { %5224 = vst [vmem:[#allocation24_spill] sm:$0xff] %v4074_v33  ;;  %v895_v1 = vsel %vm828_vm0, %v818_v62, 0.0 }
 0x109   : > { %1083 = vrot.lane.b32.xlu0 %v1030_v3, %s3736_s7 }
 0x10c   : > { %836 = vadd.xlane.f32.xlu1 %v835_v14  ;;  %v803_v14 = vmul.f32 %v599_v11, %v599_v11  ;;  %v688_v11 = vadd.f32 %v4003_v61, %v632_v31 }
 0x10d   : > { %v4115_v32 = vpop.permute.xlu2 %1504  ;;  %v639_v33 = vpop.f32.mrf.mxu2 }
 0x10e   : > { %v850_v16 = vsel %vm828_vm0, %v803_v14, 0.0  ;;  %v996_v14 = vmax.f32 %v675_v44, 0.0  ;;  %v819_v44 = vmul.f32 %v639_v33, %v639_v33 }
 0x111   : > { %1069 = vrot.lane.b32.xlu0 %v1023_v19, %s3736_s7 }
 0x115   : > { %1067 = vrot.lane.b32.xlu2 %v1022_v18, %s3736_s7  ;;  %v4121_v0 = vpop.permute.xlu2 %1516 }
 0x11e   : > { %v4129_v24 = vpop.permute.xlu2 %1528 }
 0x11f   : > { %v4091_v48 = vpop.permute.xlu1 %1510 }
 0x125   : > { %1081 = vrot.lane.b32.xlu1 %v4018_v21, %s3736_s7  ;;  %v4093_v21 = vpop.xlane.xlu0 %780 }
 0x126   : > { %5226 = vst [vmem:[#allocation26_spill] sm:$0xff] %v4093_v21 }
 0x12d   : > { %v4104_v8 = vpop.xlane.xlu0 %786 }
 0x12e   : > { %5228 = vst [vmem:[#allocation28_spill] sm:$0xff] %v4104_v8 }
 0x12f   : > { %v4102_v3 = vpop.permute.xlu1 %1522 }
 0x135   : > { %v4113_v18 = vpop.xlane.xlu0 %792 }
 0x136   : > { %5230 = vst [vmem:[#allocation30_spill] sm:$0xff] %v4113_v18 }
 0x13b   : > { %896 = vadd.xlane.f32.xlu0 %v895_v1  ;;  %v889_v1 = vsel %vm828_vm0, %v816_v34, 0.0 }
 0x13d   : > { %v4118_v62 = vpop.permute.xlu0 %1498 }
 0x13e   : > { %893 = vadd.xlane.f32.xlu2 %v892_v12  ;;  %v674_v12 = vadd.f32 %v4003_v61, %v597_v54  ;;  %v1009_v54 = vmax.f32 %v688_v11, 0.0 }
 0x13f   : > { %v4111_v19 = vpop.permute.xlu1 %1534 }
 0x143   : > { %851 = vadd.xlane.f32.xlu0 %v850_v16  ;;  %v689_v16 = vadd.f32 %v4003_v61, %v634_v41  ;;  %v898_v41 = vsel %vm828_vm0, %v819_v44, 0.0 }
 0x145   : > { %v1010_v49 = vmax.f32 %v689_v16, 0.0 }
 0x146   : > { %848 = vadd.xlane.f32.xlu2 %v847_v17  ;;  %v995_v17 = vmax.f32 %v674_v12, 0.0 }
 0x147   : > { %v1031_v59 = vpack.c.bf16 %v1010_v49, %v1009_v54  ;;  %v642_v49 = vpop.f32.mrf.mxu2 }
 0x148   : > { %v1024_v6 = vpack.c.bf16 %v996_v14, %v995_v17  ;;  %v4132_v34 = vpop.xlane.xlu0 %878  ;;  %v820_v18 = vmul.f32 %v642_v49, %v642_v49 }
 0x149   : > { %5231 = vst [vmem:[#allocation31_spill] sm:$0xff] %v4132_v34 }
 0x14c   : > { %v1066_v40 = vpop.permute.xlu1 %1065 }
 0x14d   : > { %3325 = vmatmul.msk.bf16.vlgmr.msra.gmra.mxu1 %vm1121_vm1, %v1066_v40  ;;  %v844_v40 = vsel %vm828_vm0, %v801_v15, 0.0 }
 0x14f   : > { %890 = vadd.xlane.f32.xlu1 %v889_v1  ;;  %v602_v1 = vpop.f32.mrf.mxu0 }
 0x150   : > { %v804_v12 = vmul.f32 %v602_v1, %v602_v1  ;;  %v4139_v14 = vpop.xlane.xlu0 %833 }
 0x152   : > { %v853_v15 = vsel %vm828_vm0, %v804_v12, 0.0 }
 0x157   : > { %845 = vadd.xlane.f32.xlu1 %v844_v40  ;;  %1071 = vrot.lane.b32.xlu0 %v1024_v6, %s3736_s7  ;;  %v691_v40 = vadd.f32 %v4003_v61, %v639_v33  ;;  %v604_v44 = vpop.f32.mrf.mxu0 }
 0x159   : > { %v1012_v12 = vmax.f32 %v691_v40, 0.0 }
 0x15e   : > { %1085 = vrot.lane.b32.xlu2 %v1031_v59, %s3736_s7  ;;  %v690_v59 = vadd.f32 %v4003_v61, %v4097_v55 }
 0x15f   : > { %899 = vadd.xlane.f32.xlu1 %v898_v41  ;;  %v644_v41 = vpop.f32.mrf.mxu2  ;;  %v607_v33 = vpop.f32.mrf.mxu0 }
 0x160   : > { %v4137_v31 = vpop.xlane.xlu2 %830  ;;  %v4144_v6 = vpop.xlane.xlu0 %887  ;;  %v821_v34 = vmul.f32 %v644_v41, %v644_v41  ;;  %v1011_v38 = vmax.f32 %v690_v59, 0.0  ;;  %v806_v4 = vmul.f32 %v607_v33, %v607_v33  ;;  %v805_v59 = vmul.f32 %v604_v44, %v604_v44 }
 0x162   : > { %v1032_v25 = vpack.c.bf16 %v1012_v12, %v1011_v38  ;;  %v904_v9 = vsel %vm828_vm0, %v821_v34, 0.0  ;;  %v859_v40 = vsel %vm828_vm0, %v806_v4, 0.0  ;;  %v693_v38 = vadd.f32 %v4003_v61, %v644_v41 }
 0x163   : > { %v677_v12 = vadd.f32 %v4003_v61, %v604_v44 }
 0x164   : > { %v1014_v34 = vmax.f32 %v693_v38, 0.0 }
 0x165   : > { %v998_v4 = vmax.f32 %v677_v12, 0.0 }
 0x167   : > { %854 = vadd.xlane.f32.xlu1 %v853_v15  ;;  %v647_v26 = vpop.f32.mrf.mxu2 }
 0x168   : > { %v4142_v16 = vpop.xlane.xlu2 %884  ;;  %v4148_v11 = vpop.xlane.xlu0 %842 }
 0x170   : > { %v4146_v17 = vpop.xlane.xlu2 %839 }
 0x177   : > { %v4175_v38 = vpop.xlane.xlu1 %881 }
 0x178   : > { %v1068_v54 = vpop.permute.xlu2 %1067  ;;  %5234 = vst [vmem:[#allocation34_spill] sm:$0xff] %v4175_v38 }
 0x179   : > { %3326 = vmatmul.msk.bf16.gmra.mxu1 %vm1121_vm1, %v1068_v54  ;;  %v901_v54 = vsel %vm828_vm0, %v820_v18, 0.0 }
 0x17b   : > { %v1084_v15 = vpop.permute.xlu0 %1083 }
 0x17c   : > { %3334 = vmatmul.msk.bf16.vlgmr.msra.gmra.mxu3 %vm1121_vm1, %v1084_v15  ;;  %v856_v15 = vsel %vm828_vm0, %v805_v59, 0.0  ;;  %v609_v59 = vpop.f32.mrf.mxu0 }
 0x17d   : > { %v807_v44 = vmul.f32 %v609_v59, %v609_v59 }
 0x180   : > { %1087 = vrot.lane.b32.xlu1 %v1032_v25, %s3736_s7  ;;  %v692_v25 = vadd.f32 %v4003_v61, %v642_v49  ;;  %v4169_v49 = vadd.s32 72, %v3930_v10 }
 0x181   : > { %905 = vadd.xlane.f32.xlu0 %v904_v9 }
 0x182   : > { %v1013_v9 = vmax.f32 %v692_v25, 0.0  ;;  %5232 = vst [vmem:[#allocation32_spill] sm:$0xff] %v4169_v49  ;;  %3478 = vset.pattern.permute.xlu1 %v4169_v49  ;;  %v649_v25 = vpop.f32.mrf.mxu2 }
 0x183   : > { %v1070_v55 = vpop.permute.xlu0 %1069  ;;  %v823_v20 = vmul.f32 %v649_v25, %v649_v25 }
 0x184   : > { %v1033_v18 = vpack.c.bf16 %v1014_v34, %v1013_v9  ;;  %v4181_v9 = vpop.xlane.xlu1 %836  ;;  %v612_v12 = vpop.f32.mrf.mxu0 }
 0x187   : > { %902 = vadd.xlane.f32.xlu2 %v901_v54  ;;  %v676_v54 = vadd.f32 %v4003_v61, %v602_v1 }
 0x189   : > { %3327 = vmatmul.msk.bf16.gmra.mxu1 %vm1121_vm1, %v1070_v55  ;;  %860 = vadd.xlane.f32.xlu0 %v859_v40  ;;  %v997_v55 = vmax.f32 %v676_v54, 0.0  ;;  %v822_v40 = vmul.f32 %v647_v26, %v647_v26 }
 0x18a   : > { %v4186_v54 = vpop.f32.mrf.mxu2 }
 0x18b   : > { %v1025_v8 = vpack.c.bf16 %v998_v4, %v997_v55  ;;  %v907_v41 = vsel %vm828_vm0, %v822_v40, 0.0  ;;  %v824_v55 = vmul.f32 %v4186_v54, %v4186_v54  ;;  %v679_v40 = vadd.f32 %v4003_v61, %v609_v59 }
 0x18c   : > { %v614_v49 = vpop.f32.mrf.mxu0  ;;  %v4202_v59 = vadd.s32 64, %v3930_v10 }
 0x18d   : > { %v913_v38 = vsel %vm828_vm0, %v824_v55, 0.0  ;;  %v1000_v43 = vmax.f32 %v679_v40, 0.0  ;;  %v809_v21 = vmul.f32 %v614_v49, %v614_v49  ;;  %v910_v55 = vsel %vm828_vm0, %v823_v20, 0.0 }
 0x18e   : > { %5237 = vst [vmem:[#allocation37_spill] sm:$0xff] %v4202_v59  ;;  %3477 = vset.pattern.permute.xlu2 %v4202_v59 }
 0x18f   : > { %857 = vadd.xlane.f32.xlu2 %v856_v15  ;;  %v862_v15 = vsel %vm828_vm0, %v807_v44, 0.0  ;;  %v678_v44 = vadd.f32 %v4003_v61, %v607_v33 }
 0x191   : > { %v999_v27 = vmax.f32 %v678_v44, 0.0 }
 0x19d   : > { %1089 = vrot.lane.b32.xlu0 %v1033_v18, %s3736_s7  ;;  %v4184_v18 = vadd.s32 56, %v3930_v10 }
 0x19f   : > { %5236 = vst [vmem:[#allocation36_spill] sm:$0xff] %v4184_v18  ;;  %3476 = vset.pattern.permute.xlu0 %v4184_v18  ;;  %v1026_v18 = vpack.c.bf16 %v1000_v43, %v999_v27  ;;  %v681_v27 = vadd.f32 %v4003_v61, %v614_v49 }
 0x1a1   : > { %v1002_v40 = vmax.f32 %v681_v27, 0.0 }
 0x1a7   : > { %1073 = vrot.lane.b32.xlu2 %v1025_v8, %s3736_s7 }
 0x1aa   : > { %908 = vadd.xlane.f32.xlu1 %v907_v41 }
 0x1ae   : > { %v4177_v34 = vpop.xlane.xlu0 %896 }
 0x1af   : > { %5235 = vst [vmem:[#allocation35_spill] sm:$0xff] %v4177_v34 }
 0x1b1   : > { %v4172_v1 = vpop.xlane.xlu2 %893 }
 0x1b2   : > { %5233 = vst [vmem:[#allocation33_spill] sm:$0xff] %v4172_v1  ;;  %863 = vadd.xlane.f32.xlu1 %v862_v15  ;;  %v4196_v15 = vpop.permute.xlu1 %1081 }
 0x1b6   : > { %v4193_v41 = vpop.xlane.xlu0 %851 }
 0x1b9   : > { %v4179_v8 = vpop.xlane.xlu2 %848 }
 0x1c1   : > { %v1086_v4 = vpop.permute.xlu2 %1085 }
 0x1c2   : > { %3335 = vmatmul.msk.bf16.gmra.mxu3 %vm1121_vm1, %v1086_v4  ;;  %v4204_v33 = vpop.xlane.xlu1 %890  ;;  %v868_v4 = vsel %vm828_vm0, %v809_v21, 0.0 }
 0x1c7   : > { %914 = vadd.xlane.f32.xlu0 %v913_v38  ;;  %v808_v38 = vmul.f32 %v612_v12, %v612_v12 }
 0x1c9   : > { %v1072_v5 = vpop.permute.xlu0 %1071 }
 0x1ca   : > { %3328 = vmatmul.msk.bf16.gmra.mxu1 %vm1121_vm1, %v1072_v5  ;;  %v865_v5 = vsel %vm828_vm0, %v808_v38, 0.0  ;;  %v4211_v43 = vpop.xlane.xlu1 %845 }
 0x1cb   : > { %1075 = vrot.lane.b32.xlu1 %v1026_v18, %s3736_s7  ;;  %v680_v18 = vadd.f32 %v4003_v61, %v612_v12 }
 0x1cd   : > { %v1001_v21 = vmax.f32 %v680_v18, 0.0 }
 0x1cf   : > { %869 = vadd.xlane.f32.xlu0 %v868_v4  ;;  %v1027_v20 = vpack.c.bf16 %v1002_v40, %v1001_v21  ;;  %v695_v4 = vadd.f32 %v4003_v61, %v649_v25  ;;  %v4233_v40 = vadd.s32 88, %v3930_v10 }
 0x1d0   : > { %911 = vadd.xlane.f32.xlu2 %v910_v55  ;;  %v694_v55 = vadd.f32 %v4003_v61, %v647_v26  ;;  %v4229_v26 = vadd.s32 80, %v3930_v10 }
 0x1d1   : > { %v1016_v59 = vmax.f32 %v695_v4, 0.0  ;;  %5240 = vst [vmem:[#allocation40_spill] sm:$0xff] %v4233_v40 }
 0x1d2   : > { %v4215_v44 = vpop.xlane.xlu1 %899  ;;  %v1015_v38 = vmax.f32 %v694_v55, 0.0  ;;  %5239 = vst [vmem:[#allocation39_spill] sm:$0xff] %v4229_v26 }
 0x1d3   : > { %1552 = vperm.xlu1 %3478, %v3964_v46  }
 0x1d4   : > { %v1034_v49 = vpack.c.bf16 %v1016_v59, %v1015_v38  ;;  %v617_v59 = vpop.f32.mrf.mxu0 }
 0x1d8   : > { %866 = vadd.xlane.f32.xlu2 %v865_v5  ;;  %v654_v5 = vpop.f32.mrf.mxu2 }
 0x1d9   : > { %v825_v27 = vmul.f32 %v654_v5, %v654_v5 }
 0x1da   : > { %v4220_v1 = vpop.xlane.xlu1 %854 }
 0x1db   : > { %v916_v25 = vsel %vm828_vm0, %v825_v27, 0.0  ;;  %3480 = vset.pattern.permute.xlu1 %v4233_v40  ;;  %v697_v40 = vadd.f32 %v4003_v61, %v654_v5 }
 0x1e0   : > { %v657_v38 = vpop.f32.mrf.mxu2 }
 0x1e1   : > { %v698_v52 = vadd.f32 %v4003_v61, %v657_v38 }
 0x1e3   : > { %1077 = vrot.lane.b32.xlu0 %v1027_v20, %s3736_s7  ;;  %v810_v20 = vmul.f32 %v617_v59, %v617_v59  ;;  %v1019_v39 = vmax.f32 %v698_v52, 0.0  ;;  %v4263_v52 = vadd.s32 96, %v3930_v10 }
 0x1e5   : > { %v871_v55 = vsel %vm828_vm0, %v810_v20, 0.0  ;;  %v696_v20 = vadd.f32 %v4003_v61, %v4186_v54  ;;  %5246 = vst [vmem:[#allocation46_spill] sm:$0xff] %v4263_v52 }
 0x1e8   : > { %v659_v27 = vpop.f32.mrf.mxu2 }
 0x1eb   : > { %1540 = vperm.xlu0 %3476, %v3964_v46  }
 0x1f0   : > { %1091 = vrot.lane.b32.xlu2 %v1034_v49, %s3736_s7 }
 0x1f2   : > { %v1088_v12 = vpop.permute.xlu1 %1087 }
 0x1f3   : > { %3336 = vmatmul.msk.bf16.gmra.mxu3 %vm1121_vm1, %v1088_v12  ;;  %3481 = vset.pattern.permute.xlu0 %v4263_v52 }
 0x1f4   : > { %v4235_v21 = vpop.xlane.xlu0 %905 }
 0x1f5   : > { %5241 = vst [vmem:[#allocation41_spill] sm:$0xff] %v4235_v21 }
 0x1f8   : > { %1546 = vperm.xlu2 %3477, %v3964_v46  }
 0x1fa   : > { %v4226_v18 = vpop.xlane.xlu2 %902 }
 0x1fb   : > { %5238 = vst [vmem:[#allocation38_spill] sm:$0xff] %v4226_v18 }
 0x1fc   : > { %v4243_v49 = vpop.xlane.xlu0 %860 }
 0x1fd   : > { %917 = vadd.xlane.f32.xlu1 %v916_v25  ;;  %5243 = vst [vmem:[#allocation43_spill] sm:$0xff] %v4243_v49  ;;  %v827_v25 = vmul.f32 %v659_v27, %v659_v27 }
 0x200   : > { %3479 = vset.pattern.permute.xlu2 %v4229_v26  ;;  %v922_v26 = vsel %vm828_vm0, %v827_v25, 0.0  ;;  %v826_v25 = vmul.f32 %v657_v38, %v657_v38 }
 0x202   : > { %v4239_v4 = vpop.xlane.xlu2 %857  ;;  %v919_v54 = vsel %vm828_vm0, %v826_v25, 0.0 }
 0x203   : > { %5242 = vst [vmem:[#allocation42_spill] sm:$0xff] %v4239_v4  ;;  %v1017_v4 = vmax.f32 %v696_v20, 0.0  ;;  %v4273_v20 = vadd.s32 112, %v3930_v10 }
 0x205   : > { %872 = vadd.xlane.f32.xlu1 %v871_v55  ;;  %v1018_v55 = vmax.f32 %v697_v40, 0.0  ;;  %v1179_v40 = vpop.f32.mrf.mxu1  ;;  %5247 = vst [vmem:[#allocation47_spill] sm:$0xff] %v4273_v20 }
 0x207   : > { %v1035_v35 = vpack.c.bf16 %v1018_v55, %v1017_v4 }
 0x208   : > { %1558 = vperm.xlu2 %3479, %v3964_v46  }
 0x20a   : > { %v1074_v12 = vpop.permute.xlu2 %1073 }
 0x20b   : > { %3329 = vmatmul.msk.bf16.gmra.mxu1 %vm1121_vm1, %v1074_v12  ;;  %v699_v12 = vadd.f32 %v4003_v61, %v659_v27 }
 0x20d   : > { %v1020_v49 = vmax.f32 %v699_v12, 0.0 }
 0x20f   : > { %v1090_v18 = vpop.permute.xlu0 %1089 }
 0x210   : > { %3337 = vmatmul.msk.bf16.gmra.mxu3 %vm1121_vm1, %v1090_v18  ;;  %v1036_v18 = vpack.c.bf16 %v1020_v49, %v1019_v39  ;;  %v1181_v39 = vpop.f32.mrf.mxu1  ;;  %v4270_v49 = vld [vmem:[%s5187_s5] ss:$0 sm:$0xff] }
 0x211   : > { %v1182_v12 = vadd.f32 %v4270_v49, %v1181_v39 }
 0x215   : > { %923 = vadd.xlane.f32.xlu0 %v922_v26  ;;  %v619_v26 = vpop.f32.mrf.mxu0 }
 0x21d   : > { %v4256_v5 = vpop.xlane.xlu1 %908 }
 0x21e   : > { %1093 = vrot.lane.b32.xlu1 %v1035_v35, %s3736_s7  ;;  %5244 = vst [vmem:[#allocation44_spill] sm:$0xff] %v4256_v5  ;;  %v811_v35 = vmul.f32 %v619_v26, %v619_v26  ;;  %v4287_v5 = vld [vmem:[%s5188_s6] ss:$0 sm:$0xff] }
 0x220   : > { %v874_v27 = vsel %vm828_vm0, %v811_v35, 0.0 }
 0x225   : > { %v4259_v4 = vpop.xlane.xlu1 %863 }
 0x226   : > { %1564 = vperm.xlu1 %3480, %v3964_v46   ;;  %5245 = vst [vmem:[#allocation45_spill] sm:$0xff] %v4259_v4 }
 0x229   : > { %1095 = vrot.lane.b32.xlu0 %v1036_v18, %s3736_s7  ;;  %v1184_v18 = vpop.f32.mrf.mxu1 }
 0x22a   : > { %v1185_v35 = vadd.f32 %v4270_v49, %v1184_v18 }
 0x22e   : > { %3483 = vset.pattern.permute.xlu1 %v4273_v20  ;;  %v1261_v20 = vmax.f32 %v1185_v35, 0.0 }
 0x230   : > { %v1297_v18 = vmul.f32 %v4287_v5, %v1261_v20  ;;  %v4309_v20 = vpop.f32.mrf.mxu3 }
 0x231   : > { %920 = vadd.xlane.f32.xlu2 %v919_v54  ;;  %v683_v54 = vadd.f32 %v4003_v61, %v619_v26  ;;  %v4300_v35 = vpop.f32.mrf.mxu1 }
 0x233   : > { %v1004_v52 = vmax.f32 %v683_v54, 0.0 }
 0x239   : > { %875 = vadd.xlane.f32.xlu2 %v874_v27  ;;  %v682_v27 = vadd.f32 %v4003_v61, %v617_v59 }
 0x23a   : > { %v4279_v25 = vpop.xlane.xlu0 %914 }
 0x23b   : > { %5249 = vst [vmem:[#allocation49_spill] sm:$0xff] %v4279_v25  ;;  %v1003_v39 = vmax.f32 %v682_v27, 0.0 }
 0x23d   : > { %v1076_v38 = vpop.permute.xlu1 %1075  ;;  %v1028_v25 = vpack.c.bf16 %v1004_v52, %v1003_v39  ;;  %v4303_v52 = vadd.s32 104, %v3930_v10 }
 0x23e   : > { %3330 = vmatmul.msk.bf16.gmra.mxu1 %vm1121_vm1, %v1076_v38  ;;  %v1260_v38 = vmax.f32 %v1182_v12, 0.0  ;;  %v1334_v12 = vsel %vm1327_vm2, %v1297_v18, 0.0  ;;  %v1226_v18 = vpop.f32.mrf.mxu3 }
 0x23f   : > { %5252 = vst [vmem:[#allocation52_spill] sm:$0xff] %v4303_v52  ;;  %3482 = vset.pattern.permute.xlu2 %v4303_v52 }
 0x240   : > { %v1296_v4 = vmul.f32 %v4287_v5, %v1260_v38 }
 0x242   : > { %v4292_v26 = vpop.xlane.xlu0 %869  ;;  %v1331_v61 = vsel %vm1327_vm2, %v1296_v4, 0.0  ;;  %v1180_v4 = vadd.f32 %v4270_v49, %v1179_v40 }
 0x243   : > { %v4275_v55 = vpop.xlane.xlu2 %911  ;;  %5251 = vst [vmem:[#allocation51_spill] sm:$0xff] %v4292_v26 }
 0x244   : > { %5248 = vst [vmem:[#allocation48_spill] sm:$0xff] %v4275_v55  ;;  %v1259_v27 = vmax.f32 %v1180_v4, 0.0 }
 0x245   : > { %v4314_v39 = vpop.permute.xlu1 %1552 }
 0x246   : > { %v1295_v38 = vmul.f32 %v4287_v5, %v1259_v27  ;;  %5253 = vst [vmem:[#allocation53_spill] sm:$0xff] %v4314_v39 }
 0x24b   : > { %v4289_v55 = vpop.xlane.xlu2 %866 }
 0x24c   : > { %5250 = vst [vmem:[#allocation50_spill] sm:$0xff] %v4289_v55 }
 0x250   : > { %1332 = vadd.xlane.f32.xlu1 %v1331_v61 }
 0x251   : > { %1079 = vrot.lane.b32.xlu2 %v1028_v25, %s3736_s7  ;;  %v1189_v25 = vpop.f32.mrf.mxu1  ;;  %s3211_s7 = sshll.u32 %s3872_s27, 1 }
 0x252   : > { %s340_s26 = scalar_lea.vmem [#allocation6], %s3211_s7 }
 0x253   : > { %v1092_v59 = vpop.permute.xlu2 %1091  ;;  %1335 = vadd.xlane.f32.xlu0 %v1334_v12  ;;  %v1229_v12 = vpop.f32.mrf.mxu3  ;;  %s3121_s28 = sshll.u32 %s340_s26, 4  ;;  %s3122_s28 = int_to_ptr.vmem [resolvable:$true] %s3121_s28 }
 0x254   : > { %3338 = vmatmul.msk.bf16.gmra.mxu3 %vm1121_vm1, %v1092_v59  ;;  %v1328_v59 = vsel %vm1327_vm2, %v1295_v38, 0.0  ;;  %v1230_v57 = vadd.f32 %v4270_v49, %v1229_v12 }
 0x255   : > { %v1078_v54 = vpop.permute.xlu0 %1077 }
 0x256   : > { %3331 = vmatmul.msk.bf16.gmra.mxu1 %vm1121_vm1, %v1078_v54 }
 0x259   : > { %v1191_v61 = vpop.f32.mrf.mxu1 }
 0x25a   : > { %v1192_v4 = vadd.f32 %v4270_v49, %v1191_v61 }
 0x25b   : > { %v4323_v52 = vpop.f32.mrf.mxu3  ;;  %v4335_v21 = vpop.permute.xlu2 %1546 }
 0x25c   : > { %v1264_v26 = vmax.f32 %v1192_v4, 0.0  ;;  %5256 = vst [vmem:[#allocation56_spill] sm:$0xff] %v4335_v21 }
 0x25e   : > { %v1300_v38 = vmul.f32 %v4287_v5, %v1264_v26 }
 0x261   : > { %v4319_v40 = vpop.f32.mrf.mxu1 }
 0x267   : > { %1570 = vperm.xlu0 %3481, %v3964_v46  }
 0x269   : > { %1582 = vperm.xlu1 %3483, %v3964_v46   ;;  %v1196_v55 = vpop.f32.mrf.mxu1 }
 0x26f   : > { %3486 = vset.pattern.permute.xlu0 %v3934_v13  ;;  %v1190_v13 = vadd.f32 %v4270_v49, %v1189_v25  ;;  %v1279_v25 = vmax.f32 %v1230_v57, 0.0  ;;  %v1197_v57 = vadd.f32 %v4270_v49, %v1196_v55 }
 0x270   : > { %v4317_v54 = vpop.xlane.xlu1 %917 }
 0x271   : > { %3485 = vset.pattern.permute.xlu1 %v3930_v10  ;;  %5254 = vst [vmem:[#allocation54_spill] sm:$0xff] %v4317_v54  ;;  %v1263_v39 = vmax.f32 %v1190_v13, 0.0  ;;  %v4330_v54 = vpop.permute.xlu0 %1540  ;;  %v1343_v13 = vsel %vm1327_vm2, %v1300_v38, 0.0  ;;  %v1315_v12 = vmul.f32 %v4287_v5, %v1279_v25 }
 0x273   : > { %v1299_v51 = vmul.f32 %v4287_v5, %v1263_v39  ;;  %v1388_v38 = vsel %vm1327_vm2, %v1315_v12, 0.0 }
 0x276   : > { %v4333_v61 = vpop.f32.mrf.mxu3 }
 0x278   : > { %v4325_v27 = vpop.xlane.xlu1 %872 }
 0x279   : > { %5255 = vst [vmem:[#allocation55_spill] sm:$0xff] %v4325_v27 }
 0x27a   : > { %1329 = vadd.xlane.f32.xlu2 %v1328_v59  ;;  %v1227_v59 = vadd.f32 %v4270_v49, %v1226_v18  ;;  %v1340_v18 = vsel %vm1327_vm2, %v1299_v51, 0.0 }
 0x27c   : > { %v1278_v26 = vmax.f32 %v1227_v59, 0.0  ;;  %v4348_v59 = vpop.permute.xlu2 %1558 }
 0x27e   : > { %v1314_v23 = vmul.f32 %v4287_v5, %v1278_v26 }
 0x280   : > { %v1385_v51 = vsel %vm1327_vm2, %v1314_v23, 0.0 }
 0x288   : > { %v1199_v27 = vpop.f32.mrf.mxu1  ;;  %v4345_v34 = vpop.xlane.xlu0 %923 }
 0x289   : > { %v1200_v39 = vadd.f32 %v4270_v49, %v1199_v27 }
 0x28b   : > { %v1267_v21 = vmax.f32 %v1200_v39, 0.0 }
 0x28d   : > { %v1303_v25 = vmul.f32 %v4287_v5, %v1267_v21 }
 0x28f   : > { %v1352_v39 = vsel %vm1327_vm2, %v1303_v25, 0.0  ;;  %v1225_v25 = vadd.f32 %v4270_v49, %v4309_v20 }
 0x290   : > { %v1094_v4 = vpop.permute.xlu1 %1093 }
 0x291   : > { %1344 = vadd.xlane.f32.xlu0 %v1343_v13  ;;  %3339 = vmatmul.msk.bf16.gmra.mxu3 %vm1121_vm1, %v1094_v4  ;;  %v1236_v13 = vpop.f32.mrf.mxu3  ;;  %v1266_v4 = vmax.f32 %v1197_v57, 0.0 }
 0x292   : > { %1576 = vperm.xlu2 %3482, %v3964_v46   ;;  %v1237_v27 = vadd.f32 %v4270_v49, %v1236_v13  ;;  %v1187_v13 = vadd.f32 %v4270_v49, %v4300_v35 }
 0x293   : > { %1341 = vadd.xlane.f32.xlu1 %v1340_v18  ;;  %v1302_v55 = vmul.f32 %v4287_v5, %v1266_v4 }
 0x294   : > { %v1282_v26 = vmax.f32 %v1237_v27, 0.0  ;;  %v1262_v4 = vmax.f32 %v1187_v13, 0.0  ;;  %v4365_v27 = vpop.f32.mrf.mxu1 }
 0x295   : > { %v1349_v57 = vsel %vm1327_vm2, %v1302_v55, 0.0 }
 0x296   : > { %v1318_v23 = vmul.f32 %v4287_v5, %v1282_v26  ;;  %v1298_v55 = vmul.f32 %v4287_v5, %v1262_v4  ;;  %v1277_v26 = vmax.f32 %v1225_v25, 0.0 }
 0x298   : > { %v1313_v20 = vmul.f32 %v4287_v5, %v1277_v26 }
 0x299   : > { %1389 = vadd.xlane.f32.xlu0 %v1388_v38  ;;  %v1397_v38 = vsel %vm1327_vm2, %v1318_v23, 0.0  ;;  %v1195_v23 = vadd.f32 %v4270_v49, %v4319_v40 }
 0x29a   : > { %v1382_v13 = vsel %vm1327_vm2, %v1313_v20, 0.0 }
 0x29b   : > { %1386 = vadd.xlane.f32.xlu1 %v1385_v51  ;;  %v1096_v18 = vpop.permute.xlu0 %1095 }
 0x2a1   : > { %1353 = vadd.xlane.f32.xlu0 %v1352_v39  ;;  %3340 = vmatmul.msk.bf16.gmra.mxu3 %vm1121_vm1, %v1096_v18  ;;  %v1337_v18 = vsel %vm1327_vm2, %v1298_v55, 0.0  ;;  %v4373_v39 = vperm.slane %v3961_v45, 1  ;;  %v4384_v45 = vpop.f32.mrf.mxu3 }
 0x2a3   : > { %1350 = vadd.xlane.f32.xlu1 %v1349_v57  ;;  %v4376_v57 = vadd.s32 120, %v3930_v10 }
 0x2a4   : > { %v4356_v12 = vpop.xlane.xlu2 %920 }
 0x2a5   : > { %3484 = vset.pattern.permute.xlu2 %v4376_v57 }
 0x2a9   : > { %1398 = vadd.xlane.f32.xlu0 %v1397_v38  ;;  %v1265_v38 = vmax.f32 %v1195_v23, 0.0  ;;  %v4394_v23 = vpop.permute.xlu1 %1564 }
 0x2ac   : > { %v4361_v21 = vpop.xlane.xlu2 %875 }
 0x2b4   : > { %v1080_v51 = vpop.permute.xlu2 %1079 }
 0x2b5   : > { %3332 = vmatmul.msk.bf16.gmra.mxu1 %vm1121_vm1, %v1080_v51  ;;  %v1301_v51 = vmul.f32 %v4287_v5, %v1265_v38  ;;  %v1235_v38 = vadd.f32 %v4270_v49, %v4333_v61 }
 0x2b7   : > { %v1346_v25 = vsel %vm1327_vm2, %v1301_v51, 0.0 }
 0x2bb   : > { %1338 = vadd.xlane.f32.xlu2 %v1337_v18  ;;  %v1204_v35 = vpop.f32.mrf.mxu1  ;;  %v1241_v18 = vpop.f32.mrf.mxu3 }
 0x2bc   : > { %1594 = vperm.xlu1 %3485, %v4373_v39  }
 0x2c3   : > { %1383 = vadd.xlane.f32.xlu2 %v1382_v13  ;;  %v1206_v10 = vpop.f32.mrf.mxu1 }
 0x2c4   : > { %v1207_v4 = vadd.f32 %v4270_v49, %v1206_v10  ;;  %3488 = vset.pattern.permute.xlu1 %v3969_v47  ;;  %v926_v47 = vsub.f32 %v4139_v14, %v3975_v50 }
 0x2c5   : > { %3333 = vmatmul.msk.bf16.gmra.mxu1 %vm1121_vm1, %v4196_v15 }
 0x2c6   : > { %v1270_v40 = vmax.f32 %v1207_v4, 0.0  ;;  %v1281_v4 = vmax.f32 %v1235_v38, 0.0 }
 0x2c8   : > { %v1306_v55 = vmul.f32 %v4287_v5, %v1270_v40  ;;  %v1333_v40 = vpop.xlane.xlu1 %1332  ;;  %v1317_v61 = vmul.f32 %v4287_v5, %v1281_v4 }
 0x2ca   : > { %v1361_v26 = vsel %vm1327_vm2, %v1306_v55, 0.0  ;;  %v1205_v55 = vadd.f32 %v4270_v49, %v1204_v35  ;;  %v1394_v38 = vsel %vm1327_vm2, %v1317_v61, 0.0  ;;  %v927_v35 = vsub.f32 %v4181_v9, %v3985_v53 }
 0x2cb   : > { %1347 = vadd.xlane.f32.xlu2 %v1346_v25  ;;  %1362 = vadd.xlane.f32.xlu0 %v1361_v26  ;;  %v958_v25 = vmul.f32 0.5, %v926_v47 }
 0x2cc   : > { %v1269_v50 = vmax.f32 %v1205_v55, 0.0  ;;  %v959_v55 = vmul.f32 0.5, %v927_v35 }
 0x2cd   : > { %v1425_v26 = vadd.f32 %v1333_v40, %v958_v25  ;;  %v1336_v40 = vpop.xlane.xlu0 %1335 }
 0x2ce   : > { %v1426_v9 = vadd.f32 %v1336_v40, %v959_v55  ;;  %v1232_v55 = vadd.f32 %v4270_v49, %v4323_v52 }
 0x2d7   : > { %v1244_v15 = vpop.f32.mrf.mxu3 }
 0x2d8   : > { %v1245_v20 = vadd.f32 %v4270_v49, %v1244_v15  ;;  %v4406_v15 = vstv %s1456_s25 }
 0x2d9   : > { %v1459_v14 = vadd.f32 %v4406_v15, %v1425_v26 }
 0x2da   : > { %v1285_v13 = vmax.f32 %v1245_v20, 0.0  ;;  %v4408_v20 = vpop.f32.mrf.mxu1 }
 0x2db   : > { %v1719_v47 = vadd.f32 %v4115_v32, %v1459_v14  ;;  %v1460_v14 = vadd.f32 %v4406_v15, %v1426_v9 }
 0x2dc   : > { %v1321_v10 = vmul.f32 %v4287_v5, %v1285_v13  ;;  %v925_v13 = vsub.f32 %v4137_v31, %v4048_v2 }
 0x2dd   : > { %v3342_v61 = vmul.f32 -1.442695, %v1719_v47 }
 0x2de   : > { %v1406_v51 = vsel %vm1327_vm2, %v1321_v10, 0.0  ;;  %v1305_v10 = vmul.f32 %v4287_v5, %v1269_v50  ;;  %v957_v4 = vmul.f32 0.5, %v925_v13 }
 0x2df   : > { %1407 = vadd.xlane.f32.xlu0 %v1406_v51  ;;  %3507 = vpow2.f32 %v3342_v61 }
 0x2e0   : > { %v1358_v2 = vsel %vm1327_vm2, %v1305_v10, 0.0 }
 0x2e2   : > { %v1211_v31 = vpop.f32.mrf.mxu1 }
 0x2e3   : > { %1588 = vperm.xlu2 %3484, %v3964_v46   ;;  %v1242_v46 = vadd.f32 %v4270_v49, %v1241_v18  ;;  %v1212_v18 = vadd.f32 %v4270_v49, %v1211_v31 }
 0x2e5   : > { %v1284_v26 = vmax.f32 %v1242_v46, 0.0  ;;  %v3508_v35 = vpop.eup %3507  ;;  %v1720_v46 = vadd.f32 %v4091_v48, %v1460_v14  ;;  %v1280_v48 = vmax.f32 %v1232_v55, 0.0 }
 0x2e6   : > { %1395 = vadd.xlane.f32.xlu1 %v1394_v38  ;;  %v1272_v38 = vmax.f32 %v1212_v18, 0.0 }
 0x2e7   : > { %v1316_v52 = vmul.f32 %v4287_v5, %v1280_v48  ;;  %v1246_v48 = vpop.f32.mrf.mxu3 }
 0x2e8   : > { %v1308_v47 = vmul.f32 %v4287_v5, %v1272_v38 }
 0x2eb   : > { %3487 = vset.pattern.permute.xlu2 %v3945_v37  ;;  %v1320_v37 = vmul.f32 %v4287_v5, %v1284_v26  ;;  %v1367_v26 = vsel %vm1327_vm2, %v1308_v47, 0.0 }
 0x2ed   : > { %v1330_v51 = vpop.xlane.xlu2 %1329  ;;  %v1403_v13 = vsel %vm1327_vm2, %v1320_v37, 0.0 }
 0x2ee   : > { %v1424_v25 = vadd.f32 %v1330_v51, %v957_v4  ;;  %1359 = vadd.xlane.f32.xlu1 %v1358_v2  ;;  %v4431_v4 = vpop.permute.xlu0 %1570  ;;  %v3343_v51 = vmul.f32 -1.442695, %v1720_v46 }
 0x2f0   : > { %v1458_v53 = vadd.f32 %v4406_v15, %v1424_v25  ;;  %v4433_v25 = vpop.permute.xlu1 %1582 }
 0x2f2   : > { %v1718_v32 = vadd.f32 %v4118_v62, %v1458_v53  ;;  %v4429_v62 = vadd.f32 1.0, %v3508_v35 }
 0x2f4   : > { %v3341_v50 = vmul.f32 -1.442695, %v1718_v32  ;;  %v1202_v32 = vadd.f32 %v4270_v49, %v4365_v27  ;;  %v1391_v27 = vsel %vm1327_vm2, %v1316_v52, 0.0  ;;  %vm1898_vm8 = vweird.f32 %v4429_v62 }
 0x2f6   : > { %3509 = vpow2.f32 %v3341_v50  ;;  %1404 = vadd.xlane.f32.xlu1 %v1403_v13  ;;  %v945_v50 = vsub.f32 %v4204_v33, %v4069_v30  ;;  %v1268_v47 = vmax.f32 %v1202_v32, 0.0 }
 0x2f8   : > { %v977_v55 = vmul.f32 0.5, %v945_v50 }
 0x2fc   : > { %v3510_v10 = vpop.eup %3509 }
 0x2fd   : > { %v1846_v40 = vadd.f32 1.0, %v3510_v10  ;;  %v944_v10 = vsub.f32 %v4144_v6, %v4035_v42  ;;  %v1304_v42 = vmul.f32 %v4287_v5, %v1268_v47 }
 0x2fe   : > { %1368 = vadd.xlane.f32.xlu1 %v1367_v26  ;;  %v1240_v26 = vadd.f32 %v4270_v49, %v4384_v45 }
 0x2ff   : > { %3511 = vrcp.f32 %v1846_v40  ;;  %v1889_v38 = vand.u32 2147483648, %v1846_v40  ;;  %v1887_v46 = vand.u32 2147483647, %v1846_v40  ;;  %vm1883_vm4 = vweird.f32 %v1846_v40 }
 0x300   : > { %3513 = vrcp.f32 %v4429_v62  ;;  %v976_v6 = vmul.f32 0.5, %v944_v10 }
 0x301   : > { %3515 = vpow2.f32 %v3343_v51  ;;  %v1890_v33 = vor.u32 1.1754944e-38, %v1889_v38  ;;  %vm1888_vm6 = vcmp.eq.f32.partialorder %v1887_v46, 8.507059e+37 }
 0x304   : > { %v4441_v53 = vpop.xlane.xlu0 %1344 }
 0x305   : > { %v3512_v61 = vpop.eup %3511 }
 0x306   : > { %v4439_v2 = vpop.eup %3513  ;;  %v1879_v31 = vmul.f32 %v3512_v61, %v1846_v40  ;;  %v4446_v37 = vpop.xlane.xlu1 %1341  ;;  %vm1884_vm3 = vweird.f32 %v3512_v61 }
 0x307   : > { %v3516_v9 = vpop.eup %3515  ;;  %v1894_v14 = vmul.f32 %v4439_v2, %v4429_v62  ;;  %vm1885_vm5 = vmor %vm1883_vm4, %vm1884_vm3  ;;  %vm1899_vm7 = vweird.f32 %v4439_v2 }
 0x308   : > { %v1880_v18 = vsub.f32 1.0, %v1879_v31  ;;  %v4452_v13 = vadd.f32 1.0, %v3516_v9  ;;  %vm1900_vm9 = vmor %vm1898_vm8, %vm1899_vm7 }
 0x309   : > { %v1895_v30 = vsub.f32 1.0, %v1894_v14 }
 0x30a   : > { %v1881_v35 = vmul.f32 %v3512_v61, %v1880_v18  ;;  %3517 = vrcp.f32 %v4452_v13  ;;  %vm1913_vm12 = vweird.f32 %v4452_v13 }
 0x30b   : > { %v1896_v38 = vmul.f32 %v4439_v2, %v1895_v30  ;;  %v1904_v30 = vand.u32 2147483648, %v4429_v62 }
 0x30c   : > { %v1882_v51 = vadd.f32 %v3512_v61, %v1881_v35  ;;  %1392 = vadd.xlane.f32.xlu2 %v1391_v27  ;;  %v1390_v9 = vpop.xlane.xlu0 %1389  ;;  %v1283_v35 = vmax.f32 %v1240_v26, 0.0 }
 0x30d   : > { %v4460_v52 = vadd.f32 %v1390_v9, %v977_v55  ;;  %v1897_v10 = vadd.f32 %v4439_v2, %v1896_v38 }
 0x30e   : > { %v1886_v31 = vsel %vm1885_vm5, %v3512_v61, %v1882_v51  ;;  %v1387_v14 = vpop.xlane.xlu1 %1386  ;;  %v1355_v51 = vsel %vm1327_vm2, %v1304_v42, 0.0  ;;  %v1319_v9 = vmul.f32 %v4287_v5, %v1283_v35 }
 0x30f   : > { %v1891_v32 = vsel %vm1888_vm6, %v1890_v33, %v1886_v31  ;;  %v4464_v61 = vadd.f32 %v1387_v14, %v976_v6  ;;  %v1210_v33 = vadd.f32 %v4270_v49, %v4408_v20  ;;  %v948_v20 = vsub.f32 %v4215_v44, %v4083_v36 }
 0x310   : > { %v2390_v40 = vrot.slane %v1891_v32, 1  ;;  %v2391_v18 = vrot.slane %v1891_v32, 2  ;;  %v2392_v50 = vrot.slane %v1891_v32, 3  ;;  %2614 = vst [vmem:[#allocation1] ss:$9 sm:$0xff] %v1891_v32  ;;  %v2393_v45 = vrot.slane %v1891_v32, 4  ;;  %v4467_v55 = vpop.eup %3517 }
 0x311   : > { %v2394_v27 = vrot.slane %v1891_v32, 5  ;;  %v2395_v46 = vrot.slane %v1891_v32, 6  ;;  %v2396_v47 = vrot.slane %v1891_v32, 7  ;;  %v1902_v32 = vand.u32 2147483647, %v4429_v62 }
 0x312   : > { %2616 = vst [vmem:[#allocation1 + $0x1] ss:$9 sm:$0xff] %v2390_v40  ;;  %v1909_v42 = vmul.f32 %v4467_v55, %v4452_v13  ;;  %v1901_v40 = vsel %vm1900_vm9, %v4439_v2, %v1897_v10  ;;  %v1271_v14 = vmax.f32 %v1210_v33, 0.0  ;;  %v1400_v62 = vsel %vm1327_vm2, %v1319_v9, 0.0 }
 0x313   : > { %2618 = vst [vmem:[#allocation1 + $0x2] ss:$9 sm:$0xff] %v2391_v18  ;;  %vm1903_vm10 = vcmp.eq.f32.partialorder %v1902_v32, 8.507059e+37  ;;  %v1247_v10 = vadd.f32 %v4270_v49, %v1246_v48  ;;  %vm1914_vm11 = vweird.f32 %v4467_v55 }
 0x314   : > { %2620 = vst [vmem:[#allocation1 + $0x3] ss:$9 sm:$0xff] %v2392_v50  ;;  %1356 = vadd.xlane.f32.xlu2 %v1355_v51  ;;  %v1249_v26 = vpop.f32.mrf.mxu3  ;;  %v4474_v31 = vpop.xlane.xlu0 %1353  ;;  %v1905_v50 = vor.u32 1.1754944e-38, %v1904_v30  ;;  %v1910_v38 = vsub.f32 1.0, %v1909_v42  ;;  %v1307_v44 = vmul.f32 %v4287_v5, %v1271_v14  ;;  %v1917_v14 = vand.u32 2147483647, %v4452_v13  ;;  %vm1915_vm13 = vmor %vm1913_vm12, %vm1914_vm11 }
 0x315   : > { %2622 = vst [vmem:[#allocation1 + $0x4] ss:$9 sm:$0xff] %v2393_v45  ;;  %v1250_v6 = vadd.f32 %v4270_v49, %v1249_v26  ;;  %v929_v45 = vsub.f32 %v4148_v11, %v4010_v7  ;;  %v1286_v48 = vmax.f32 %v1247_v10, 0.0 }
 0x316   : > { %2624 = vst [vmem:[#allocation1 + $0x5] ss:$9 sm:$0xff] %v2394_v27  ;;  %v1906_v35 = vsel %vm1903_vm10, %v1905_v50, %v1901_v40  ;;  %v1364_v42 = vsel %vm1327_vm2, %v1307_v44, 0.0  ;;  %vm1918_vm14 = vcmp.eq.f32.partialorder %v1917_v14, 8.507059e+37 }
 0x317   : > { %2626 = vst [vmem:[#allocation1 + $0x6] ss:$9 sm:$0xff] %v2395_v46  ;;  %v1287_v18 = vmax.f32 %v1250_v6, 0.0  ;;  %v980_v46 = vmul.f32 0.5, %v948_v20  ;;  %v2397_v2 = vrot.slane %v1906_v35, 1  ;;  %v961_v7 = vmul.f32 0.5, %v929_v45 }
 0x318   : > { %2628 = vst [vmem:[#allocation1 + $0x7] ss:$9 sm:$0xff] %v2396_v47  ;;  %v1911_v47 = vmul.f32 %v4467_v55, %v1910_v38  ;;  %v2398_v11 = vrot.slane %v1906_v35, 2  ;;  %v2399_v26 = vrot.slane %v1906_v35, 3  ;;  %v2400_v9 = vrot.slane %v1906_v35, 4 }
 0x319   : > { %v1323_v27 = vmul.f32 %v4287_v5, %v1287_v18  ;;  %v1428_v32 = vadd.f32 %v4446_v37, %v961_v7  ;;  %v2401_v6 = vrot.slane %v1906_v35, 5  ;;  %v2402_v40 = vrot.slane %v1906_v35, 6  ;;  %v4504_v37 = vpop.permute.xlu2 %1576 }
 0x31a   : > { %v1912_v20 = vadd.f32 %v4467_v55, %v1911_v47  ;;  %v1919_v18 = vand.u32 2147483648, %v4452_v13  ;;  %v2403_v50 = vrot.slane %v1906_v35, 7  ;;  %v1322_v45 = vmul.f32 %v4287_v5, %v1286_v48 }
 0x31b   : > { %v1412_v51 = vsel %vm1327_vm2, %v1323_v27, 0.0  ;;  %v1462_v38 = vadd.f32 %v4406_v15, %v1428_v32 }
 0x31c   : > { %1401 = vadd.xlane.f32.xlu2 %v1400_v62  ;;  %v1399_v36 = vpop.xlane.xlu0 %1398  ;;  %1413 = vadd.xlane.f32.xlu1 %v1412_v51  ;;  %v1916_v62 = vsel %vm1915_vm13, %v4467_v55, %v1912_v20  ;;  %v1920_v27 = vor.u32 1.1754944e-38, %v1919_v18  ;;  %v1409_v51 = vsel %vm1327_vm2, %v1322_v45, 0.0  ;;  %v1251_v20 = vpop.f32.mrf.mxu3 }
 0x31d   : > { %v4495_v33 = vadd.f32 %v1399_v36, %v980_v46  ;;  %v1722_v13 = vadd.f32 %v4102_v3, %v1462_v38  ;;  %v930_v36 = vsub.f32 %v4211_v43, %v3991_v56  ;;  %v943_v3 = vsub.f32 %v4142_v16, %v4067_v29 }
 0x31e   : > { %v1921_v46 = vsel %vm1918_vm14, %v1920_v27, %v1916_v62  ;;  %v1252_v14 = vadd.f32 %v4270_v49, %v1251_v20 }
 0x31f   : > { %v4493_v30 = vld [vmem:[#allocation1] sm:$0xff]  ;;  %v2405_v55 = vrot.slane %v1921_v46, 2  ;;  %v3345_v10 = vmul.f32 -1.442695, %v1722_v13  ;;  %v2409_v43 = vrot.slane %v1921_v46, 6  ;;  %v975_v18 = vmul.f32 0.5, %v943_v3 }
 0x320   : > { %2630 = vst [vmem:[#allocation1] ss:$9 sm:$0xff] %v1906_v35  ;;  %v928_v35 = vsub.f32 %v4146_v17, %v4000_v60  ;;  %v962_v17 = vmul.f32 0.5, %v930_v36  ;;  %v1288_v27 = vmax.f32 %v1252_v14, 0.0 }
 0x321   : > { %2631 = vst [vmem:[#allocation1 + $0x1] ss:$9 sm:$0xff] %v2397_v2  ;;  %v2404_v2 = vrot.slane %v1921_v46, 1  ;;  %3519 = vpow2.f32 %v3345_v10 }
 0x322   : > { %2632 = vst [vmem:[#allocation1 + $0x2] ss:$9 sm:$0xff] %v2398_v11  ;;  %v960_v44 = vmul.f32 0.5, %v928_v35  ;;  %v2406_v11 = vrot.slane %v1921_v46, 3  ;;  %v1429_v32 = vadd.f32 %v4441_v53, %v962_v17 }
 0x323   : > { %2633 = vst [vmem:[#allocation1 + $0x3] ss:$9 sm:$0xff] %v2399_v26  ;;  %v2407_v26 = vrot.slane %v1921_v46, 4 }
 0x324   : > { %2634 = vst [vmem:[#allocation1 + $0x4] ss:$9 sm:$0xff] %v2400_v9  ;;  %1365 = vadd.xlane.f32.xlu2 %v1364_v42  ;;  %v2408_v9 = vrot.slane %v1921_v46, 5  ;;  %v1254_v17 = vpop.f32.mrf.mxu3 }
 0x325   : > { %2635 = vst [vmem:[#allocation1 + $0x5] ss:$9 sm:$0xff] %v2401_v6  ;;  %v2410_v6 = vrot.slane %v1921_v46, 7  ;;  %v1255_v3 = vadd.f32 %v4270_v49, %v1254_v17 }
 0x326   : > { %2636 = vst [vmem:[#allocation1 + $0x6] ss:$9 sm:$0xff] %v2402_v40 }
 0x327   : > { %2637 = vst [vmem:[#allocation1 + $0x7] ss:$9 sm:$0xff] %v2403_v50  ;;  %v1463_v50 = vadd.f32 %v4406_v15, %v1429_v32  ;;  %v3520_v62 = vpop.eup %3519 }
 0x328   : > { %v4530_v13 = vadd.f32 1.0, %v3520_v62 }
 0x32a   : > { %vm1943_vm5 = vweird.f32 %v4530_v13 }
 0x32c   : > { %1410 = vadd.xlane.f32.xlu2 %v1409_v51 }
 0x32e   : > { %v4515_v47 = vld [vmem:[#allocation1] sm:$0xff]  ;;  %v1339_v7 = vpop.xlane.xlu2 %1338 }
 0x32f   : > { %2640 = vst [vmem:[#allocation1 + $0x1] ss:$9 sm:$0xff] %v2404_v2  ;;  %v1427_v60 = vadd.f32 %v1339_v7, %v960_v44 }
 0x330   : > { %2641 = vst [vmem:[#allocation1 + $0x2] ss:$9 sm:$0xff] %v2405_v55  ;;  %v1324_v55 = vmul.f32 %v4287_v5, %v1288_v27 }
 0x331   : > { %2642 = vst [vmem:[#allocation1 + $0x3] ss:$9 sm:$0xff] %v2406_v11  ;;  %v1461_v56 = vadd.f32 %v4406_v15, %v1427_v60 }
 0x332   : > { %2643 = vst [vmem:[#allocation1 + $0x4] ss:$9 sm:$0xff] %v2407_v26  ;;  %v1214_v42 = vpop.f32.mrf.mxu1  ;;  %v1415_v60 = vsel %vm1327_vm2, %v1324_v55, 0.0 }
 0x333   : > { %2644 = vst [vmem:[#allocation1 + $0x5] ss:$9 sm:$0xff] %v2408_v9  ;;  %v1721_v48 = vadd.f32 %v4121_v0, %v1461_v56  ;;  %v1215_v40 = vadd.f32 %v4270_v49, %v1214_v42  ;;  %v1723_v0 = vadd.f32 %v4129_v24, %v1463_v50  ;;  %v932_v42 = vsub.f32 %v4193_v41, %v3998_v58 }
 0x334   : > { %2645 = vst [vmem:[#allocation1 + $0x6] ss:$9 sm:$0xff] %v2409_v43 }
 0x335   : > { %2646 = vst [vmem:[#allocation1 + $0x7] ss:$9 sm:$0xff] %v2410_v6  ;;  %v3344_v29 = vmul.f32 -1.442695, %v1721_v48  ;;  %v1273_v16 = vmax.f32 %v1215_v40, 0.0  ;;  %v1289_v48 = vmax.f32 %v1255_v3, 0.0 }
 0x336   : > { %2639 = vst [vmem:[#allocation1] ss:$9 sm:$0xff] %v1921_v46  ;;  %v1384_v53 = vpop.xlane.xlu2 %1383  ;;  %v931_v46 = vsub.f32 %v4179_v8, %v4020_v22  ;;  %v3346_v44 = vmul.f32 -1.442695, %v1723_v0  ;;  %v1351_v0 = vpop.xlane.xlu1 %1350 }
 0x337   : > { %3521 = vpow2.f32 %v3344_v29  ;;  %v4525_v38 = vadd.f32 %v1384_v53, %v975_v18  ;;  %v1309_v45 = vmul.f32 %v4287_v5, %v1273_v16 }
 0x338   : > { %3523 = vrcp.f32 %v4530_v13  ;;  %v963_v7 = vmul.f32 0.5, %v931_v46  ;;  %v1325_v46 = vmul.f32 %v4287_v5, %v1289_v48 }
 0x339   : > { %v1370_v35 = vsel %vm1327_vm2, %v1309_v45, 0.0  ;;  %v1256_v45 = vpop.f32.mrf.mxu3 }
 0x33a   : > { %1371 = vadd.xlane.f32.xlu0 %v1370_v35  ;;  %v1216_v36 = vpop.f32.mrf.mxu1  ;;  %v1418_v3 = vsel %vm1327_vm2, %v1325_v46, 0.0 }
 0x33b   : > { %v1217_v24 = vadd.f32 %v4270_v49, %v1216_v36 }
 0x33d   : > { %v3522_v51 = vpop.eup %3521  ;;  %v1274_v22 = vmax.f32 %v1217_v24, 0.0  ;;  %v4554_v55 = vld [vmem:[#allocation1] sm:$0xff] }
 0x33e   : > { %v1849_v2 = vadd.f32 1.0, %v3522_v51  ;;  %v1348_v10 = vpop.xlane.xlu2 %1347  ;;  %v4538_v8 = vpop.eup %3523  ;;  %v964_v51 = vmul.f32 0.5, %v932_v42 }
 0x33f   : > { %v1430_v11 = vadd.f32 %v1348_v10, %v963_v7  ;;  %v1310_v32 = vmul.f32 %v4287_v5, %v1274_v22  ;;  %v1939_v6 = vmul.f32 %v4538_v8, %v4530_v13  ;;  %v1257_v10 = vadd.f32 %v4270_v49, %v1256_v45 }
 0x340   : > { %3525 = vrcp.f32 %v1849_v2  ;;  %v1934_v40 = vand.u32 2147483648, %v1849_v2  ;;  %v1932_v14 = vand.u32 2147483647, %v1849_v2  ;;  %vm1928_vm0 = vweird.f32 %v1849_v2 }
 0x341   : > { %3527 = vpow2.f32 %v3346_v44  ;;  %v1464_v9 = vadd.f32 %v4406_v15, %v1430_v11  ;;  %v1373_v29 = vsel %vm1327_vm2, %v1310_v32, 0.0  ;;  %v1940_v58 = vsub.f32 1.0, %v1939_v6 }
 0x342   : > { %1416 = vadd.xlane.f32.xlu0 %v1415_v60  ;;  %v1219_v53 = vpop.f32.mrf.mxu1  ;;  %1374 = vadd.xlane.f32.xlu2 %v1373_v29  ;;  %v1935_v27 = vor.u32 1.1754944e-38, %v1934_v40  ;;  %vm1933_vm3 = vcmp.eq.f32.partialorder %v1932_v14, 8.507059e+37  ;;  %v1431_v7 = vadd.f32 %v1351_v0, %v964_v51  ;;  %vm1944_vm4 = vweird.f32 %v4538_v8 }
 0x343   : > { %v1724_v18 = vadd.f32 %v4111_v19, %v1464_v9  ;;  %v1220_v62 = vadd.f32 %v4270_v49, %v1219_v53  ;;  %v1941_v17 = vmul.f32 %v4538_v8, %v1940_v58  ;;  %v1949_v29 = vand.u32 2147483648, %v4530_v13  ;;  %vm1945_vm6 = vmor %vm1943_vm5, %vm1944_vm4 }
 0x344   : > { %v1947_v14 = vand.u32 2147483647, %v4530_v13  ;;  %v933_v58 = vsub.f32 %v4220_v1, %v4024_v28 }
 0x345   : > { %v3347_v35 = vmul.f32 -1.442695, %v1724_v18  ;;  %v1275_v19 = vmax.f32 %v1220_v62, 0.0  ;;  %v1942_v40 = vadd.f32 %v4538_v8, %v1941_v17 }
 0x346   : > { %v3526_v26 = vpop.eup %3525  ;;  %vm1948_vm7 = vcmp.eq.f32.partialorder %v1947_v14, 8.507059e+37  ;;  %v965_v46 = vmul.f32 0.5, %v933_v58 }
 0x347   : > { %v1924_v56 = vmul.f32 %v3526_v26, %v1849_v2  ;;  %v3528_v43 = vpop.eup %3527  ;;  %vm1929_vm15 = vweird.f32 %v3526_v26  ;;  %v1311_v2 = vmul.f32 %v4287_v5, %v1275_v19  ;;  %v1946_v45 = vsel %vm1945_vm6, %v4538_v8, %v1942_v40 }
 0x348   : > { %v4549_v16 = vadd.f32 1.0, %v3528_v43  ;;  %vm1930_vm1 = vmor %vm1928_vm0, %vm1929_vm15  ;;  %v1290_v43 = vmax.f32 %v1257_v10, 0.0  ;;  %v1432_v8 = vadd.f32 %v4474_v31, %v965_v46 }
 0x349   : > { %v1925_v20 = vsub.f32 1.0, %v1924_v56  ;;  %v1376_v42 = vsel %vm1327_vm2, %v1311_v2, 0.0 }
 0x34a   : > { %3529 = vrcp.f32 %v4549_v16  ;;  %v1221_v9 = vpop.f32.mrf.mxu1  ;;  %1419 = vadd.xlane.f32.xlu2 %v1418_v3  ;;  %1377 = vadd.xlane.f32.xlu1 %v1376_v42  ;;  %v1326_v62 = vmul.f32 %v4287_v5, %v1290_v43  ;;  %v1964_v3 = vand.u32 2147483648, %v4549_v16  ;;  %vm1958_vm8 = vweird.f32 %v4549_v16  ;;  %v5258_v42 = vld [vmem:[#allocation56_spill] sm:$0xff] }
 0x34b   : > { %v1926_v50 = vmul.f32 %v3526_v26, %v1925_v20  ;;  %3531 = vpow2.f32 %v3347_v35  ;;  %v1222_v32 = vadd.f32 %v4270_v49, %v1221_v9  ;;  %v1465_v20 = vadd.f32 %v4406_v15, %v1431_v7 }
 0x34c   : > { %v1421_v19 = vsel %vm1327_vm2, %v1326_v62, 0.0  ;;  %v5259_v62 = vld [vmem:[#allocation20_spill] sm:$0xff] }
 0x34d   : > { %v1927_v41 = vadd.f32 %v3526_v26, %v1926_v50  ;;  %v1276_v18 = vmax.f32 %v1222_v32, 0.0 }
 0x34f   : > { %v1931_v36 = vsel %vm1930_vm1, %v3526_v26, %v1927_v41  ;;  %v1312_v53 = vmul.f32 %v4287_v5, %v1276_v18  ;;  %v1725_v41 = vadd.f32 %v4330_v54, %v1465_v20  ;;  %v4582_v5 = vpop.permute.xlu1 %1594  ;;  %v5257_v54 = vld [vmem:[#allocation35_spill] sm:$0xff]  ;;  %v1965_v18 = vor.u32 1.1754944e-38, %v1964_v3 }
 0x350   : > { %v1936_v44 = vsel %vm1933_vm3, %v1935_v27, %v1931_v36  ;;  %v4562_v6 = vpop.eup %3529  ;;  %v1950_v27 = vor.u32 1.1754944e-38, %v1949_v29  ;;  %v947_v51 = vsub.f32 %v5257_v54, %v4044_v63 }
 0x351   : > { %v2411_v24 = vrot.slane %v1936_v44, 1  ;;  %v2412_v11 = vrot.slane %v1936_v44, 2  ;;  %v2413_v60 = vrot.slane %v1936_v44, 3  ;;  %2648 = vst [vmem:[#allocation1] ss:$9 sm:$0xff] %v1936_v44  ;;  %v2414_v22 = vrot.slane %v1936_v44, 4  ;;  %v3532_v49 = vpop.eup %3531 }
 0x352   : > { %v2415_v26 = vrot.slane %v1936_v44, 5  ;;  %v2416_v56 = vrot.slane %v1936_v44, 6  ;;  %v2417_v48 = vrot.slane %v1936_v44, 7  ;;  %v1954_v50 = vmul.f32 %v4562_v6, %v4549_v16  ;;  %1422 = vadd.xlane.f32.xlu1 %v1421_v19 }
 0x353   : > { %2649 = vst [vmem:[#allocation1 + $0x1] ss:$9 sm:$0xff] %v2411_v24  ;;  %v1379_v0 = vsel %vm1327_vm2, %v1312_v53, 0.0  ;;  %v4579_v35 = vadd.f32 1.0, %v3532_v49  ;;  %v1951_v28 = vsel %vm1948_vm7, %v1950_v27, %v1946_v45  ;;  %v3348_v1 = vmul.f32 -1.442695, %v1725_v41 }
 0x354   : > { %2650 = vst [vmem:[#allocation1 + $0x2] ss:$9 sm:$0xff] %v2412_v11  ;;  %1380 = vadd.xlane.f32.xlu0 %v1379_v0  ;;  %v1955_v13 = vsub.f32 1.0, %v1954_v50  ;;  %v2418_v44 = vrot.slane %v1951_v28, 1  ;;  %v2419_v2 = vrot.slane %v1951_v28, 2  ;;  %v2420_v7 = vrot.slane %v1951_v28, 3 }
 0x355   : > { %2651 = vst [vmem:[#allocation1 + $0x3] ss:$9 sm:$0xff] %v2413_v60  ;;  %3533 = vrcp.f32 %v4579_v35  ;;  %v979_v24 = vmul.f32 0.5, %v947_v51  ;;  %v2421_v11 = vrot.slane %v1951_v28, 4  ;;  %v1466_v60 = vadd.f32 %v4406_v15, %v1432_v8 }
 0x356   : > { %2652 = vst [vmem:[#allocation1 + $0x4] ss:$9 sm:$0xff] %v2414_v22  ;;  %v1956_v36 = vmul.f32 %v4562_v6, %v1955_v13  ;;  %3535 = vpow2.f32 %v3348_v1  ;;  %vm1959_vm2 = vweird.f32 %v4562_v6  ;;  %v2422_v31 = vrot.slane %v1951_v28, 5  ;;  %v5261_v1 = vld [vmem:[#allocation10_spill] sm:$0xff] }
 0x357   : > { %2653 = vst [vmem:[#allocation1 + $0x5] ss:$9 sm:$0xff] %v2415_v26  ;;  %v2423_v26 = vrot.slane %v1951_v28, 6  ;;  %v2424_v43 = vrot.slane %v1951_v28, 7  ;;  %vm1960_vm9 = vmor %vm1958_vm8, %vm1959_vm2  ;;  %v1726_v20 = vadd.f32 %v5258_v42, %v1466_v60  ;;  %vm1973_vm12 = vweird.f32 %v4579_v35  ;;  %v5262_v60 = vld [vmem:[#allocation12_spill] sm:$0xff] }
 0x358   : > { %2654 = vst [vmem:[#allocation1 + $0x6] ss:$9 sm:$0xff] %v2416_v56  ;;  %v1957_v63 = vadd.f32 %v4562_v6, %v1956_v36  ;;  %v1962_v56 = vand.u32 2147483647, %v4549_v16 }
 0x359   : > { %2655 = vst [vmem:[#allocation1 + $0x7] ss:$9 sm:$0xff] %v2417_v48  ;;  %v1396_v17 = vpop.xlane.xlu1 %1395  ;;  %v3349_v50 = vmul.f32 -1.442695, %v1726_v20 }
 0x35a   : > { %v4597_v9 = vadd.f32 %v1396_v17, %v979_v24  ;;  %v1961_v48 = vsel %vm1960_vm9, %v4562_v6, %v1957_v63  ;;  %vm1963_vm10 = vcmp.eq.f32.partialorder %v1962_v56, 8.507059e+37  ;;  %v5260_v6 = vld [vmem:[#allocation41_spill] sm:$0xff]  ;;  %v1977_v24 = vand.u32 2147483647, %v4579_v35 }
 0x35b   : > { %v4594_v22 = vpop.eup %3533  ;;  %v1966_v49 = vsel %vm1963_vm10, %v1965_v18, %v1961_v48  ;;  %v950_v58 = vsub.f32 %v5260_v6, %v5259_v62  ;;  %v5263_v56 = vld [vmem:[#allocation17_spill] sm:$0xff]  ;;  %v5265_v48 = vld [vmem:[#allocation11_spill] sm:$0xff] }
 0x35c   : > { %v3536_v32 = vpop.eup %3535  ;;  %v1969_v40 = vmul.f32 %v4594_v22, %v4579_v35  ;;  %v2425_v53 = vrot.slane %v1966_v49, 1  ;;  %v2426_v41 = vrot.slane %v1966_v49, 2  ;;  %v2427_v0 = vrot.slane %v1966_v49, 3 }
 0x35d   : > { %v4605_v29 = vadd.f32 1.0, %v3536_v32  ;;  %v2428_v13 = vrot.slane %v1966_v49, 4  ;;  %v2429_v19 = vrot.slane %v1966_v49, 5  ;;  %v982_v46 = vmul.f32 0.5, %v950_v58 }
 0x35e   : > { %v1970_v16 = vsub.f32 1.0, %v1969_v40  ;;  %v2431_v51 = vrot.slane %v1966_v49, 7  ;;  %vm1974_vm11 = vweird.f32 %v4594_v22  ;;  %vm1978_vm14 = vcmp.eq.f32.partialorder %v1977_v24, 8.507059e+37  ;;  %v5266_v40 = vld [vmem:[#allocation25_spill] sm:$0xff] }
 0x35f   : > { %3537 = vrcp.f32 %v4605_v29  ;;  %vm1975_vm13 = vmor %vm1973_vm12, %vm1974_vm11  ;;  %vm1988_vm0 = vweird.f32 %v4605_v29 }
 0x360   : > { %v4589_v10 = vld [vmem:[#allocation1] sm:$0xff]  ;;  %3539 = vpow2.f32 %v3349_v50  ;;  %v1971_v27 = vmul.f32 %v4594_v22, %v1970_v16 }
 0x361   : > { %2657 = vst [vmem:[#allocation1] ss:$9 sm:$0xff] %v1951_v28  ;;  %v4608_v14 = vpop.xlane.xlu1 %1359  ;;  %v2430_v28 = vrot.slane %v1966_v49, 6 }
 0x362   : > { %2658 = vst [vmem:[#allocation1 + $0x1] ss:$9 sm:$0xff] %v2418_v44  ;;  %1606 = vperm.xlu2 %3487, %v4373_v39   ;;  %v1972_v8 = vadd.f32 %v4594_v22, %v1971_v27 }
 0x363   : > { %2659 = vst [vmem:[#allocation1 + $0x2] ss:$9 sm:$0xff] %v2419_v2  ;;  %v1979_v2 = vand.u32 2147483648, %v4579_v35  ;;  %v4636_v35 = vpop.permute.xlu2 %1588 }
 0x364   : > { %2660 = vst [vmem:[#allocation1 + $0x3] ss:$9 sm:$0xff] %v2420_v7 }
 0x365   : > { %2661 = vst [vmem:[#allocation1 + $0x4] ss:$9 sm:$0xff] %v2421_v11  ;;  %v4618_v54 = vpop.eup %3537  ;;  %v1980_v17 = vor.u32 1.1754944e-38, %v1979_v2  ;;  %v5270_v2 = vld [vmem:[#allocation42_spill] sm:$0xff] }
 0x366   : > { %2662 = vst [vmem:[#allocation1 + $0x5] ss:$9 sm:$0xff] %v2422_v31  ;;  %v3540_v44 = vpop.eup %3539  ;;  %v1984_v11 = vmul.f32 %v4618_v54, %v4605_v29  ;;  %v1976_v31 = vsel %vm1975_vm13, %v4594_v22, %v1972_v8  ;;  %v5267_v22 = vld [vmem:[#allocation33_spill] sm:$0xff]  ;;  %vm1989_vm15 = vweird.f32 %v4618_v54  ;;  %v1992_v8 = vand.u32 2147483647, %v4605_v29 }
 0x367   : > { %2663 = vst [vmem:[#allocation1 + $0x6] ss:$9 sm:$0xff] %v2423_v26  ;;  %v4631_v63 = vadd.f32 1.0, %v3540_v44  ;;  %v1981_v26 = vsel %vm1978_vm14, %v1980_v17, %v1976_v31  ;;  %v946_v18 = vsub.f32 %v5267_v22, %v5266_v40  ;;  %vm1990_vm1 = vmor %vm1988_vm0, %vm1989_vm15  ;;  %v5269_v44 = vld [vmem:[#allocation13_spill] sm:$0xff] }
 0x368   : > { %2664 = vst [vmem:[#allocation1 + $0x7] ss:$9 sm:$0xff] %v2424_v43  ;;  %1600 = vperm.xlu0 %3486, %v4373_v39   ;;  %v1985_v3 = vsub.f32 1.0, %v1984_v11  ;;  %v5264_v43 = vld [vmem:[#allocation43_spill] sm:$0xff]  ;;  %v2432_v42 = vrot.slane %v1981_v26, 1  ;;  %v2433_v50 = vrot.slane %v1981_v26, 2  ;;  %v934_v24 = vsub.f32 %v5270_v2, %v5269_v44 }
 0x369   : > { %v1405_v36 = vpop.xlane.xlu1 %1404  ;;  %3541 = vrcp.f32 %v4631_v63  ;;  %v935_v32 = vsub.f32 %v5264_v43, %v5263_v56  ;;  %v2434_v16 = vrot.slane %v1981_v26, 3  ;;  %v2436_v58 = vrot.slane %v1981_v26, 5  ;;  %v5271_v11 = vld [vmem:[#allocation40_spill] sm:$0xff]  ;;  %v5273_v56 = vld [vmem:[#allocation45_spill] sm:$0xff] }
 0x36a   : > { %3489 = vset.pattern.permute.xlu2 %v5261_v1  ;;  %v4623_v7 = vadd.f32 %v1405_v36, %v982_v46  ;;  %v2437_v27 = vrot.slane %v1981_v26, 6  ;;  %v2438_v46 = vrot.slane %v1981_v26, 7  ;;  %vm1993_vm3 = vcmp.eq.f32.partialorder %v1992_v8, 8.507059e+37  ;;  %v5277_v2 = vld [vmem:[#allocation53_spill] sm:$0xff] }
 0x36b   : > { %1612 = vperm.xlu1 %3488, %v4373_v39   ;;  %v967_v6 = vmul.f32 0.5, %v935_v32  ;;  %vm2003_vm5 = vweird.f32 %v4631_v63  ;;  %v2007_v8 = vand.u32 2147483647, %v4631_v63 }
 0x36d   : > { %vm2008_vm7 = vcmp.eq.f32.partialorder %v2007_v8, 8.507059e+37 }
 0x36f   : > { %v4613_v45 = vld [vmem:[#allocation1] sm:$0xff]  ;;  %v4647_v62 = vpop.eup %3541 }
 0x370   : > { %2667 = vst [vmem:[#allocation1 + $0x1] ss:$9 sm:$0xff] %v2425_v53  ;;  %3491 = vset.pattern.permute.xlu0 %v5262_v60  ;;  %v2435_v53 = vrot.slane %v1981_v26, 4  ;;  %vm2004_vm4 = vweird.f32 %v4647_v62 }
 0x371   : > { %2668 = vst [vmem:[#allocation1 + $0x2] ss:$9 sm:$0xff] %v2426_v41  ;;  %v978_v41 = vmul.f32 0.5, %v946_v18  ;;  %vm4689_vm6 = vmor %vm2003_vm5, %vm2004_vm4 }
 0x372   : > { %2669 = vst [vmem:[#allocation1 + $0x3] ss:$9 sm:$0xff] %v2427_v0  ;;  %1618 = vperm.xlu2 %3489, %v4373_v39  }
 0x373   : > { %2670 = vst [vmem:[#allocation1 + $0x4] ss:$9 sm:$0xff] %v2428_v13  ;;  %3490 = vset.pattern.permute.xlu1 %v5265_v48  ;;  %v5268_v13 = vld [vmem:[#allocation36_spill] sm:$0xff] }
 0x374   : > { %2671 = vst [vmem:[#allocation1 + $0x5] ss:$9 sm:$0xff] %v2429_v19  ;;  %v1994_v19 = vand.u32 2147483648, %v4605_v29 }
 0x375   : > { %2672 = vst [vmem:[#allocation1 + $0x6] ss:$9 sm:$0xff] %v2430_v28  ;;  %v1434_v28 = vadd.f32 %v4608_v14, %v967_v6 }
 0x376   : > { %2673 = vst [vmem:[#allocation1 + $0x7] ss:$9 sm:$0xff] %v2431_v51  ;;  %v1999_v51 = vmul.f32 %v4647_v62, %v4631_v63  ;;  %v1995_v60 = vor.u32 1.1754944e-38, %v1994_v19 }
 0x377   : > { %2666 = vst [vmem:[#allocation1] ss:$9 sm:$0xff] %v1966_v49  ;;  %v1986_v49 = vmul.f32 %v4618_v54, %v1985_v3  ;;  %v1468_v31 = vadd.f32 %v4406_v15, %v1434_v28  ;;  %v966_v3 = vmul.f32 0.5, %v934_v24 }
 0x378   : > { %1630 = vperm.xlu0 %3491, %v4373_v39   ;;  %v2000_v17 = vsub.f32 1.0, %v1999_v51  ;;  %v4681_v51 = vpop.xlane.xlu1 %1368 }
 0x379   : > { %v1987_v0 = vadd.f32 %v4618_v54, %v1986_v49  ;;  %v1728_v32 = vadd.f32 %v4348_v59, %v1468_v31  ;;  %v5274_v49 = vld [vmem:[#allocation37_spill] sm:$0xff] }
 0x37a   : > { %3492 = vset.pattern.permute.xlu2 %v5268_v13  ;;  %v2001_v48 = vmul.f32 %v4647_v62, %v2000_v17  ;;  %v5276_v13 = vld [vmem:[#allocation38_spill] sm:$0xff]  ;;  %v5282_v31 = vld [vmem:[#allocation49_spill] sm:$0xff] }
 0x37b   : > { %1624 = vperm.xlu1 %3490, %v4373_v39   ;;  %v1991_v14 = vsel %vm1990_vm1, %v4618_v54, %v1987_v0  ;;  %v3351_v59 = vmul.f32 -1.442695, %v1728_v32 }
 0x37c   : > { %v1996_v29 = vsel %vm1993_vm3, %v1995_v60, %v1991_v14  ;;  %v5278_v14 = vld [vmem:[#allocation32_spill] sm:$0xff]  ;;  %v5281_v60 = vld [vmem:[#allocation23_spill] sm:$0xff] }
 0x37d   : > { %v2439_v54 = vrot.slane %v1996_v29, 1  ;;  %v2440_v18 = vrot.slane %v1996_v29, 2  ;;  %v2442_v6 = vrot.slane %v1996_v29, 4  ;;  %v2444_v28 = vrot.slane %v1996_v29, 6 }
 0x37e   : > { %v4640_v20 = vld [vmem:[#allocation1] sm:$0xff]  ;;  %v2445_v44 = vrot.slane %v1996_v29, 7  ;;  %3543 = vpow2.f32 %v3351_v59  ;;  %v953_v17 = vsub.f32 %v5282_v31, %v5281_v60  ;;  %v5288_v60 = vld [vmem:[#allocation46_spill] sm:$0xff] }
 0x37f   : > { %2675 = vst [vmem:[#allocation1] ss:$9 sm:$0xff] %v1981_v26  ;;  %v1393_v1 = vpop.xlane.xlu2 %1392  ;;  %v5272_v26 = vld [vmem:[#allocation14_spill] sm:$0xff] }
 0x380   : > { %2676 = vst [vmem:[#allocation1 + $0x1] ss:$9 sm:$0xff] %v2432_v42  ;;  %v4658_v36 = vadd.f32 %v1393_v1, %v978_v41  ;;  %3496 = vset.pattern.permute.xlu0 %v5271_v11  ;;  %v936_v43 = vsub.f32 %v5273_v56, %v5272_v26  ;;  %v2443_v41 = vrot.slane %v1996_v29, 5 }
 0x381   : > { %2677 = vst [vmem:[#allocation1 + $0x2] ss:$9 sm:$0xff] %v2433_v50  ;;  %v2441_v50 = vrot.slane %v1996_v29, 3 }
 0x382   : > { %2678 = vst [vmem:[#allocation1 + $0x3] ss:$9 sm:$0xff] %v2434_v16  ;;  %1636 = vperm.xlu2 %3492, %v4373_v39   ;;  %v1363_v16 = vpop.xlane.xlu0 %1362 }
 0x383   : > { %2679 = vst [vmem:[#allocation1 + $0x4] ss:$9 sm:$0xff] %v2435_v53  ;;  %3493 = vset.pattern.permute.xlu1 %v5274_v49  ;;  %v968_v53 = vmul.f32 0.5, %v936_v43  ;;  %v3737_v43 = vmov 0  }
 0x384   : > { %2680 = vst [vmem:[#allocation1 + $0x5] ss:$9 sm:$0xff] %v2436_v58  ;;  %v2002_v58 = vadd.f32 %v4647_v62, %v2001_v48  ;;  %v985_v48 = vmul.f32 0.5, %v953_v17 }
 0x385   : > { %2681 = vst [vmem:[#allocation1 + $0x6] ss:$9 sm:$0xff] %v2437_v27  ;;  %v5275_v27 = vld [vmem:[#allocation26_spill] sm:$0xff]  ;;  %v1435_v1 = vadd.f32 %v1363_v16, %v968_v53 }
 0x386   : > { %2682 = vst [vmem:[#allocation1 + $0x7] ss:$9 sm:$0xff] %v2438_v46  ;;  %v949_v19 = vsub.f32 %v5276_v13, %v5275_v27  ;;  %v2009_v46 = vand.u32 2147483648, %v4631_v63  ;;  %v2006_v63 = vsel %vm4689_vm6, %v4647_v62, %v2002_v58  ;;  %v3544_v62 = vpop.eup %3543  ;;  %v5283_v16 = vld [vmem:[#allocation18_spill] sm:$0xff] }
 0x387   : > { %v1357_v42 = vpop.xlane.xlu2 %1356  ;;  %v1469_v26 = vadd.f32 %v4406_v15, %v1435_v1  ;;  %v5284_v53 = vld [vmem:[#allocation50_spill] sm:$0xff] }
 0x388   : > { %v1433_v22 = vadd.f32 %v1357_v42, %v966_v3  ;;  %1660 = vperm.xlu0 %3496, %v4373_v39   ;;  %v2010_v3 = vor.u32 1.1754944e-38, %v2009_v46  ;;  %v981_v56 = vmul.f32 0.5, %v949_v19  ;;  %v5285_v19 = vld [vmem:[#allocation39_spill] sm:$0xff] }
 0x38a   : > { %v1467_v0 = vadd.f32 %v4406_v15, %v1433_v22  ;;  %3494 = vset.pattern.permute.xlu2 %v5278_v14  ;;  %v2011_v32 = vsel %vm2008_vm7, %v2010_v3, %v2006_v63  ;;  %v1729_v22 = vadd.f32 %v4394_v23, %v1469_v26  ;;  %v5287_v14 = vld [vmem:[#allocation48_spill] sm:$0xff] }
 0x38b   : > { %1642 = vperm.xlu1 %3493, %v4373_v39   ;;  %v2446_v49 = vrot.slane %v2011_v32, 1  ;;  %v2447_v59 = vrot.slane %v2011_v32, 2  ;;  %v2449_v27 = vrot.slane %v2011_v32, 4  ;;  %v2450_v46 = vrot.slane %v2011_v32, 5 }
 0x38c   : > { %v1727_v24 = vadd.f32 %v5277_v2, %v1467_v0  ;;  %v4712_v0 = vadd.f32 1.0, %v3544_v62  ;;  %v3352_v23 = vmul.f32 -1.442695, %v1729_v22  ;;  %v2451_v1 = vrot.slane %v2011_v32, 6  ;;  %v5290_v62 = vld [vmem:[#allocation51_spill] sm:$0xff] }
 0x38d   : > { %v4671_v40 = vld [vmem:[#allocation1] sm:$0xff] }
 0x38e   : > { %2684 = vst [vmem:[#allocation1] ss:$9 sm:$0xff] %v1996_v29  ;;  %v3350_v29 = vmul.f32 -1.442695, %v1727_v24  ;;  %v5286_v24 = vld [vmem:[#allocation28_spill] sm:$0xff]  ;;  %vm2033_vm12 = vweird.f32 %v4712_v0 }
 0x38f   : > { %2685 = vst [vmem:[#allocation1 + $0x1] ss:$9 sm:$0xff] %v2439_v54  ;;  %v1402_v42 = vpop.xlane.xlu2 %1401  ;;  %v952_v11 = vsub.f32 %v5287_v14, %v5286_v24 }
 0x390   : > { %2686 = vst [vmem:[#allocation1 + $0x2] ss:$9 sm:$0xff] %v2440_v18  ;;  %3545 = vpow2.f32 %v3350_v29  ;;  %3501 = vset.pattern.permute.xlu0 %v3737_v43  ;;  %v4702_v54 = vadd.f32 %v1402_v42, %v981_v56  ;;  %v1414_v18 = vpop.xlane.xlu1 %1413 }
 0x391   : > { %2687 = vst [vmem:[#allocation1 + $0x3] ss:$9 sm:$0xff] %v2441_v50  ;;  %2910 = vperm.xlu0 %3501, %v4493_v30   ;;  %v4705_v50 = vadd.f32 %v1414_v18, %v985_v48  ;;  %v2448_v30 = vrot.slane %v2011_v32, 3  ;;  %v984_v63 = vmul.f32 0.5, %v952_v11  ;;  %v5289_v48 = vld [vmem:[#allocation15_spill] sm:$0xff] }
 0x392   : > { %2688 = vst [vmem:[#allocation1 + $0x4] ss:$9 sm:$0xff] %v2442_v6  ;;  %1648 = vperm.xlu2 %3494, %v4373_v39   ;;  %v937_v6 = vsub.f32 %v5284_v53, %v5283_v16  ;;  %v938_v22 = vsub.f32 %v5290_v62, %v5289_v48  ;;  %v5292_v11 = vld [vmem:[#allocation47_spill] sm:$0xff]  ;;  %v2037_v48 = vand.u32 2147483647, %v4712_v0 }
 0x393   : > { %2689 = vst [vmem:[#allocation1 + $0x5] ss:$9 sm:$0xff] %v2443_v41  ;;  %3495 = vset.pattern.permute.xlu1 %v5285_v19  ;;  %v5291_v19 = vld [vmem:[#allocation52_spill] sm:$0xff] }
 0x394   : > { %2690 = vst [vmem:[#allocation1 + $0x6] ss:$9 sm:$0xff] %v2444_v28  ;;  %v969_v28 = vmul.f32 0.5, %v937_v6  ;;  %vm2038_vm14 = vcmp.eq.f32.partialorder %v2037_v48, 8.507059e+37 }
 0x395   : > { %2691 = vst [vmem:[#allocation1 + $0x7] ss:$9 sm:$0xff] %v2445_v44  ;;  %v2452_v44 = vrot.slane %v2011_v32, 7 }
 0x396   : > { %v3546_v41 = vpop.eup %3545 }
 0x397   : > { %v1855_v13 = vadd.f32 1.0, %v3546_v41  ;;  %v1366_v8 = vpop.xlane.xlu2 %1365 }
 0x398   : > { %v1436_v2 = vadd.f32 %v1366_v8, %v969_v28 }
 0x399   : > { %3547 = vrcp.f32 %v1855_v13  ;;  %2925 = vperm.xlu0 %3501, %v4640_v20   ;;  %v2024_v18 = vand.u32 2147483648, %v1855_v13  ;;  %v2022_v6 = vand.u32 2147483647, %v1855_v13  ;;  %vm2018_vm8 = vweird.f32 %v1855_v13 }
 0x39a   : > { %3549 = vrcp.f32 %v4712_v0  ;;  %3497 = vset.pattern.permute.xlu2 %v5288_v60  ;;  %v1470_v17 = vadd.f32 %v4406_v15, %v1436_v2 }
 0x39b   : > { %3551 = vpow2.f32 %v3352_v23  ;;  %1654 = vperm.xlu1 %3495, %v4373_v39   ;;  %vm2023_vm10 = vcmp.eq.f32.partialorder %v2022_v6, 8.507059e+37 }
 0x39c   : > { %v4710_v58 = vld [vmem:[#allocation1] sm:$0xff] }
 0x39d   : > { %2694 = vst [vmem:[#allocation1 + $0x1] ss:$9 sm:$0xff] %v2446_v49  ;;  %v1730_v49 = vadd.f32 %v4431_v4, %v1470_v17 }
 0x39e   : > { %2695 = vst [vmem:[#allocation1 + $0x2] ss:$9 sm:$0xff] %v2447_v59 }
 0x39f   : > { %2696 = vst [vmem:[#allocation1 + $0x3] ss:$9 sm:$0xff] %v2448_v30  ;;  %v3548_v31 = vpop.eup %3547  ;;  %v1411_v26 = vpop.xlane.xlu2 %1410  ;;  %v3353_v23 = vmul.f32 -1.442695, %v1730_v49 }
 0x3a0   : > { %2697 = vst [vmem:[#allocation1 + $0x4] ss:$9 sm:$0xff] %v2449_v27  ;;  %v4722_v20 = vpop.eup %3549  ;;  %v2014_v29 = vmul.f32 %v3548_v31, %v1855_v13  ;;  %v4724_v42 = vadd.f32 %v1411_v26, %v984_v63  ;;  %vm2019_vm2 = vweird.f32 %v3548_v31  ;;  %v2025_v27 = vor.u32 1.1754944e-38, %v2024_v18 }
 0x3a1   : > { %2698 = vst [vmem:[#allocation1 + $0x5] ss:$9 sm:$0xff] %v2450_v46  ;;  %v3552_v3 = vpop.eup %3551  ;;  %vm2020_vm9 = vmor %vm2018_vm8, %vm2019_vm2  ;;  %v970_v46 = vmul.f32 0.5, %v938_v22  ;;  %vm2034_vm11 = vweird.f32 %v4722_v20  ;;  %v5293_v22 = vld [vmem:[#allocation19_spill] sm:$0xff] }
 0x3a2   : > { %2699 = vst [vmem:[#allocation1 + $0x6] ss:$9 sm:$0xff] %v2451_v1  ;;  %v2015_v56 = vsub.f32 1.0, %v2014_v29  ;;  %v4731_v16 = vadd.f32 1.0, %v3552_v3  ;;  %1666 = vperm.xlu2 %3497, %v4373_v39   ;;  %v2039_v3 = vand.u32 2147483648, %v4712_v0  ;;  %vm2035_vm13 = vmor %vm2033_vm12, %vm2034_vm11 }
 0x3a3   : > { %2700 = vst [vmem:[#allocation1 + $0x7] ss:$9 sm:$0xff] %v2452_v44  ;;  %3498 = vset.pattern.permute.xlu1 %v5291_v19  ;;  %v1437_v1 = vadd.f32 %v4681_v51, %v970_v46 }
 0x3a4   : > { %2693 = vst [vmem:[#allocation1] ss:$9 sm:$0xff] %v2011_v32  ;;  %v2029_v32 = vmul.f32 %v4722_v20, %v4712_v0  ;;  %v2016_v53 = vmul.f32 %v3548_v31, %v2015_v56  ;;  %3553 = vrcp.f32 %v4731_v16  ;;  %vm2048_vm0 = vweird.f32 %v4731_v16 }
 0x3a5   : > { %3555 = vpow2.f32 %v3353_v23  ;;  %v1471_v51 = vadd.f32 %v4406_v15, %v1437_v1 }
 0x3a6   : > { %v2017_v41 = vadd.f32 %v3548_v31, %v2016_v53  ;;  %v2030_v30 = vsub.f32 1.0, %v2029_v32  ;;  %v5294_v32 = vld [vmem:[#allocation55_spill] sm:$0xff]  ;;  %v2040_v53 = vor.u32 1.1754944e-38, %v2039_v3  ;;  %v5297_v3 = vld [vmem:[#allocation21_spill] sm:$0xff] }
 0x3a7   : > { %v1731_v62 = vadd.f32 %v4504_v37, %v1471_v51  ;;  %v939_v18 = vsub.f32 %v5294_v32, %v5293_v22  ;;  %v5296_v51 = vld [vmem:[#allocation54_spill] sm:$0xff] }
 0x3a8   : > { %v2021_v4 = vsel %vm2020_vm9, %v3548_v31, %v2017_v41  ;;  %v2031_v13 = vmul.f32 %v4722_v20, %v2030_v30  ;;  %v4741_v31 = vpop.xlane.xlu0 %1407 }
 0x3a9   : > { %v2026_v28 = vsel %vm2023_vm10, %v2025_v27, %v2021_v4  ;;  %v3354_v30 = vmul.f32 -1.442695, %v1731_v62  ;;  %v971_v27 = vmul.f32 0.5, %v939_v18 }
 0x3aa   : > { %v2453_v8 = vrot.slane %v2026_v28, 1  ;;  %v2454_v44 = vrot.slane %v2026_v28, 2  ;;  %v2455_v2 = vrot.slane %v2026_v28, 3  ;;  %v2456_v24 = vrot.slane %v2026_v28, 4  ;;  %3499 = vset.pattern.permute.xlu2 %v5292_v11  ;;  %v4739_v17 = vpop.eup %3553 }
 0x3ab   : > { %v2701_v59 = vld [vmem:[#allocation1] sm:$0xff]  ;;  %v2457_v14 = vrot.slane %v2026_v28, 5  ;;  %v2458_v60 = vrot.slane %v2026_v28, 6  ;;  %v2459_v63 = vrot.slane %v2026_v28, 7  ;;  %v2032_v29 = vadd.f32 %v4722_v20, %v2031_v13  ;;  %1672 = vperm.xlu1 %3498, %v4373_v39   ;;  %v3556_v26 = vpop.eup %3555 }
 0x3ac   : > { %2934 = vperm.xlu0 %3501, %v2701_v59   ;;  %2702 = vst [vmem:[#allocation1] ss:$9 sm:$0xff] %v2026_v28  ;;  %v2044_v56 = vmul.f32 %v4739_v17, %v4731_v16  ;;  %v4756_v6 = vadd.f32 1.0, %v3556_v26  ;;  %vm2049_vm15 = vweird.f32 %v4739_v17  ;;  %v940_v26 = vsub.f32 %v4361_v21, %v5297_v3 }
 0x3ad   : > { %2703 = vst [vmem:[#allocation1 + $0x1] ss:$9 sm:$0xff] %v2453_v8  ;;  %v2036_v49 = vsel %vm2035_vm13, %v4722_v20, %v2032_v29  ;;  %vm2050_vm1 = vmor %vm2048_vm0, %vm2049_vm15 }
 0x3ae   : > { %2704 = vst [vmem:[#allocation1 + $0x2] ss:$9 sm:$0xff] %v2454_v44  ;;  %v2045_v59 = vsub.f32 1.0, %v2044_v56  ;;  %v2041_v41 = vsel %vm2038_vm14, %v2040_v53, %v2036_v49  ;;  %3557 = vrcp.f32 %v4756_v6  ;;  %vm2063_vm5 = vweird.f32 %v4756_v6 }
 0x3af   : > { %2705 = vst [vmem:[#allocation1 + $0x3] ss:$9 sm:$0xff] %v2455_v2  ;;  %v2460_v23 = vrot.slane %v2041_v41, 1  ;;  %v2461_v46 = vrot.slane %v2041_v41, 2  ;;  %3559 = vpow2.f32 %v3354_v30  ;;  %v2462_v4 = vrot.slane %v2041_v41, 3 }
 0x3b0   : > { %2706 = vst [vmem:[#allocation1 + $0x4] ss:$9 sm:$0xff] %v2456_v24  ;;  %v1372_v0 = vpop.xlane.xlu0 %1371  ;;  %v2046_v37 = vmul.f32 %v4739_v17, %v2045_v59  ;;  %v2463_v28 = vrot.slane %v2041_v41, 4  ;;  %v2054_v2 = vand.u32 2147483648, %v4731_v16  ;;  %v2465_v13 = vrot.slane %v2041_v41, 6 }
 0x3b1   : > { %2707 = vst [vmem:[#allocation1 + $0x5] ss:$9 sm:$0xff] %v2457_v14  ;;  %v1438_v20 = vadd.f32 %v1372_v0, %v971_v27  ;;  %v2052_v24 = vand.u32 2147483647, %v4731_v16  ;;  %v2466_v14 = vrot.slane %v2041_v41, 7 }
 0x3b2   : > { %2708 = vst [vmem:[#allocation1 + $0x6] ss:$9 sm:$0xff] %v2458_v60  ;;  %1678 = vperm.xlu2 %3499, %v4373_v39   ;;  %v2047_v1 = vadd.f32 %v4739_v17, %v2046_v37  ;;  %v5295_v60 = vld [vmem:[#allocation29_spill] sm:$0xff] }
 0x3b3   : > { %2709 = vst [vmem:[#allocation1 + $0x7] ss:$9 sm:$0xff] %v2459_v63  ;;  %3500 = vset.pattern.permute.xlu1 %v4376_v57  ;;  %v2464_v57 = vrot.slane %v2041_v41, 5  ;;  %v1472_v8 = vadd.f32 %v4406_v15, %v1438_v20  ;;  %v954_v63 = vsub.f32 %v5296_v51, %v5295_v60  ;;  %vm2053_vm3 = vcmp.eq.f32.partialorder %v2052_v24, 8.507059e+37 }
 0x3b4   : > { %v4769_v44 = vpop.eup %3557 }
 0x3b5   : > { %v3560_v11 = vpop.eup %3559  ;;  %v2059_v29 = vmul.f32 %v4769_v44, %v4756_v6  ;;  %v1732_v16 = vadd.f32 %v4433_v25, %v1472_v8  ;;  %v986_v48 = vmul.f32 0.5, %v954_v63  ;;  %v1375_v18 = vpop.xlane.xlu2 %1374  ;;  %vm2064_vm4 = vweird.f32 %v4769_v44 }
 0x3b6   : > { %v4785_v56 = vadd.f32 1.0, %v3560_v11  ;;  %vm2065_vm6 = vmor %vm2063_vm5, %vm2064_vm4 }
 0x3b7   : > { %v2060_v22 = vsub.f32 1.0, %v2059_v29  ;;  %v3355_v32 = vmul.f32 -1.442695, %v1732_v16 }
 0x3b8   : > { %v1417_v49 = vpop.xlane.xlu0 %1416  ;;  %3561 = vrcp.f32 %v4785_v56  ;;  %vm2078_vm8 = vweird.f32 %v4785_v56 }
 0x3b9   : > { %v4788_v53 = vadd.f32 %v1417_v49, %v986_v48  ;;  %v2061_v0 = vmul.f32 %v4769_v44, %v2060_v22  ;;  %3563 = vpow2.f32 %v3355_v32 }
 0x3ba   : > { %v4762_v19 = vld [vmem:[#allocation1] sm:$0xff]  ;;  %3502 = vset.pattern.permute.xlu2 %v3737_v43 }
 0x3bb   : > { %2711 = vst [vmem:[#allocation1] ss:$9 sm:$0xff] %v2041_v41  ;;  %2913 = vperm.xlu2 %3502, %v4515_v47   ;;  %1684 = vperm.xlu1 %3500, %v4373_v39   ;;  %v2051_v47 = vsel %vm2050_vm1, %v4739_v17, %v2047_v1  ;;  %v2055_v39 = vor.u32 1.1754944e-38, %v2054_v2  ;;  %v972_v17 = vmul.f32 0.5, %v940_v26 }
 0x3bc   : > { %2712 = vst [vmem:[#allocation1 + $0x1] ss:$9 sm:$0xff] %v2460_v23 }
 0x3bd   : > { %2713 = vst [vmem:[#allocation1 + $0x2] ss:$9 sm:$0xff] %v2461_v46  ;;  %v2056_v62 = vsel %vm2053_vm3, %v2055_v39, %v2051_v47  ;;  %v1439_v41 = vadd.f32 %v1375_v18, %v972_v17  ;;  %v2062_v46 = vadd.f32 %v4769_v44, %v2061_v0  ;;  %v1378_v60 = vpop.xlane.xlu1 %1377  ;;  %v1420_v29 = vpop.xlane.xlu2 %1419 }
 0x3be   : > { %2714 = vst [vmem:[#allocation1 + $0x3] ss:$9 sm:$0xff] %v2462_v4  ;;  %v2467_v59 = vrot.slane %v2056_v62, 1  ;;  %v2468_v21 = vrot.slane %v2056_v62, 2  ;;  %v2469_v30 = vrot.slane %v2056_v62, 3  ;;  %v2471_v27 = vrot.slane %v2056_v62, 5 }
 0x3bf   : > { %2715 = vst [vmem:[#allocation1 + $0x4] ss:$9 sm:$0xff] %v2463_v28  ;;  %v2472_v37 = vrot.slane %v2056_v62, 6  ;;  %v1473_v23 = vadd.f32 %v4406_v15, %v1439_v41  ;;  %v2473_v20 = vrot.slane %v2056_v62, 7  ;;  %v5298_v28 = vld [vmem:[#allocation30_spill] sm:$0xff] }
 0x3c0   : > { %2716 = vst [vmem:[#allocation1 + $0x5] ss:$9 sm:$0xff] %v2464_v57  ;;  %v955_v1 = vsub.f32 %v4356_v12, %v5298_v28  ;;  %v2067_v57 = vand.u32 2147483647, %v4756_v6 }
 0x3c1   : > { %2717 = vst [vmem:[#allocation1 + $0x6] ss:$9 sm:$0xff] %v2465_v13  ;;  %v1733_v2 = vadd.f32 %v4636_v35, %v1473_v23  ;;  %v5300_v13 = vld [vmem:[#allocation31_spill] sm:$0xff] }
 0x3c2   : > { %2718 = vst [vmem:[#allocation1 + $0x7] ss:$9 sm:$0xff] %v2466_v14  ;;  %v2066_v14 = vsel %vm2065_vm6, %v4769_v44, %v2062_v46  ;;  %v987_v51 = vmul.f32 0.5, %v955_v1  ;;  %vm2068_vm7 = vcmp.eq.f32.partialorder %v2067_v57, 8.507059e+37  ;;  %v5303_v1 = vld [vmem:[#allocation34_spill] sm:$0xff] }
 0x3c3   : > { %2919 = vperm.xlu2 %3502, %v4589_v10   ;;  %3503 = vset.pattern.permute.xlu1 %v3737_v43  ;;  %v2470_v10 = vrot.slane %v2056_v62, 4  ;;  %v4797_v43 = vpop.eup %3561  ;;  %v3356_v47 = vmul.f32 -1.442695, %v1733_v2 }
 0x3c4   : > { %2916 = vperm.xlu1 %3503, %v4554_v55   ;;  %v2069_v55 = vand.u32 2147483648, %v4756_v6  ;;  %v3564_v4 = vpop.eup %3563  ;;  %v2074_v8 = vmul.f32 %v4797_v43, %v4785_v56  ;;  %v4816_v3 = vadd.f32 %v1420_v29, %v987_v51  ;;  %vm2079_vm2 = vweird.f32 %v4797_v43 }
 0x3c5   : > { %v4814_v11 = vadd.f32 1.0, %v3564_v4  ;;  %vm2080_vm9 = vmor %vm2078_vm8, %vm2079_vm2 }
 0x3c6   : > { %v2070_v12 = vor.u32 1.1754944e-38, %v2069_v55  ;;  %v2075_v6 = vsub.f32 1.0, %v2074_v8 }
 0x3c7   : > { %3565 = vrcp.f32 %v4814_v11  ;;  %vm2093_vm12 = vweird.f32 %v4814_v11 }
 0x3c8   : > { %v2071_v63 = vsel %vm2068_vm7, %v2070_v12, %v2066_v14  ;;  %v2076_v48 = vmul.f32 %v4797_v43, %v2075_v6  ;;  %3567 = vpow2.f32 %v3356_v47  ;;  %v2099_v47 = vand.u32 2147483648, %v4814_v11 }
 0x3c9   : > { %v4792_v25 = vld [vmem:[#allocation1] sm:$0xff]  ;;  %v2474_v44 = vrot.slane %v2071_v63, 1  ;;  %v2476_v22 = vrot.slane %v2071_v63, 3  ;;  %v2477_v32 = vrot.slane %v2071_v63, 4  ;;  %v2478_v18 = vrot.slane %v2071_v63, 5 }
 0x3ca   : > { %2721 = vst [vmem:[#allocation1 + $0x1] ss:$9 sm:$0xff] %v2467_v59  ;;  %v2077_v17 = vadd.f32 %v4797_v43, %v2076_v48  ;;  %v2479_v59 = vrot.slane %v2071_v63, 6  ;;  %v2480_v41 = vrot.slane %v2071_v63, 7 }
 0x3cb   : > { %2722 = vst [vmem:[#allocation1 + $0x2] ss:$9 sm:$0xff] %v2468_v21  ;;  %2928 = vperm.xlu2 %3502, %v4671_v40   ;;  %v5299_v40 = vld [vmem:[#allocation16_spill] sm:$0xff]  ;;  %v1423_v21 = vpop.xlane.xlu1 %1422 }
 0x3cc   : > { %2723 = vst [vmem:[#allocation1 + $0x3] ss:$9 sm:$0xff] %v2469_v30  ;;  %2922 = vperm.xlu1 %3503, %v4613_v45   ;;  %v941_v24 = vsub.f32 %v5300_v13, %v5299_v40  ;;  %v5301_v45 = vld [vmem:[#allocation24_spill] sm:$0xff]  ;;  %v2081_v23 = vsel %vm2080_vm9, %v4797_v43, %v2077_v17 }
 0x3cd   : > { %2724 = vst [vmem:[#allocation1 + $0x4] ss:$9 sm:$0xff] %v2470_v10  ;;  %v956_v35 = vsub.f32 %v4345_v34, %v5301_v45  ;;  %v4825_v49 = vpop.eup %3565  ;;  %v2082_v10 = vand.u32 2147483647, %v4785_v56 }
 0x3ce   : > { %2725 = vst [vmem:[#allocation1 + $0x5] ss:$9 sm:$0xff] %v2471_v27  ;;  %v973_v16 = vmul.f32 0.5, %v941_v24  ;;  %v3568_v0 = vpop.eup %3567  ;;  %v2089_v27 = vmul.f32 %v4825_v49, %v4814_v11  ;;  %vm2094_vm11 = vweird.f32 %v4825_v49 }
 0x3cf   : > { %2726 = vst [vmem:[#allocation1 + $0x6] ss:$9 sm:$0xff] %v2472_v37  ;;  %v4839_v46 = vadd.f32 1.0, %v3568_v0  ;;  %vm2083_vm10 = vcmp.eq.f32.partialorder %v2082_v10, 8.507059e+37  ;;  %vm2095_vm13 = vmor %vm2093_vm12, %vm2094_vm11  ;;  %v1607_v10 = vpop.permute.xlu2 %1606 }
 0x3d0   : > { %2727 = vst [vmem:[#allocation1 + $0x7] ss:$9 sm:$0xff] %v2473_v20  ;;  %v1440_v39 = vadd.f32 %v1378_v60, %v973_v16  ;;  %v2090_v4 = vsub.f32 1.0, %v2089_v27  ;;  %v2097_v16 = vand.u32 2147483647, %v4814_v11 }
 0x3d1   : > { %2720 = vst [vmem:[#allocation1] ss:$9 sm:$0xff] %v2056_v62  ;;  %v2475_v62 = vrot.slane %v2071_v63, 2  ;;  %3569 = vrcp.f32 %v4839_v46  ;;  %vm2108_vm0 = vweird.f32 %v4839_v46 }
 0x3d2   : > { %v1474_v34 = vadd.f32 %v4406_v15, %v1440_v39  ;;  %v2100_v39 = vor.u32 1.1754944e-38, %v2099_v47  ;;  %vm2098_vm14 = vcmp.eq.f32.partialorder %v2097_v16, 8.507059e+37 }
 0x3d3   : > { %2937 = vperm.xlu2 %3502, %v4762_v19   ;;  %v988_v19 = vmul.f32 0.5, %v956_v35 }
 0x3d4   : > { %2931 = vperm.xlu1 %3503, %v4710_v58   ;;  %v2084_v58 = vand.u32 2147483648, %v4785_v56  ;;  %v1734_v37 = vadd.f32 %v4582_v5, %v1474_v34  ;;  %v5302_v56 = vld [vmem:[#allocation22_spill] sm:$0xff]  ;;  %v2091_v5 = vmul.f32 %v4825_v49, %v2090_v4 }
 0x3d5   : > { %v4830_v30 = vadd.f32 %v1423_v21, %v988_v19  ;;  %v942_v57 = vsub.f32 %v5303_v1, %v5302_v56 }
 0x3d6   : > { %v2085_v20 = vor.u32 1.1754944e-38, %v2084_v58  ;;  %v3357_v28 = vmul.f32 -1.442695, %v1734_v37  ;;  %v2092_v51 = vadd.f32 %v4825_v49, %v2091_v5  ;;  %v2114_v37 = vand.u32 2147483648, %v4839_v46 }
 0x3d7   : > { %v974_v13 = vmul.f32 0.5, %v942_v57  ;;  %v4845_v12 = vpop.eup %3569 }
 0x3d8   : > { %v2728_v26 = vld [vmem:[#allocation1] sm:$0xff]  ;;  %v2086_v55 = vsel %vm2083_vm10, %v2085_v20, %v2081_v23  ;;  %3571 = vpow2.f32 %v3357_v28  ;;  %v2104_v45 = vmul.f32 %v4845_v12, %v4839_v46  ;;  %v2096_v35 = vsel %vm2095_vm13, %v4825_v49, %v2092_v51 }
 0x3d9   : > { %2729 = vst [vmem:[#allocation1] ss:$9 sm:$0xff] %v2071_v63  ;;  %2943 = vperm.xlu0 %3501, %v2728_v26   ;;  %v2481_v8 = vrot.slane %v2086_v55, 1  ;;  %v2482_v40 = vrot.slane %v2086_v55, 2  ;;  %v2483_v43 = vrot.slane %v2086_v55, 3  ;;  %v2484_v24 = vrot.slane %v2086_v55, 4 }
 0x3da   : > { %2730 = vst [vmem:[#allocation1 + $0x1] ss:$9 sm:$0xff] %v2474_v44  ;;  %v2485_v14 = vrot.slane %v2086_v55, 5  ;;  %v2486_v60 = vrot.slane %v2086_v55, 6  ;;  %v2487_v63 = vrot.slane %v2086_v55, 7  ;;  %vm2109_vm15 = vweird.f32 %v4845_v12 }
 0x3db   : > { %2731 = vst [vmem:[#allocation1 + $0x2] ss:$9 sm:$0xff] %v2475_v62  ;;  %v1476_v23 = vadd.f32 %v4406_v15, %v4525_v38  ;;  %v2112_v20 = vand.u32 2147483647, %v4839_v46  ;;  %vm2110_vm1 = vmor %vm2108_vm0, %vm2109_vm15  ;;  %v2115_v1 = vor.u32 1.1754944e-38, %v2114_v37 }
 0x3dc   : > { %2732 = vst [vmem:[#allocation1 + $0x3] ss:$9 sm:$0xff] %v2476_v22  ;;  %2940 = vperm.xlu1 %3503, %v4792_v25   ;;  %v1381_v25 = vpop.xlane.xlu0 %1380  ;;  %v2101_v22 = vsel %vm2098_vm14, %v2100_v39, %v2096_v35 }
 0x3dd   : > { %2733 = vst [vmem:[#allocation1 + $0x4] ss:$9 sm:$0xff] %v2477_v32  ;;  %v1441_v6 = vadd.f32 %v1381_v25, %v974_v13  ;;  %v2105_v32 = vsub.f32 1.0, %v2104_v45  ;;  %v2488_v19 = vrot.slane %v2101_v22, 1  ;;  %v2489_v34 = vrot.slane %v2101_v22, 2  ;;  %v1613_v51 = vpop.permute.xlu1 %1612 }
 0x3de   : > { %2734 = vst [vmem:[#allocation1 + $0x5] ss:$9 sm:$0xff] %v2478_v18  ;;  %v3572_v29 = vpop.eup %3571  ;;  %v2490_v49 = vrot.slane %v2101_v22, 3  ;;  %v2492_v21 = vrot.slane %v2101_v22, 5  ;;  %v2494_v27 = vrot.slane %v2101_v22, 7  ;;  %v1736_v28 = vadd.f32 %v1607_v10, %v1476_v23 }
 0x3df   : > { %2735 = vst [vmem:[#allocation1 + $0x6] ss:$9 sm:$0xff] %v2479_v59  ;;  %v1475_v44 = vadd.f32 %v4406_v15, %v1441_v6  ;;  %v4856_v48 = vadd.f32 1.0, %v3572_v29  ;;  %v2106_v17 = vmul.f32 %v4845_v12, %v2105_v32  ;;  %v2491_v59 = vrot.slane %v2101_v22, 4 }
 0x3e0   : > { %2736 = vst [vmem:[#allocation1 + $0x7] ss:$9 sm:$0xff] %v2480_v41  ;;  %v2493_v41 = vrot.slane %v2101_v22, 6  ;;  %vm2113_vm3 = vcmp.eq.f32.partialorder %v2112_v20, 8.507059e+37  ;;  %v1477_v29 = vadd.f32 %v4406_v15, %v4464_v61 }
 0x3e1   : > { %3573 = vrcp.f32 %v4856_v48  ;;  %v2107_v0 = vadd.f32 %v4845_v12, %v2106_v17  ;;  %vm2123_vm5 = vweird.f32 %v4856_v48  ;;  %v2127_v45 = vand.u32 2147483647, %v4856_v48 }
 0x3e2   : > { %v1737_v35 = vadd.f32 %v1613_v51, %v1477_v29 }
 0x3e3   : > { %v2111_v56 = vsel %vm2110_vm1, %v4845_v12, %v2107_v0  ;;  %vm2128_vm7 = vcmp.eq.f32.partialorder %v2127_v45, 8.507059e+37 }
 0x3e4   : > { %v1601_v26 = vpop.permute.xlu0 %1600  ;;  %v3360_v32 = vmul.f32 -1.442695, %v1737_v35 }
 0x3e5   : > { %v1735_v62 = vadd.f32 %v1601_v26, %v1475_v44 }
 0x3e7   : > { %v2737_v2 = vld [vmem:[#allocation1] sm:$0xff]  ;;  %v3358_v18 = vmul.f32 -1.442695, %v1735_v62  ;;  %v4860_v58 = vpop.eup %3573 }
 0x3e8   : > { %2738 = vst [vmem:[#allocation1] ss:$9 sm:$0xff] %v2086_v55  ;;  %2946 = vperm.xlu2 %3502, %v2737_v2   ;;  %v2119_v4 = vmul.f32 %v4860_v58, %v4856_v48  ;;  %v3359_v2 = vmul.f32 -1.442695, %v1736_v28  ;;  %vm2124_vm4 = vweird.f32 %v4860_v58 }
 0x3e9   : > { %2739 = vst [vmem:[#allocation1 + $0x1] ss:$9 sm:$0xff] %v2481_v8  ;;  %3575 = vpow2.f32 %v3358_v18  ;;  %v2116_v8 = vsel %vm2113_vm3, %v2115_v1, %v2111_v56  ;;  %vm2125_vm6 = vmor %vm2123_vm5, %vm2124_vm4 }
 0x3ea   : > { %2740 = vst [vmem:[#allocation1 + $0x2] ss:$9 sm:$0xff] %v2482_v40  ;;  %v2120_v38 = vsub.f32 1.0, %v2119_v4  ;;  %v2495_v46 = vrot.slane %v2116_v8, 1  ;;  %v2496_v5 = vrot.slane %v2116_v8, 2  ;;  %v2498_v13 = vrot.slane %v2116_v8, 4 }
 0x3eb   : > { %2741 = vst [vmem:[#allocation1 + $0x3] ss:$9 sm:$0xff] %v2483_v43  ;;  %v2497_v43 = vrot.slane %v2116_v8, 3  ;;  %v2500_v12 = vrot.slane %v2116_v8, 6  ;;  %v2501_v6 = vrot.slane %v2116_v8, 7 }
 0x3ec   : > { %2742 = vst [vmem:[#allocation1 + $0x4] ss:$9 sm:$0xff] %v2484_v24  ;;  %v2121_v25 = vmul.f32 %v4860_v58, %v2120_v38 }
 0x3ed   : > { %2743 = vst [vmem:[#allocation1 + $0x5] ss:$9 sm:$0xff] %v2485_v14  ;;  %v2499_v14 = vrot.slane %v2116_v8, 5 }
 0x3ee   : > { %2744 = vst [vmem:[#allocation1 + $0x6] ss:$9 sm:$0xff] %v2486_v60  ;;  %v2122_v60 = vadd.f32 %v4860_v58, %v2121_v25 }
 0x3ef   : > { %2745 = vst [vmem:[#allocation1 + $0x7] ss:$9 sm:$0xff] %v2487_v63  ;;  %v3576_v55 = vpop.eup %3575  ;;  %v2129_v63 = vand.u32 2147483648, %v4856_v48 }
 0x3f0   : > { %v4872_v57 = vadd.f32 1.0, %v3576_v55  ;;  %v2126_v44 = vsel %vm2125_vm6, %v4860_v58, %v2122_v60  ;;  %v1479_v60 = vadd.f32 %v4406_v15, %v4658_v36 }
 0x3f1   : > { %v2130_v26 = vor.u32 1.1754944e-38, %v2129_v63 }
 0x3f2   : > { %3577 = vrcp.f32 %v4872_v57  ;;  %vm2138_vm8 = vweird.f32 %v4872_v57  ;;  %v2142_v0 = vand.u32 2147483647, %v4872_v57 }
 0x3f3   : > { %3579 = vpow2.f32 %v3359_v2 }
 0x3f4   : > { %vm2143_vm10 = vcmp.eq.f32.partialorder %v2142_v0, 8.507059e+37 }
 0x3f6   : > { %v2746_v11 = vld [vmem:[#allocation1] sm:$0xff] }
 0x3f7   : > { %2747 = vst [vmem:[#allocation1] ss:$9 sm:$0xff] %v2101_v22  ;;  %2949 = vperm.xlu1 %3503, %v2746_v11   ;;  %v2131_v22 = vsel %vm2128_vm7, %v2130_v26, %v2126_v44 }
 0x3f8   : > { %2748 = vst [vmem:[#allocation1 + $0x1] ss:$9 sm:$0xff] %v2488_v19  ;;  %v4876_v24 = vpop.eup %3577  ;;  %v2502_v19 = vrot.slane %v2131_v22, 1  ;;  %v2503_v18 = vrot.slane %v2131_v22, 2  ;;  %v2504_v48 = vrot.slane %v2131_v22, 3  ;;  %v2507_v58 = vrot.slane %v2131_v22, 6 }
 0x3f9   : > { %2749 = vst [vmem:[#allocation1 + $0x2] ss:$9 sm:$0xff] %v2489_v34  ;;  %v2134_v47 = vmul.f32 %v4876_v24, %v4872_v57  ;;  %v3580_v16 = vpop.eup %3579  ;;  %v2505_v34 = vrot.slane %v2131_v22, 4  ;;  %vm2139_vm2 = vweird.f32 %v4876_v24  ;;  %v2508_v10 = vrot.slane %v2131_v22, 7 }
 0x3fa   : > { %2750 = vst [vmem:[#allocation1 + $0x3] ss:$9 sm:$0xff] %v2490_v49  ;;  %v4888_v39 = vadd.f32 1.0, %v3580_v16  ;;  %v2506_v49 = vrot.slane %v2131_v22, 5  ;;  %vm2140_vm9 = vmor %vm2138_vm8, %vm2139_vm2 }
 0x3fb   : > { %2751 = vst [vmem:[#allocation1 + $0x4] ss:$9 sm:$0xff] %v2491_v59  ;;  %v2135_v62 = vsub.f32 1.0, %v2134_v47  ;;  %v2144_v59 = vand.u32 2147483648, %v4872_v57 }
 0x3fc   : > { %2752 = vst [vmem:[#allocation1 + $0x5] ss:$9 sm:$0xff] %v2492_v21  ;;  %3581 = vrcp.f32 %v4888_v39  ;;  %vm2153_vm12 = vweird.f32 %v4888_v39 }
 0x3fd   : > { %2753 = vst [vmem:[#allocation1 + $0x6] ss:$9 sm:$0xff] %v2493_v41  ;;  %v2136_v61 = vmul.f32 %v4876_v24, %v2135_v62  ;;  %3583 = vpow2.f32 %v3360_v32  ;;  %v1619_v41 = vpop.permute.xlu2 %1618  ;;  %v2145_v4 = vor.u32 1.1754944e-38, %v2144_v59  ;;  %v1480_v59 = vadd.f32 %v4406_v15, %v4597_v9 }
 0x3fe   : > { %2754 = vst [vmem:[#allocation1 + $0x7] ss:$9 sm:$0xff] %v2494_v27  ;;  %v1478_v27 = vadd.f32 %v4406_v15, %v4460_v52 }
 0x3ff   : > { %v2137_v17 = vadd.f32 %v4876_v24, %v2136_v61 }
 0x400   : > { %v1738_v55 = vadd.f32 %v1619_v41, %v1478_v27 }
 0x401   : > { %v2141_v23 = vsel %vm2140_vm9, %v4876_v24, %v2137_v17 }
 0x402   : > { %v3582_v21 = vpop.eup %3581  ;;  %v2146_v28 = vsel %vm2143_vm10, %v2145_v4, %v2141_v23  ;;  %v3361_v57 = vmul.f32 -1.442695, %v1738_v55 }
 0x403   : > { %v3584_v37 = vpop.eup %3583  ;;  %v2149_v20 = vmul.f32 %v3582_v21, %v4888_v39  ;;  %v2510_v38 = vrot.slane %v2146_v28, 2  ;;  %v2511_v2 = vrot.slane %v2146_v28, 3  ;;  %v2514_v25 = vrot.slane %v2146_v28, 6 }
 0x404   : > { %v4901_v56 = vadd.f32 1.0, %v3584_v37  ;;  %vm2154_vm11 = vweird.f32 %v3582_v21 }
 0x405   : > { %v2755_v40 = vld [vmem:[#allocation1] sm:$0xff]  ;;  %v2150_v1 = vsub.f32 1.0, %v2149_v20  ;;  %vm2155_vm13 = vmor %vm2153_vm12, %vm2154_vm11 }
 0x406   : > { %2756 = vst [vmem:[#allocation1] ss:$9 sm:$0xff] %v2116_v8  ;;  %2952 = vperm.xlu0 %3501, %v2755_v40   ;;  %v2509_v8 = vrot.slane %v2146_v28, 1  ;;  %3585 = vrcp.f32 %v4901_v56  ;;  %vm2168_vm0 = vweird.f32 %v4901_v56 }
 0x407   : > { %2757 = vst [vmem:[#allocation1 + $0x1] ss:$9 sm:$0xff] %v2495_v46  ;;  %v2151_v40 = vmul.f32 %v3582_v21, %v2150_v1  ;;  %3587 = vpow2.f32 %v3361_v57  ;;  %v2512_v46 = vrot.slane %v2146_v28, 4 }
 0x408   : > { %2758 = vst [vmem:[#allocation1 + $0x2] ss:$9 sm:$0xff] %v2496_v5  ;;  %v2513_v5 = vrot.slane %v2146_v28, 5 }
 0x409   : > { %2759 = vst [vmem:[#allocation1 + $0x3] ss:$9 sm:$0xff] %v2497_v43  ;;  %v2515_v43 = vrot.slane %v2146_v28, 7  ;;  %v2152_v24 = vadd.f32 %v3582_v21, %v2151_v40 }
 0x40a   : > { %2760 = vst [vmem:[#allocation1 + $0x4] ss:$9 sm:$0xff] %v2498_v13 }
 0x40b   : > { %2761 = vst [vmem:[#allocation1 + $0x5] ss:$9 sm:$0xff] %v2499_v14  ;;  %v1625_v14 = vpop.permute.xlu1 %1624  ;;  %v2156_v29 = vsel %vm2155_vm13, %v3582_v21, %v2152_v24 }
 0x40c   : > { %2762 = vst [vmem:[#allocation1 + $0x6] ss:$9 sm:$0xff] %v2500_v12  ;;  %v3586_v13 = vpop.eup %3585  ;;  %v2159_v12 = vand.u32 2147483648, %v4888_v39  ;;  %v1739_v47 = vadd.f32 %v1625_v14, %v1479_v60 }
 0x40d   : > { %2763 = vst [vmem:[#allocation1 + $0x7] ss:$9 sm:$0xff] %v2501_v6  ;;  %v3588_v51 = vpop.eup %3587  ;;  %v2157_v6 = vand.u32 2147483647, %v4888_v39  ;;  %v2164_v63 = vmul.f32 %v3586_v13, %v4901_v56  ;;  %vm2169_vm15 = vweird.f32 %v3586_v13 }
 0x40e   : > { %v2160_v16 = vor.u32 1.1754944e-38, %v2159_v12  ;;  %v4910_v45 = vadd.f32 1.0, %v3588_v51  ;;  %v3362_v26 = vmul.f32 -1.442695, %v1739_v47  ;;  %vm2170_vm1 = vmor %vm2168_vm0, %vm2169_vm15 }
 0x40f   : > { %vm2158_vm14 = vcmp.eq.f32.partialorder %v2157_v6, 8.507059e+37  ;;  %v2165_v44 = vsub.f32 1.0, %v2164_v63 }
 0x410   : > { %v2161_v35 = vsel %vm2158_vm14, %v2160_v16, %v2156_v29  ;;  %3589 = vrcp.f32 %v4910_v45  ;;  %vm2183_vm5 = vweird.f32 %v4910_v45 }
 0x411   : > { %v2516_v36 = vrot.slane %v2161_v35, 1  ;;  %v2166_v39 = vmul.f32 %v3586_v13, %v2165_v44  ;;  %3591 = vpow2.f32 %v3362_v26  ;;  %v2518_v32 = vrot.slane %v2161_v35, 3 }
 0x412   : > { %v2519_v61 = vrot.slane %v2161_v35, 4  ;;  %v2522_v17 = vrot.slane %v2161_v35, 7 }
 0x414   : > { %v2764_v11 = vld [vmem:[#allocation1] sm:$0xff] }
 0x415   : > { %2765 = vst [vmem:[#allocation1] ss:$9 sm:$0xff] %v2131_v22  ;;  %2955 = vperm.xlu2 %3502, %v2764_v11   ;;  %v2517_v22 = vrot.slane %v2161_v35, 2  ;;  %v2520_v11 = vrot.slane %v2161_v35, 5 }
 0x416   : > { %2766 = vst [vmem:[#allocation1 + $0x1] ss:$9 sm:$0xff] %v2502_v19  ;;  %v4913_v19 = vpop.eup %3589 }
 0x417   : > { %2767 = vst [vmem:[#allocation1 + $0x2] ss:$9 sm:$0xff] %v2503_v18  ;;  %v2521_v18 = vrot.slane %v2161_v35, 6  ;;  %v3592_v21 = vpop.eup %3591  ;;  %v2179_v41 = vmul.f32 %v4913_v19, %v4910_v45  ;;  %vm2184_vm4 = vweird.f32 %v4913_v19 }
 0x418   : > { %2768 = vst [vmem:[#allocation1 + $0x3] ss:$9 sm:$0xff] %v2504_v48  ;;  %v2167_v48 = vadd.f32 %v3586_v13, %v2166_v39  ;;  %v4922_v37 = vadd.f32 1.0, %v3592_v21  ;;  %vm2185_vm6 = vmor %vm2183_vm5, %vm2184_vm4  ;;  %v1643_v39 = vpop.permute.xlu1 %1642 }
 0x419   : > { %2769 = vst [vmem:[#allocation1 + $0x4] ss:$9 sm:$0xff] %v2505_v34  ;;  %v1631_v34 = vpop.permute.xlu0 %1630  ;;  %v2180_v23 = vsub.f32 1.0, %v2179_v41 }
 0x41a   : > { %2770 = vst [vmem:[#allocation1 + $0x5] ss:$9 sm:$0xff] %v2506_v49  ;;  %v2174_v49 = vand.u32 2147483648, %v4901_v56  ;;  %v1740_v0 = vadd.f32 %v1631_v34, %v1480_v59  ;;  %3593 = vrcp.f32 %v4922_v37  ;;  %vm2198_vm8 = vweird.f32 %v4922_v37 }
 0x41b   : > { %2771 = vst [vmem:[#allocation1 + $0x6] ss:$9 sm:$0xff] %v2507_v58  ;;  %v2172_v58 = vand.u32 2147483647, %v4901_v56 }
 0x41c   : > { %2772 = vst [vmem:[#allocation1 + $0x7] ss:$9 sm:$0xff] %v2508_v10  ;;  %v2171_v10 = vsel %vm2170_vm1, %v3586_v13, %v2167_v48  ;;  %v2175_v27 = vor.u32 1.1754944e-38, %v2174_v49  ;;  %v3363_v9 = vmul.f32 -1.442695, %v1740_v0 }
 0x41d   : > { %vm2173_vm3 = vcmp.eq.f32.partialorder %v2172_v58, 8.507059e+37  ;;  %v2187_v13 = vand.u32 2147483647, %v4910_v45 }
 0x41e   : > { %v2176_v20 = vsel %vm2173_vm3, %v2175_v27, %v2171_v10  ;;  %3595 = vpow2.f32 %v3363_v9 }
 0x41f   : > { %v2523_v4 = vrot.slane %v2176_v20, 1  ;;  %v2524_v56 = vrot.slane %v2176_v20, 2  ;;  %v2525_v1 = vrot.slane %v2176_v20, 3  ;;  %v2526_v57 = vrot.slane %v2176_v20, 4 }
 0x420   : > { %v2528_v40 = vrot.slane %v2176_v20, 6  ;;  %vm2188_vm7 = vcmp.eq.f32.partialorder %v2187_v13, 8.507059e+37 }
 0x423   : > { %v2773_v52 = vld [vmem:[#allocation1] sm:$0xff] }
 0x424   : > { %2774 = vst [vmem:[#allocation1] ss:$9 sm:$0xff] %v2146_v28  ;;  %2958 = vperm.xlu1 %3503, %v2773_v52   ;;  %v2181_v28 = vmul.f32 %v4913_v19, %v2180_v23 }
 0x425   : > { %2775 = vst [vmem:[#allocation1 + $0x1] ss:$9 sm:$0xff] %v2509_v8  ;;  %v2527_v8 = vrot.slane %v2176_v20, 5 }
 0x426   : > { %2776 = vst [vmem:[#allocation1 + $0x2] ss:$9 sm:$0xff] %v2510_v38  ;;  %v4926_v38 = vpop.eup %3593  ;;  %v2182_v52 = vadd.f32 %v4913_v19, %v2181_v28  ;;  %v1483_v28 = vadd.f32 %v4406_v15, %v4623_v7 }
 0x427   : > { %2777 = vst [vmem:[#allocation1 + $0x3] ss:$9 sm:$0xff] %v2511_v2  ;;  %v1637_v2 = vpop.permute.xlu2 %1636  ;;  %v2194_v14 = vmul.f32 %v4926_v38, %v4922_v37  ;;  %vm2199_vm2 = vweird.f32 %v4926_v38 }
 0x428   : > { %2778 = vst [vmem:[#allocation1 + $0x4] ss:$9 sm:$0xff] %v2512_v46  ;;  %v2189_v46 = vand.u32 2147483648, %v4910_v45  ;;  %v2186_v12 = vsel %vm2185_vm6, %v4913_v19, %v2182_v52  ;;  %vm2200_vm9 = vmor %vm2198_vm8, %vm2199_vm2  ;;  %vm3010_vm2 = vcmask 130112   ;;  %vm3014_vm8 = vcmask 195712  }
 0x429   : > { %2779 = vst [vmem:[#allocation1 + $0x5] ss:$9 sm:$0xff] %v2513_v5  ;;  %v1481_v5 = vadd.f32 %v4406_v15, %v4495_v33  ;;  %v2195_v63 = vsub.f32 1.0, %v2194_v14 }
 0x42a   : > { %2780 = vst [vmem:[#allocation1 + $0x6] ss:$9 sm:$0xff] %v2514_v25  ;;  %v2529_v25 = vrot.slane %v2176_v20, 7  ;;  %v2190_v60 = vor.u32 1.1754944e-38, %v2189_v46 }
 0x42b   : > { %2781 = vst [vmem:[#allocation1 + $0x7] ss:$9 sm:$0xff] %v2515_v43  ;;  %v3596_v43 = vpop.eup %3595  ;;  %v1741_v24 = vadd.f32 %v1637_v2, %v1481_v5  ;;  %v2196_v45 = vmul.f32 %v4926_v38, %v2195_v63  ;;  %v5304_v5 = vld [vmem:[#allocation27_spill] sm:$0xff] }
 0x42c   : > { %v4938_v51 = vadd.f32 1.0, %v3596_v43  ;;  %v2191_v33 = vsel %vm2188_vm7, %v2190_v60, %v2186_v12 }
 0x42d   : > { %v3364_v6 = vmul.f32 -1.442695, %v1741_v24  ;;  %v2530_v47 = vrot.slane %v2191_v33, 1  ;;  %v2531_v16 = vrot.slane %v2191_v33, 2  ;;  %v2533_v44 = vrot.slane %v2191_v33, 4 }
 0x42e   : > { %3597 = vrcp.f32 %v4938_v51  ;;  %v2534_v26 = vrot.slane %v2191_v33, 5  ;;  %vm2213_vm12 = vweird.f32 %v4938_v51 }
 0x42f   : > { %3599 = vpow2.f32 %v3364_v6 }
 0x432   : > { %v2782_v62 = vld [vmem:[#allocation1] sm:$0xff] }
 0x433   : > { %2783 = vst [vmem:[#allocation1] ss:$9 sm:$0xff] %v2161_v35  ;;  %2961 = vperm.xlu0 %3501, %v2782_v62   ;;  %v2532_v35 = vrot.slane %v2191_v33, 3  ;;  %v2535_v62 = vrot.slane %v2191_v33, 6 }
 0x434   : > { %2784 = vst [vmem:[#allocation1 + $0x1] ss:$9 sm:$0xff] %v2516_v36  ;;  %v4942_v36 = vpop.eup %3597 }
 0x435   : > { %2785 = vst [vmem:[#allocation1 + $0x2] ss:$9 sm:$0xff] %v2517_v22  ;;  %v2197_v22 = vadd.f32 %v4926_v38, %v2196_v45  ;;  %v3600_v19 = vpop.eup %3599  ;;  %v2209_v48 = vmul.f32 %v4942_v36, %v4938_v51  ;;  %vm2214_vm11 = vweird.f32 %v4942_v36 }
 0x436   : > { %2786 = vst [vmem:[#allocation1 + $0x3] ss:$9 sm:$0xff] %v2518_v32  ;;  %v2536_v32 = vrot.slane %v2191_v33, 7  ;;  %v4954_v49 = vadd.f32 1.0, %v3600_v19  ;;  %vm2215_vm13 = vmor %vm2213_vm12, %vm2214_vm11 }
 0x437   : > { %2787 = vst [vmem:[#allocation1 + $0x4] ss:$9 sm:$0xff] %v2519_v61  ;;  %v2204_v61 = vand.u32 2147483648, %v4922_v37  ;;  %v2210_v21 = vsub.f32 1.0, %v2209_v48 }
 0x438   : > { %2788 = vst [vmem:[#allocation1 + $0x5] ss:$9 sm:$0xff] %v2520_v11  ;;  %v1482_v11 = vadd.f32 %v4406_v15, %v4702_v54  ;;  %3601 = vrcp.f32 %v4954_v49  ;;  %vm2228_vm0 = vweird.f32 %v4954_v49 }
 0x439   : > { %2789 = vst [vmem:[#allocation1 + $0x6] ss:$9 sm:$0xff] %v2521_v18  ;;  %v2202_v18 = vand.u32 2147483647, %v4922_v37  ;;  %v2205_v59 = vor.u32 1.1754944e-38, %v2204_v61  ;;  %v2211_v10 = vmul.f32 %v4942_v36, %v2210_v21 }
 0x43a   : > { %2790 = vst [vmem:[#allocation1 + $0x7] ss:$9 sm:$0xff] %v2522_v17  ;;  %v1742_v34 = vadd.f32 %v1643_v39, %v1482_v11  ;;  %v2201_v17 = vsel %vm2200_vm9, %v4926_v38, %v2197_v22  ;;  %v2217_v38 = vand.u32 2147483647, %v4938_v51  ;;  %v2232_v39 = vand.u32 2147483647, %v4954_v49 }
 0x43b   : > { %vm2203_vm10 = vcmp.eq.f32.partialorder %v2202_v18, 8.507059e+37 }
 0x43c   : > { %v2206_v54 = vsel %vm2203_vm10, %v2205_v59, %v2201_v17  ;;  %v3365_v58 = vmul.f32 -1.442695, %v1742_v34  ;;  %vm2218_vm14 = vcmp.eq.f32.partialorder %v2217_v38, 8.507059e+37  ;;  %vm2233_vm3 = vcmp.eq.f32.partialorder %v2232_v39, 8.507059e+37 }
 0x43d   : > { %v2537_v0 = vrot.slane %v2206_v54, 1  ;;  %v2538_v27 = vrot.slane %v2206_v54, 2  ;;  %v2539_v37 = vrot.slane %v2206_v54, 3  ;;  %v2540_v23 = vrot.slane %v2206_v54, 4 }
 0x43e   : > { %3603 = vpow2.f32 %v3365_v58  ;;  %v2541_v9 = vrot.slane %v2206_v54, 5 }
 0x441   : > { %v2791_v55 = vld [vmem:[#allocation1] sm:$0xff] }
 0x442   : > { %2792 = vst [vmem:[#allocation1] ss:$9 sm:$0xff] %v2176_v20  ;;  %2964 = vperm.xlu2 %3502, %v2791_v55   ;;  %v1649_v20 = vpop.permute.xlu2 %1648  ;;  %v4958_v55 = vpop.eup %3601 }
 0x443   : > { %2793 = vst [vmem:[#allocation1 + $0x1] ss:$9 sm:$0xff] %v2523_v4  ;;  %v2212_v4 = vadd.f32 %v4942_v36, %v2211_v10  ;;  %v1743_v52 = vadd.f32 %v1649_v20, %v1483_v28  ;;  %v2224_v2 = vmul.f32 %v4958_v55, %v4954_v49  ;;  %vm2229_vm15 = vweird.f32 %v4958_v55  ;;  %v1661_v20 = vpop.permute.xlu0 %1660 }
 0x444   : > { %2794 = vst [vmem:[#allocation1 + $0x2] ss:$9 sm:$0xff] %v2524_v56  ;;  %v2542_v56 = vrot.slane %v2206_v54, 6  ;;  %vm2230_vm1 = vmor %vm2228_vm0, %vm2229_vm15  ;;  %v1485_v28 = vadd.f32 %v4406_v15, %v4724_v42 }
 0x445   : > { %2795 = vst [vmem:[#allocation1 + $0x3] ss:$9 sm:$0xff] %v2525_v1  ;;  %v2219_v1 = vand.u32 2147483648, %v4938_v51  ;;  %v2216_v7 = vsel %vm2215_vm13, %v4942_v36, %v2212_v4  ;;  %v3366_v13 = vmul.f32 -1.442695, %v1743_v52  ;;  %v2225_v24 = vsub.f32 1.0, %v2224_v2 }
 0x446   : > { %2796 = vst [vmem:[#allocation1 + $0x4] ss:$9 sm:$0xff] %v2526_v57  ;;  %v2543_v57 = vrot.slane %v2206_v54, 7  ;;  %v1745_v38 = vadd.f32 %v1661_v20, %v1485_v28 }
 0x447   : > { %2797 = vst [vmem:[#allocation1 + $0x5] ss:$9 sm:$0xff] %v2527_v8  ;;  %v3604_v8 = vpop.eup %3603 }
 0x448   : > { %2798 = vst [vmem:[#allocation1 + $0x6] ss:$9 sm:$0xff] %v2528_v40  ;;  %v2220_v40 = vor.u32 1.1754944e-38, %v2219_v1  ;;  %v4970_v46 = vadd.f32 1.0, %v3604_v8 }
 0x449   : > { %2799 = vst [vmem:[#allocation1 + $0x7] ss:$9 sm:$0xff] %v2529_v25  ;;  %v5305_v25 = vld [vmem:[#allocation44_spill] sm:$0xff] }
 0x44a   : > { %v951_v43 = vsub.f32 %v5305_v25, %v5304_v5  ;;  %v2221_v14 = vsel %vm2218_vm14, %v2220_v40, %v2216_v7  ;;  %3605 = vrcp.f32 %v4970_v46  ;;  %v4990_v18 = vpop.permute.xlu2 %1666  ;;  %vm2243_vm5 = vweird.f32 %v4970_v46 }
 0x44b   : > { %v2544_v60 = vrot.slane %v2221_v14, 1  ;;  %3607 = vpow2.f32 %v3366_v13  ;;  %v2545_v6 = vrot.slane %v2221_v14, 2  ;;  %v2550_v22 = vrot.slane %v2221_v14, 7 }
 0x44c   : > { %v983_v12 = vmul.f32 0.5, %v951_v43  ;;  %v2247_v8 = vand.u32 2147483647, %v4970_v46  ;;  %v5306_v7 = vlaneseq  ;;  %v3368_v13 = vmul.f32 -1.442695, %v1745_v38 }
 0x44e   : > { %v1450_v63 = vadd.f32 %v4741_v31, %v983_v12  ;;  %v5013_v42 = vand.u32 127, %v5306_v7  ;;  %vm2248_vm7 = vcmp.eq.f32.partialorder %v2247_v8, 8.507059e+37 }
 0x450   : > { %v2800_v29 = vld [vmem:[#allocation1] sm:$0xff]  ;;  %v4977_v45 = vpop.eup %3605  ;;  %v1484_v31 = vadd.f32 %v4406_v15, %v1450_v63  ;;  %v5018_v43 = vadd.s32 4294967288, %v5013_v42  ;;  %v5024_v63 = vadd.s32 4294967280, %v5013_v42 }
 0x451   : > { %2801 = vst [vmem:[#allocation1] ss:$9 sm:$0xff] %v2191_v33  ;;  %2967 = vperm.xlu1 %3503, %v2800_v29   ;;  %v2226_v33 = vmul.f32 %v4958_v55, %v2225_v24  ;;  %v2547_v29 = vrot.slane %v2221_v14, 4  ;;  %v3608_v36 = vpop.eup %3607  ;;  %vm2244_vm4 = vweird.f32 %v4977_v45 }
 0x452   : > { %2802 = vst [vmem:[#allocation1 + $0x1] ss:$9 sm:$0xff] %v2530_v47  ;;  %v2546_v47 = vrot.slane %v2221_v14, 3  ;;  %v4988_v19 = vadd.f32 1.0, %v3608_v36  ;;  %v4996_v10 = vpop.permute.xlu2 %1678  ;;  %vm2245_vm6 = vmor %vm2243_vm5, %vm2244_vm4 }
 0x453   : > { %2803 = vst [vmem:[#allocation1 + $0x2] ss:$9 sm:$0xff] %v2531_v16  ;;  %v2548_v16 = vrot.slane %v2221_v14, 5 }
 0x454   : > { %2804 = vst [vmem:[#allocation1 + $0x3] ss:$9 sm:$0xff] %v2532_v35  ;;  %v2227_v35 = vadd.f32 %v4958_v55, %v2226_v33  ;;  %3609 = vrcp.f32 %v4988_v19  ;;  %v2264_v39 = vand.u32 2147483648, %v4988_v19  ;;  %vm2258_vm10 = vweird.f32 %v4988_v19 }
 0x455   : > { %2805 = vst [vmem:[#allocation1 + $0x4] ss:$9 sm:$0xff] %v2533_v44  ;;  %v2549_v44 = vrot.slane %v2221_v14, 6 }
 0x456   : > { %2806 = vst [vmem:[#allocation1 + $0x5] ss:$9 sm:$0xff] %v2534_v26  ;;  %v1655_v26 = vpop.permute.xlu1 %1654  ;;  %v2231_v11 = vsel %vm2230_vm1, %v4958_v55, %v2227_v35 }
 0x457   : > { %2807 = vst [vmem:[#allocation1 + $0x6] ss:$9 sm:$0xff] %v2535_v62  ;;  %v2234_v62 = vand.u32 2147483648, %v4954_v49  ;;  %v1744_v61 = vadd.f32 %v1655_v26, %v1484_v31 }
 0x458   : > { %2808 = vst [vmem:[#allocation1 + $0x7] ss:$9 sm:$0xff] %v2536_v32  ;;  %v2239_v32 = vmul.f32 %v4977_v45, %v4970_v46 }
 0x459   : > { %v2235_v48 = vor.u32 1.1754944e-38, %v2234_v62  ;;  %v3367_v59 = vmul.f32 -1.442695, %v1744_v61 }
 0x45a   : > { %v2240_v17 = vsub.f32 1.0, %v2239_v32  ;;  %v2914_v24 = vpop.permute.xlu2 %2913  ;;  %v1486_v32 = vadd.f32 %v4406_v15, %v4705_v50 }
 0x45b   : > { %v2236_v34 = vsel %vm2233_vm3, %v2235_v48, %v2231_v11  ;;  %3611 = vpow2.f32 %v3367_v59  ;;  %v3009_v33 = vperm.slane %v2914_v24, %v5018_v43  ;;  %v2262_v48 = vand.u32 2147483647, %v4988_v19 }
 0x45c   : > { %v2551_v49 = vrot.slane %v2236_v34, 1  ;;  %v2552_v58 = vrot.slane %v2236_v34, 2  ;;  %v2557_v4 = vrot.slane %v2236_v34, 7 }
 0x45d   : > { %vm2263_vm12 = vcmp.eq.f32.partialorder %v2262_v48, 8.507059e+37 }
 0x45f   : > { %v2809_v41 = vld [vmem:[#allocation1] sm:$0xff] }
 0x460   : > { %2810 = vst [vmem:[#allocation1] ss:$9 sm:$0xff] %v2206_v54  ;;  %2970 = vperm.xlu0 %3501, %v2809_v41   ;;  %v4993_v54 = vpop.permute.xlu1 %1672  ;;  %v2241_v41 = vmul.f32 %v4977_v45, %v2240_v17 }
 0x461   : > { %2811 = vst [vmem:[#allocation1 + $0x1] ss:$9 sm:$0xff] %v2537_v0  ;;  %v2553_v0 = vrot.slane %v2236_v34, 3 }
 0x462   : > { %2812 = vst [vmem:[#allocation1 + $0x2] ss:$9 sm:$0xff] %v2538_v27  ;;  %v2554_v27 = vrot.slane %v2236_v34, 4  ;;  %v2242_v55 = vadd.f32 %v4977_v45, %v2241_v41 }
 0x463   : > { %2813 = vst [vmem:[#allocation1 + $0x3] ss:$9 sm:$0xff] %v2539_v37  ;;  %v4998_v37 = vpop.eup %3609 }
 0x464   : > { %2814 = vst [vmem:[#allocation1 + $0x4] ss:$9 sm:$0xff] %v2540_v23  ;;  %v2555_v23 = vrot.slane %v2236_v34, 5  ;;  %v3612_v1 = vpop.eup %3611  ;;  %v2246_v2 = vsel %vm2245_vm6, %v4977_v45, %v2242_v55  ;;  %vm2259_vm9 = vweird.f32 %v4998_v37 }
 0x465   : > { %2815 = vst [vmem:[#allocation1 + $0x5] ss:$9 sm:$0xff] %v2541_v9  ;;  %v2556_v9 = vrot.slane %v2236_v34, 6  ;;  %v5015_v5 = vadd.f32 1.0, %v3612_v1  ;;  %vm2260_vm11 = vmor %vm2258_vm10, %vm2259_vm9  ;;  %v1487_v1 = vadd.f32 %v4406_v15, %v4788_v53 }
 0x466   : > { %2816 = vst [vmem:[#allocation1 + $0x6] ss:$9 sm:$0xff] %v2542_v56  ;;  %v2249_v56 = vand.u32 2147483648, %v4970_v46 }
 0x467   : > { %2817 = vst [vmem:[#allocation1 + $0x7] ss:$9 sm:$0xff] %v2543_v57  ;;  %v2254_v57 = vmul.f32 %v4998_v37, %v4988_v19  ;;  %3613 = vrcp.f32 %v5015_v5  ;;  %vm2273_vm14 = vweird.f32 %v5015_v5  ;;  %v2277_v8 = vand.u32 2147483647, %v5015_v5 }
 0x468   : > { %v5009_v52 = vpop.permute.xlu1 %1684  ;;  %v2250_v40 = vor.u32 1.1754944e-38, %v2249_v56  ;;  %3615 = vpow2.f32 %v3368_v13  ;;  %v2279_v56 = vand.u32 2147483648, %v5015_v5 }
 0x469   : > { %v2255_v25 = vsub.f32 1.0, %v2254_v57  ;;  %vm2278_vm0 = vcmp.eq.f32.partialorder %v2277_v8, 8.507059e+37 }
 0x46a   : > { %v2251_v46 = vsel %vm2248_vm7, %v2250_v40, %v2246_v2  ;;  %v1747_v2 = vadd.f32 %v4993_v54, %v1487_v1  ;;  %v2280_v13 = vor.u32 1.1754944e-38, %v2279_v56 }
 0x46b   : > { %v2256_v12 = vmul.f32 %v4998_v37, %v2255_v25  ;;  %v2561_v45 = vrot.slane %v2251_v46, 4  ;;  %v2564_v61 = vrot.slane %v2251_v46, 7 }
 0x46c   : > { %v3370_v24 = vmul.f32 -1.442695, %v1747_v2 }
 0x46d   : > { %v5029_v36 = vpop.eup %3613  ;;  %v2257_v62 = vadd.f32 %v4998_v37, %v2256_v12 }
 0x46e   : > { %v2818_v51 = vld [vmem:[#allocation1] sm:$0xff]  ;;  %v3616_v11 = vpop.eup %3615  ;;  %v2269_v17 = vmul.f32 %v5029_v36, %v5015_v5  ;;  %vm2274_vm13 = vweird.f32 %v5029_v36 }
 0x46f   : > { %2819 = vst [vmem:[#allocation1] ss:$9 sm:$0xff] %v2221_v14  ;;  %2973 = vperm.xlu2 %3502, %v2818_v51   ;;  %v2911_v14 = vpop.permute.xlu0 %2910  ;;  %v2261_v59 = vsel %vm2260_vm11, %v4998_v37, %v2257_v62  ;;  %vm2275_vm15 = vmor %vm2273_vm14, %vm2274_vm13 }
 0x470   : > { %2820 = vst [vmem:[#allocation1 + $0x1] ss:$9 sm:$0xff] %v2544_v60  ;;  %v2558_v60 = vrot.slane %v2251_v46, 1  ;;  %v2270_v41 = vsub.f32 1.0, %v2269_v17 }
 0x471   : > { %2821 = vst [vmem:[#allocation1 + $0x2] ss:$9 sm:$0xff] %v2545_v6  ;;  %v2559_v6 = vrot.slane %v2251_v46, 2 }
 0x472   : > { %2822 = vst [vmem:[#allocation1 + $0x3] ss:$9 sm:$0xff] %v2546_v47  ;;  %v2560_v47 = vrot.slane %v2251_v46, 3 }
 0x473   : > { %2823 = vst [vmem:[#allocation1 + $0x4] ss:$9 sm:$0xff] %v2547_v29  ;;  %v3007_v29 = vperm.slane %v2911_v14, %v5013_v42 }
 0x474   : > { %2824 = vst [vmem:[#allocation1 + $0x5] ss:$9 sm:$0xff] %v2548_v16  ;;  %v2917_v16 = vpop.permute.xlu1 %2916 }
 0x475   : > { %2825 = vst [vmem:[#allocation1 + $0x6] ss:$9 sm:$0xff] %v2549_v44  ;;  %v3013_v35 = vperm.slane %v2917_v16, %v5024_v63  ;;  %v2562_v44 = vrot.slane %v2251_v46, 5  ;;  %v3011_v26 = vsel %vm3010_vm2, %v3009_v33, %v3007_v29 }
 0x476   : > { %2826 = vst [vmem:[#allocation1 + $0x7] ss:$9 sm:$0xff] %v2550_v22  ;;  %v2563_v22 = vrot.slane %v2251_v46, 6 }
 0x477   : > { %v5034_v31 = vsel %vm3014_vm8, %v3013_v35, %v3011_v26 }
 0x47d   : > { %v2827_v21 = vld [vmem:[#allocation1] sm:$0xff] }
 0x47e   : > { %2828 = vst [vmem:[#allocation1] ss:$9 sm:$0xff] %v2236_v34  ;;  %2976 = vperm.xlu1 %3503, %v2827_v21   ;;  %v1746_v34 = vadd.f32 %v4990_v18, %v1486_v32  ;;  %v5045_v21 = vadd.f32 1.0, %v3616_v11  ;;  %v2271_v18 = vmul.f32 %v5029_v36, %v2270_v41 }
 0x47f   : > { %2829 = vst [vmem:[#allocation1 + $0x1] ss:$9 sm:$0xff] %v2551_v49  ;;  %v2265_v49 = vor.u32 1.1754944e-38, %v2264_v39 }
 0x480   : > { %2830 = vst [vmem:[#allocation1 + $0x2] ss:$9 sm:$0xff] %v2552_v58  ;;  %v3369_v58 = vmul.f32 -1.442695, %v1746_v34  ;;  %3617 = vrcp.f32 %v5045_v21  ;;  %v2294_v16 = vand.u32 2147483648, %v5045_v21  ;;  %vm2288_vm3 = vweird.f32 %v5045_v21 }
 0x481   : > { %2831 = vst [vmem:[#allocation1 + $0x3] ss:$9 sm:$0xff] %v2553_v0  ;;  %v2266_v50 = vsel %vm2263_vm12, %v2265_v49, %v2261_v59  ;;  %v2292_v26 = vand.u32 2147483647, %v5045_v21 }
 0x482   : > { %2832 = vst [vmem:[#allocation1 + $0x4] ss:$9 sm:$0xff] %v2554_v27  ;;  %v2565_v19 = vrot.slane %v2266_v50, 1  ;;  %v2566_v27 = vrot.slane %v2266_v50, 2  ;;  %3619 = vpow2.f32 %v3369_v58  ;;  %v2568_v37 = vrot.slane %v2266_v50, 4 }
 0x483   : > { %2833 = vst [vmem:[#allocation1 + $0x5] ss:$9 sm:$0xff] %v2555_v23  ;;  %v2567_v23 = vrot.slane %v2266_v50, 3  ;;  %v2569_v20 = vrot.slane %v2266_v50, 5  ;;  %v2570_v55 = vrot.slane %v2266_v50, 6  ;;  %v2571_v28 = vrot.slane %v2266_v50, 7 }
 0x484   : > { %2834 = vst [vmem:[#allocation1 + $0x6] ss:$9 sm:$0xff] %v2556_v9  ;;  %v2295_v39 = vor.u32 1.1754944e-38, %v2294_v16  ;;  %vm2293_vm5 = vcmp.eq.f32.partialorder %v2292_v26, 8.507059e+37 }
 0x485   : > { %2835 = vst [vmem:[#allocation1 + $0x7] ss:$9 sm:$0xff] %v2557_v4  ;;  %v2272_v4 = vadd.f32 %v5029_v36, %v2271_v18 }
 0x486   : > { %v3618_v9 = vpop.eup %3617 }
 0x487   : > { %v2284_v38 = vmul.f32 %v3618_v9, %v5045_v21  ;;  %v2276_v40 = vsel %vm2275_vm15, %v5029_v36, %v2272_v4  ;;  %vm2289_vm1 = vweird.f32 %v3618_v9 }
 0x488   : > { %v3620_v57 = vpop.eup %3619  ;;  %v2281_v53 = vsel %vm2278_vm0, %v2280_v13, %v2276_v40  ;;  %vm2290_vm4 = vmor %vm2288_vm3, %vm2289_vm1 }
 0x489   : > { %v5059_v25 = vadd.f32 1.0, %v3620_v57  ;;  %v2572_v12 = vrot.slane %v2281_v53, 1  ;;  %v2575_v54 = vrot.slane %v2281_v53, 4  ;;  %v2576_v33 = vrot.slane %v2281_v53, 5 }
 0x48a   : > { %v2577_v29 = vrot.slane %v2281_v53, 6  ;;  %v2578_v35 = vrot.slane %v2281_v53, 7 }
 0x48b   : > { %3621 = vrcp.f32 %v5059_v25  ;;  %vm2303_vm7 = vweird.f32 %v5059_v25 }
 0x48c   : > { %v2836_v51 = vld [vmem:[#allocation1] sm:$0xff]  ;;  %3623 = vpow2.f32 %v3370_v24 }
 0x48d   : > { %2837 = vst [vmem:[#allocation1] ss:$9 sm:$0xff] %v2251_v46  ;;  %2979 = vperm.xlu0 %3501, %v2836_v51   ;;  %v2285_v46 = vsub.f32 1.0, %v2284_v38  ;;  %v2574_v51 = vrot.slane %v2281_v53, 3 }
 0x48e   : > { %2838 = vst [vmem:[#allocation1 + $0x1] ss:$9 sm:$0xff] %v2558_v60  ;;  %v2573_v60 = vrot.slane %v2281_v53, 2 }
 0x48f   : > { %2839 = vst [vmem:[#allocation1 + $0x2] ss:$9 sm:$0xff] %v2559_v6  ;;  %v2286_v5 = vmul.f32 %v3618_v9, %v2285_v46 }
 0x490   : > { %2840 = vst [vmem:[#allocation1 + $0x3] ss:$9 sm:$0xff] %v2560_v47 }
 0x491   : > { %2841 = vst [vmem:[#allocation1 + $0x4] ss:$9 sm:$0xff] %v2561_v45  ;;  %v3622_v6 = vpop.eup %3621  ;;  %v2287_v47 = vadd.f32 %v3618_v9, %v2286_v5  ;;  %v1488_v45 = vadd.f32 %v4406_v15, %v4816_v3 }
 0x492   : > { %2842 = vst [vmem:[#allocation1 + $0x5] ss:$9 sm:$0xff] %v2562_v44  ;;  %v3624_v44 = vpop.eup %3623  ;;  %v2299_v36 = vmul.f32 %v3622_v6, %v5059_v25  ;;  %vm2304_vm6 = vweird.f32 %v3622_v6 }
 0x493   : > { %2843 = vst [vmem:[#allocation1 + $0x6] ss:$9 sm:$0xff] %v2563_v22  ;;  %v1748_v62 = vadd.f32 %v4996_v10, %v1488_v45  ;;  %v2291_v22 = vsel %vm2290_vm4, %v3618_v9, %v2287_v47  ;;  %v5069_v32 = vadd.f32 1.0, %v3624_v44  ;;  %vm2305_vm9 = vmor %vm2303_vm7, %vm2304_vm6 }
 0x494   : > { %2844 = vst [vmem:[#allocation1 + $0x7] ss:$9 sm:$0xff] %v2564_v61  ;;  %v2296_v3 = vsel %vm2293_vm5, %v2295_v39, %v2291_v22  ;;  %v2300_v61 = vsub.f32 1.0, %v2299_v36 }
 0x495   : > { %v3371_v11 = vmul.f32 -1.442695, %v1748_v62  ;;  %3625 = vrcp.f32 %v5069_v32  ;;  %v2579_v48 = vrot.slane %v2296_v3, 1  ;;  %v2580_v17 = vrot.slane %v2296_v3, 2 }
 0x496   : > { %v2301_v59 = vmul.f32 %v3622_v6, %v2300_v61  ;;  %v2581_v49 = vrot.slane %v2296_v3, 3  ;;  %v2582_v10 = vrot.slane %v2296_v3, 4  ;;  %v2583_v21 = vrot.slane %v2296_v3, 5 }
 0x497   : > { %3627 = vpow2.f32 %v3371_v11  ;;  %v2584_v58 = vrot.slane %v2296_v3, 6  ;;  %vm2318_vm12 = vweird.f32 %v5069_v32 }
 0x498   : > { %v2302_v41 = vadd.f32 %v3622_v6, %v2301_v59 }
 0x49a   : > { %v2306_v9 = vsel %vm2305_vm9, %v3622_v6, %v2302_v41  ;;  %vm3018_vm9 = vcmask 261312  }
 0x49b   : > { %v2845_v0 = vld [vmem:[#allocation1] sm:$0xff] }
 0x49c   : > { %2846 = vst [vmem:[#allocation1] ss:$9 sm:$0xff] %v2266_v50  ;;  %2982 = vperm.xlu2 %3502, %v2845_v0   ;;  %v3626_v50 = vpop.eup %3625  ;;  %v2309_v0 = vand.u32 2147483648, %v5059_v25 }
 0x49d   : > { %2847 = vst [vmem:[#allocation1 + $0x1] ss:$9 sm:$0xff] %v2565_v19  ;;  %v2585_v19 = vrot.slane %v2296_v3, 7  ;;  %v3628_v18 = vpop.eup %3627  ;;  %vm2319_vm11 = vweird.f32 %v3626_v50 }
 0x49e   : > { %2848 = vst [vmem:[#allocation1 + $0x2] ss:$9 sm:$0xff] %v2566_v27  ;;  %v1489_v27 = vadd.f32 %v4406_v15, %v4830_v30  ;;  %v5079_v4 = vadd.f32 1.0, %v3628_v18  ;;  %vm2320_vm13 = vmor %vm2318_vm12, %vm2319_vm11  ;;  %vm3026_vm11 = vcmask 392512   ;;  %vm3030_vm12 = vcmask 458112  }
 0x49f   : > { %2849 = vst [vmem:[#allocation1 + $0x3] ss:$9 sm:$0xff] %v2567_v23  ;;  %v2307_v23 = vand.u32 2147483647, %v5059_v25 }
 0x4a0   : > { %2850 = vst [vmem:[#allocation1 + $0x4] ss:$9 sm:$0xff] %v2568_v37  ;;  %v2314_v37 = vmul.f32 %v3626_v50, %v5069_v32  ;;  %3629 = vrcp.f32 %v5079_v4  ;;  %v2339_v22 = vand.u32 2147483648, %v5079_v4  ;;  %vm2333_vm0 = vweird.f32 %v5079_v4 }
 0x4a1   : > { %2851 = vst [vmem:[#allocation1 + $0x5] ss:$9 sm:$0xff] %v2569_v20  ;;  %v1749_v20 = vadd.f32 %v5009_v52, %v1489_v27  ;;  %vm2308_vm10 = vcmp.eq.f32.partialorder %v2307_v23, 8.507059e+37 }
 0x4a2   : > { %2852 = vst [vmem:[#allocation1 + $0x6] ss:$9 sm:$0xff] %v2570_v55  ;;  %v2310_v55 = vor.u32 1.1754944e-38, %v2309_v0  ;;  %v2315_v56 = vsub.f32 1.0, %v2314_v37  ;;  %v2340_v11 = vor.u32 1.1754944e-38, %v2339_v22 }
 0x4a3   : > { %2853 = vst [vmem:[#allocation1 + $0x7] ss:$9 sm:$0xff] %v2571_v28  ;;  %v3372_v15 = vmul.f32 -1.442695, %v1749_v20 }
 0x4a4   : > { %v2311_v28 = vsel %vm2308_vm10, %v2310_v55, %v2306_v9  ;;  %v2316_v8 = vmul.f32 %v3626_v50, %v2315_v56  ;;  %vm3022_vm10 = vcmask 326912  }
 0x4a5   : > { %v2586_v30 = vrot.slane %v2311_v28, 1  ;;  %v2587_v57 = vrot.slane %v2311_v28, 2  ;;  %3631 = vpow2.f32 %v3372_v15  ;;  %v2588_v38 = vrot.slane %v2311_v28, 3 }
 0x4a6   : > { %v2589_v52 = vrot.slane %v2311_v28, 4  ;;  %v2590_v2 = vrot.slane %v2311_v28, 5  ;;  %v3630_v40 = vpop.eup %3629  ;;  %v2591_v25 = vrot.slane %v2311_v28, 6  ;;  %v2317_v13 = vadd.f32 %v3626_v50, %v2316_v8  ;;  %v2920_v8 = vpop.permute.xlu2 %2919 }
 0x4a7   : > { %v2592_v46 = vrot.slane %v2311_v28, 7  ;;  %vm2334_vm15 = vweird.f32 %v3630_v40 }
 0x4a8   : > { %v2321_v5 = vsel %vm2320_vm13, %v3626_v50, %v2317_v13  ;;  %vm2335_vm1 = vmor %vm2333_vm0, %vm2334_vm15  ;;  %vm3034_vm13 = vcmask 523712   ;;  %vm3050_vm15 = vcmask 786112   ;;  %vm3054_vm0 = vcmask 851712  }
 0x4aa   : > { %v2854_v14 = vld [vmem:[#allocation1] sm:$0xff] }
 0x4ab   : > { %2855 = vst [vmem:[#allocation1] ss:$9 sm:$0xff] %v2281_v53  ;;  %2985 = vperm.xlu1 %3503, %v2854_v14   ;;  %v2324_v53 = vand.u32 2147483648, %v5069_v32  ;;  %v3632_v24 = vpop.eup %3631  ;;  %v2322_v14 = vand.u32 2147483647, %v5069_v32 }
 0x4ac   : > { %2856 = vst [vmem:[#allocation1 + $0x1] ss:$9 sm:$0xff] %v2572_v12  ;;  %v2329_v12 = vmul.f32 %v3630_v40, %v5079_v4  ;;  %v2337_v32 = vand.u32 2147483647, %v5079_v4 }
 0x4ad   : > { %2857 = vst [vmem:[#allocation1 + $0x2] ss:$9 sm:$0xff] %v2573_v60  ;;  %v2325_v60 = vor.u32 1.1754944e-38, %v2324_v53  ;;  %vm2323_vm14 = vcmp.eq.f32.partialorder %v2322_v14, 8.507059e+37 }
 0x4ae   : > { %2858 = vst [vmem:[#allocation1 + $0x3] ss:$9 sm:$0xff] %v2574_v51  ;;  %v1877_v51 = vadd.f32 1.0, %v3632_v24  ;;  %vm2338_vm3 = vcmp.eq.f32.partialorder %v2337_v32, 8.507059e+37 }
 0x4af   : > { %2859 = vst [vmem:[#allocation1 + $0x4] ss:$9 sm:$0xff] %v2575_v54  ;;  %v2330_v54 = vsub.f32 1.0, %v2329_v12 }
 0x4b0   : > { %2860 = vst [vmem:[#allocation1 + $0x5] ss:$9 sm:$0xff] %v2576_v33  ;;  %v2326_v33 = vsel %vm2323_vm14, %v2325_v60, %v2321_v5  ;;  %3633 = vrcp.f32 %v1877_v51  ;;  %v2354_v27 = vand.u32 2147483648, %v1877_v51  ;;  %vm2348_vm5 = vweird.f32 %v1877_v51 }
 0x4b1   : > { %2861 = vst [vmem:[#allocation1 + $0x6] ss:$9 sm:$0xff] %v2577_v29  ;;  %v2593_v6 = vrot.slane %v2326_v33, 1  ;;  %v2331_v29 = vmul.f32 %v3630_v40, %v2330_v54  ;;  %v2594_v16 = vrot.slane %v2326_v33, 2  ;;  %v2595_v45 = vrot.slane %v2326_v33, 3 }
 0x4b2   : > { %2862 = vst [vmem:[#allocation1 + $0x7] ss:$9 sm:$0xff] %v2578_v35  ;;  %v2596_v35 = vrot.slane %v2326_v33, 4  ;;  %v2597_v44 = vrot.slane %v2326_v33, 5  ;;  %v2598_v62 = vrot.slane %v2326_v33, 6  ;;  %v2599_v39 = vrot.slane %v2326_v33, 7 }
 0x4b3   : > { %v2332_v36 = vadd.f32 %v3630_v40, %v2331_v29  ;;  %v2352_v18 = vand.u32 2147483647, %v1877_v51  ;;  %v2355_v37 = vor.u32 1.1754944e-38, %v2354_v27  ;;  %v3016_v29 = vadd.s32 4294967272, %v5013_v42 }
 0x4b4   : > { %vm3046_vm14 = vcmask 720512  }
 0x4b5   : > { %v2336_v61 = vsel %vm2335_vm1, %v3630_v40, %v2332_v36  ;;  %vm2353_vm7 = vcmp.eq.f32.partialorder %v2352_v18, 8.507059e+37  ;;  %vm3058_vm1 = vcmask 917312  }
 0x4b6   : > { %v3634_v26 = vpop.eup %3633 }
 0x4b7   : > { %vm2349_vm4 = vweird.f32 %v3634_v26 }
 0x4b8   : > { %vm2350_vm6 = vmor %vm2348_vm5, %vm2349_vm4  ;;  %vm3066_vm4 = vcmask 1048512   ;;  %vm3100_vm5 = vcmask 1040384  }
 0x4b9   : > { %v2863_v34 = vld [vmem:[#allocation1] sm:$0xff] }
 0x4ba   : > { %2864 = vst [vmem:[#allocation1] ss:$9 sm:$0xff] %v2296_v3  ;;  %2988 = vperm.xlu0 %3501, %v2863_v34   ;;  %v2344_v3 = vmul.f32 %v3634_v26, %v1877_v51 }
 0x4bb   : > { %2865 = vst [vmem:[#allocation1 + $0x1] ss:$9 sm:$0xff] %v2579_v48  ;;  %v2341_v48 = vsel %vm2338_vm3, %v2340_v11, %v2336_v61  ;;  %v3028_v61 = vadd.s32 4294967248, %v5013_v42  ;;  %vm3062_vm3 = vcmask 982912  }
 0x4bc   : > { %2866 = vst [vmem:[#allocation1 + $0x2] ss:$9 sm:$0xff] %v2580_v17  ;;  %v2345_v34 = vsub.f32 1.0, %v2344_v3  ;;  %v2600_v17 = vrot.slane %v2341_v48, 1  ;;  %v2603_v50 = vrot.slane %v2341_v48, 4  ;;  %v2605_v41 = vrot.slane %v2341_v48, 6 }
 0x4bd   : > { %2867 = vst [vmem:[#allocation1 + $0x3] ss:$9 sm:$0xff] %v2581_v49  ;;  %v2601_v49 = vrot.slane %v2341_v48, 2  ;;  %v2606_v0 = vrot.slane %v2341_v48, 7 }
 0x4be   : > { %2868 = vst [vmem:[#allocation1 + $0x4] ss:$9 sm:$0xff] %v2582_v10  ;;  %v2346_v10 = vmul.f32 %v3634_v26, %v2345_v34 }
 0x4bf   : > { %2869 = vst [vmem:[#allocation1 + $0x5] ss:$9 sm:$0xff] %v2583_v21  ;;  %v2602_v21 = vrot.slane %v2341_v48, 3 }
 0x4c0   : > { %2870 = vst [vmem:[#allocation1 + $0x6] ss:$9 sm:$0xff] %v2584_v58  ;;  %v2604_v58 = vrot.slane %v2341_v48, 5 }
 0x4c1   : > { %2871 = vst [vmem:[#allocation1 + $0x7] ss:$9 sm:$0xff] %v2585_v19  ;;  %v2347_v19 = vadd.f32 %v3634_v26, %v2346_v10 }
 0x4c3   : > { %v2351_v23 = vsel %vm2350_vm6, %v3634_v26, %v2347_v19  ;;  %v3044_v19 = vadd.s32 4294967216, %v5013_v42  ;;  %vm3105_vm6 = vcmp.lt.s32.totalorder %v5306_v7, 256 }
 0x4c4   : > { %v2356_v20 = vsel %vm2353_vm7, %v2355_v37, %v2351_v23 }
 0x4c5   : > { %v2607_v9 = vrot.slane %v2356_v20, 1  ;;  %v2608_v4 = vrot.slane %v2356_v20, 2  ;;  %v2610_v56 = vrot.slane %v2356_v20, 4  ;;  %v2611_v15 = vrot.slane %v2356_v20, 5 }
 0x4c8   : > { %v2872_v1 = vld [vmem:[#allocation1] sm:$0xff] }
 0x4c9   : > { %2991 = vperm.xlu2 %3502, %v2872_v1   ;;  %2873 = vst [vmem:[#allocation1] ss:$9 sm:$0xff] %v2311_v28  ;;  %v2609_v28 = vrot.slane %v2356_v20, 3  ;;  %v2613_v1 = vrot.slane %v2356_v20, 7 }
 0x4ca   : > { %2874 = vst [vmem:[#allocation1 + $0x1] ss:$9 sm:$0xff] %v2586_v30  ;;  %v2612_v30 = vrot.slane %v2356_v20, 6 }
 0x4cb   : > { %2875 = vst [vmem:[#allocation1 + $0x2] ss:$9 sm:$0xff] %v2587_v57 }
 0x4cc   : > { %2876 = vst [vmem:[#allocation1 + $0x3] ss:$9 sm:$0xff] %v2588_v38  ;;  %v2923_v38 = vpop.permute.xlu1 %2922 }
 0x4cd   : > { %2877 = vst [vmem:[#allocation1 + $0x4] ss:$9 sm:$0xff] %v2589_v52  ;;  %v2926_v52 = vpop.permute.xlu0 %2925 }
 0x4ce   : > { %2878 = vst [vmem:[#allocation1 + $0x5] ss:$9 sm:$0xff] %v2590_v2  ;;  %v2929_v2 = vpop.permute.xlu2 %2928 }
 0x4cf   : > { %2879 = vst [vmem:[#allocation1 + $0x6] ss:$9 sm:$0xff] %v2591_v25  ;;  %v3029_v10 = vperm.slane %v2929_v2, %v3028_v61 }
 0x4d0   : > { %2880 = vst [vmem:[#allocation1 + $0x7] ss:$9 sm:$0xff] %v2592_v46 }
 0x4d4   : > { %v2932_v40 = vpop.permute.xlu1 %2931 }
 0x4d5   : > { %v2935_v25 = vpop.permute.xlu0 %2934 }
 0x4d6   : > { %v5089_v13 = vpop.permute.xlu2 %2937 }
 0x4d7   : > { %v2881_v47 = vld [vmem:[#allocation1] sm:$0xff] }
 0x4d8   : > { %2994 = vperm.xlu1 %3503, %v2881_v47   ;;  %2882 = vst [vmem:[#allocation1] ss:$9 sm:$0xff] %v2326_v33 }
 0x4d9   : > { %2883 = vst [vmem:[#allocation1 + $0x1] ss:$9 sm:$0xff] %v2593_v6  ;;  %v3020_v6 = vadd.s32 4294967264, %v5013_v42 }
 0x4da   : > { %2884 = vst [vmem:[#allocation1 + $0x2] ss:$9 sm:$0xff] %v2594_v16 }
 0x4db   : > { %2885 = vst [vmem:[#allocation1 + $0x3] ss:$9 sm:$0xff] %v2595_v45  ;;  %v3021_v16 = vperm.slane %v2923_v38, %v3020_v6  ;;  %v3024_v45 = vadd.s32 4294967256, %v5013_v42 }
 0x4dc   : > { %2886 = vst [vmem:[#allocation1 + $0x4] ss:$9 sm:$0xff] %v2596_v35  ;;  %v5091_v46 = vpop.permute.xlu1 %2940  ;;  %v3017_v35 = vperm.slane %v2920_v8, %v3016_v29 }
 0x4dd   : > { %2887 = vst [vmem:[#allocation1 + $0x5] ss:$9 sm:$0xff] %v2597_v44  ;;  %v5093_v53 = vpop.permute.xlu0 %2943  ;;  %v3025_v3 = vperm.slane %v2926_v52, %v3024_v45 }
 0x4de   : > { %2888 = vst [vmem:[#allocation1 + $0x6] ss:$9 sm:$0xff] %v2598_v62  ;;  %v5095_v24 = vpop.permute.xlu2 %2946  ;;  %v3019_v26 = vsel %vm3018_vm9, %v3017_v35, %v5034_v31 }
 0x4df   : > { %2889 = vst [vmem:[#allocation1 + $0x7] ss:$9 sm:$0xff] %v2599_v39  ;;  %v3023_v22 = vsel %vm3022_vm10, %v3021_v16, %v3019_v26  ;;  %v3032_v39 = vadd.s32 4294967240, %v5013_v42 }
 0x4e1   : > { %v3033_v31 = vperm.slane %v2932_v40, %v3032_v39 }
 0x4e4   : > { %v5097_v14 = vpop.permute.xlu1 %2949 }
 0x4e5   : > { %v5099_v12 = vpop.permute.xlu0 %2952 }
 0x4e6   : > { %v2890_v59 = vld [vmem:[#allocation1] sm:$0xff]  ;;  %v5101_v5 = vpop.permute.xlu2 %2955 }
 0x4e7   : > { %2997 = vperm.xlu0 %3501, %v2890_v59   ;;  %2891 = vst [vmem:[#allocation1] ss:$9 sm:$0xff] %v2341_v48  ;;  %v3027_v48 = vsel %vm3026_vm11, %v3025_v3, %v3023_v22 }
 0x4e8   : > { %2892 = vst [vmem:[#allocation1 + $0x1] ss:$9 sm:$0xff] %v2600_v17 }
 0x4e9   : > { %2893 = vst [vmem:[#allocation1 + $0x2] ss:$9 sm:$0xff] %v2601_v49  ;;  %v3036_v49 = vadd.s32 4294967232, %v5013_v42 }
 0x4ea   : > { %2894 = vst [vmem:[#allocation1 + $0x3] ss:$9 sm:$0xff] %v2602_v21 }
 0x4eb   : > { %2895 = vst [vmem:[#allocation1 + $0x4] ss:$9 sm:$0xff] %v2603_v50 }
 0x4ec   : > { %2896 = vst [vmem:[#allocation1 + $0x5] ss:$9 sm:$0xff] %v2604_v58  ;;  %v2959_v60 = vpop.permute.xlu1 %2958  ;;  %v3040_v58 = vadd.s32 4294967224, %v5013_v42 }
 0x4ed   : > { %2897 = vst [vmem:[#allocation1 + $0x6] ss:$9 sm:$0xff] %v2605_v41  ;;  %v2962_v51 = vpop.permute.xlu0 %2961  ;;  %v3068_v11 = vperm.slane %v2959_v60, %v5013_v42  ;;  %v3031_v41 = vsel %vm3030_vm12, %v3029_v10, %v3027_v48 }
 0x4ee   : > { %2898 = vst [vmem:[#allocation1 + $0x7] ss:$9 sm:$0xff] %v2606_v0  ;;  %v2965_v54 = vpop.permute.xlu2 %2964  ;;  %v3069_v36 = vperm.slane %v2962_v51, %v5018_v43 }
 0x4ef   : > { %v3071_v43 = vperm.slane %v2965_v54, %v5024_v63  ;;  %v3035_v63 = vsel %vm3034_vm13, %v3033_v31, %v3031_v41 }
 0x4f0   : > { %v3070_v34 = vsel %vm3010_vm2, %v3069_v36, %v3068_v11  ;;  %vm3038_vm2 = vcmask 589312  }
 0x4f1   : > { %v3072_v50 = vsel %vm3014_vm8, %v3071_v43, %v3070_v34  ;;  %vm3042_vm8 = vcmask 654912  }
 0x4f4   : > { %v2968_v33 = vpop.permute.xlu1 %2967 }
 0x4f5   : > { %v2899_v55 = vld [vmem:[#allocation1] sm:$0xff]  ;;  %v2971_v47 = vpop.permute.xlu0 %2970  ;;  %v3073_v17 = vperm.slane %v2968_v33, %v3016_v29 }
 0x4f6   : > { %3000 = vperm.xlu2 %3502, %v2899_v55   ;;  %2900 = vst [vmem:[#allocation1] ss:$9 sm:$0xff] %v2356_v20  ;;  %v2974_v44 = vpop.permute.xlu2 %2973  ;;  %v3075_v59 = vperm.slane %v2971_v47, %v3020_v6  ;;  %v3037_v20 = vperm.slane %v2935_v25, %v3036_v49 }
 0x4f7   : > { %2901 = vst [vmem:[#allocation1 + $0x1] ss:$9 sm:$0xff] %v2607_v9  ;;  %v3074_v0 = vsel %vm3018_vm9, %v3073_v17, %v3072_v50  ;;  %v3077_v9 = vperm.slane %v2974_v44, %v3024_v45 }
 0x4f8   : > { %2902 = vst [vmem:[#allocation1 + $0x2] ss:$9 sm:$0xff] %v2608_v4  ;;  %v3076_v18 = vsel %vm3022_vm10, %v3075_v59, %v3074_v0  ;;  %v3039_v4 = vsel %vm3038_vm2, %v3037_v20, %v3035_v63 }
 0x4f9   : > { %2903 = vst [vmem:[#allocation1 + $0x3] ss:$9 sm:$0xff] %v2609_v28  ;;  %v3045_v28 = vperm.slane %v5091_v46, %v3044_v19  ;;  %v3056_v46 = vadd.s32 4294967192, %v5013_v42 }
 0x4fa   : > { %2904 = vst [vmem:[#allocation1 + $0x4] ss:$9 sm:$0xff] %v2610_v56  ;;  %v3078_v56 = vsel %vm3026_vm11, %v3077_v9, %v3076_v18 }
 0x4fb   : > { %2905 = vst [vmem:[#allocation1 + $0x5] ss:$9 sm:$0xff] %v2611_v15  ;;  %v3041_v15 = vperm.slane %v5089_v13, %v3040_v58  ;;  %v3052_v13 = vadd.s32 4294967200, %v5013_v42  ;;  %v3057_v45 = vperm.slane %v5097_v14, %v3056_v46 }
 0x4fc   : > { %2906 = vst [vmem:[#allocation1 + $0x6] ss:$9 sm:$0xff] %v2612_v30  ;;  %v2977_v62 = vpop.permute.xlu1 %2976  ;;  %v3048_v30 = vadd.s32 4294967208, %v5013_v42 }
 0x4fd   : > { %2907 = vst [vmem:[#allocation1 + $0x7] ss:$9 sm:$0xff] %v2613_v1  ;;  %v3079_v23 = vperm.slane %v2977_v62, %v3028_v61  ;;  %v3043_v52 = vsel %vm3042_vm8, %v3041_v15, %v3039_v4  ;;  %v3053_v26 = vperm.slane %v5095_v24, %v3052_v13 }
 0x4fe   : > { %v2983_v21 = vpop.permute.xlu2 %2982  ;;  %v3047_v25 = vsel %vm3046_vm14, %v3045_v28, %v3043_v52  ;;  %v3049_v51 = vperm.slane %v5093_v53, %v3048_v30  ;;  %v3060_v53 = vadd.s32 4294967184, %v5013_v42 }
 0x4ff   : > { %v2980_v32 = vpop.permute.xlu0 %2979  ;;  %v3080_v1 = vsel %vm3030_vm12, %v3079_v23, %v3078_v56  ;;  %v3083_v2 = vperm.slane %v2983_v21, %v3036_v49 }
 0x500   : > { %v3081_v55 = vperm.slane %v2980_v32, %v3032_v39  ;;  %v3051_v47 = vsel %vm3050_vm15, %v3049_v51, %v3047_v25  ;;  %v3064_v32 = vadd.s32 4294967176, %v5013_v42  ;;  %v3061_v24 = vperm.slane %v5099_v12, %v3060_v53 }
 0x501   : > { %v3055_v22 = vsel %vm3054_vm0, %v3053_v26, %v3051_v47 }
 0x502   : > { %v3059_v3 = vsel %vm3058_vm1, %v3057_v45, %v3055_v22  ;;  %v3065_v42 = vperm.slane %v5101_v5, %v3064_v32 }
 0x503   : > { %v3063_v34 = vsel %vm3062_vm3, %v3061_v24, %v3059_v3 }
 0x504   : > { %v2908_v57 = vld [vmem:[#allocation1] sm:$0xff]  ;;  %v3067_v59 = vsel %vm3066_vm4, %v3065_v42, %v3063_v34 }
 0x505   : > { %3003 = vperm.xlu1 %3503, %v2908_v57   ;;  %v3082_v57 = vsel %vm3034_vm13, %v3081_v55, %v3080_v1 }
 0x506   : > { %v3084_v54 = vsel %vm3038_vm2, %v3083_v2, %v3082_v57 }
 0x51d   : > { %v2986_v27 = vpop.permute.xlu1 %2985 }
 0x51e   : > { %v3085_v38 = vperm.slane %v2986_v27, %v3040_v58 }
 0x520   : > { %v3086_v6 = vsel %vm3042_vm8, %v3085_v38, %v3084_v54 }
 0x523   : > { %v2992_v8 = vpop.permute.xlu2 %2991 }
 0x524   : > { %v3089_v35 = vperm.slane %v2992_v8, %v3048_v30 }
 0x52c   : > { %v2989_v37 = vpop.permute.xlu0 %2988 }
 0x52d   : > { %v3087_v40 = vperm.slane %v2989_v37, %v3044_v19 }
 0x52f   : > { %v3088_v29 = vsel %vm3046_vm14, %v3087_v40, %v3086_v6 }
 0x530   : > { %v3090_v62 = vsel %vm3050_vm15, %v3089_v35, %v3088_v29 }
 0x54a   : > { %v2995_v60 = vpop.permute.xlu1 %2994 }
 0x54b   : > { %v3091_v16 = vperm.slane %v2995_v60, %v3052_v13 }
 0x54d   : > { %v3092_v39 = vsel %vm3054_vm0, %v3091_v16, %v3090_v62 }
 0x550   : > { %v3001_v36 = vpop.permute.xlu2 %3000 }
 0x551   : > { %v3095_v14 = vperm.slane %v3001_v36, %v3060_v53 }
 0x559   : > { %v2998_v33 = vpop.permute.xlu0 %2997 }
 0x55a   : > { %v3093_v44 = vperm.slane %v2998_v33, %v3056_v46 }
 0x55c   : > { %v3094_v61 = vsel %vm3058_vm1, %v3093_v44, %v3092_v39 }
 0x55d   : > { %v3096_v17 = vsel %vm3062_vm3, %v3095_v14, %v3094_v61 }
 0x577   : > { %v3004_v11 = vpop.permute.xlu1 %3003 }
 0x578   : > { %v3097_v48 = vperm.slane %v3004_v11, %v3064_v32 }
 0x57a   : > { %v3098_v31 = vsel %vm3066_vm4, %v3097_v48, %v3096_v17 }
 0x57b   : > { %v3099_v43 = vrot.slane %v3098_v31, 7 }
 0x57d   : > { %v3101_v12 = vsel %vm3100_vm5, %v3067_v59, %v3099_v43 }
 0x57e   : > { %3107 = vst.msk [vmem:[%s340_s26] sm:$0x3] %vm3105_vm6, %v3101_v12 }
 0x57f   : > { %3692 = shalt.err (!%p3689_p7)
}
 0x580   : > { %3420 = dma.vmem_to_hbm [thread:$0]  (%p3836_p11), %s3122_s28, 32, %s3124_s11, %s3109_s17  }
 0x581 PF: > { %s3135_s27 = sand.u32 1, %s3719_s29   ;;  %p5307_p5 = scmp.ge.s32.totalorder %s3731_s10, 2 }
 0x582   : > { %s3136_s7 = scalar_lea.sflag [#allocation5], %s3135_s27 }
 0x583   : > { %p3427_p8 = pnand %p5307_p5, %p3840_p12 }
 0x585   : > { %p3428_p10 = pneg %p3427_p8 }
 0x587   : > { %3714 = dma.done.wait (%p3428_p10), %s3136_s7, 32  }
 0x588   : > { %3716 = vsyncadd (%p3428_p10), %s3136_s7, 4294967264  ;;  %s5308_s21 = sld [smem:[#allocation9_spill]]  ;;  %p22_p2 = scmp.ge.s32.totalorder %s3811_s12, 4  }
 0x589   : > { %s5309_s29 = smov %s3723_s30  ;;  %s5310_s30 = smov %s3727_s9 }
 0x58a   : > { %s5312_s10 = smov %s3811_s12  ;;  %24 = sbr.rel (!%p22_p2) target bundleno = 7 (0x7), region = 107 }
 0x58e   : > { %s5311_s9 = smov %s5308_s21 }
 0x58f   :  { %3142 = vsyncpa [#allocation4], 1 }
 0x590   :  { %3144 = vsyncpa [#allocation4 + $0x1], 1 }
 0x591   :  { %3145 = vsyncpa [#allocation5], 1 }
 0x592   :  { %3147 = vsyncpa [#allocation5 + $0x1], 1 }

</bundles_post_ra>
